<compile_context>
chip_gen: v7x
topology: tpu7x:2x2x1
jax: 0.10.0
libtpu: 0.0.40
codegen_flags: <defaults>
</compile_context>

<pallas_src>
import math
import functools

import jax
import jax.numpy as jnp
from jax import lax
from jax.experimental import pallas as pl
from jax.experimental.pallas import tpu as pltpu


_MB = 1024 * 1024


def _pick_tile(total, target, quantum=8):
    """Largest tile <= target (multiple of quantum) dividing `total`,
    falling back to `total` (one full block, always legal) otherwise."""
    if total <= target:
        return total
    t = (target // quantum) * quantum
    while t >= quantum:
        if total % t == 0:
            return t
        t -= quantum
    return total


def _compiler_params(sem, vmem_bytes=None):
    kw = dict(dimension_semantics=sem)
    if vmem_bytes is not None:
        # sized to the actual double-buffered blocks, clamped to v7x physical
        kw["vmem_limit_bytes"] = int(min(max(vmem_bytes, 32 * _MB), 64 * _MB))
    return pltpu.CompilerParams(**kw)


# ----------------------------------------------------------------------------
# Kernel 1: fused in_proj1 (x & z) + in_proj2 (x half only), bf16 MXU
# ----------------------------------------------------------------------------
def _in_proj_kernel(x1_ref, x2_ref, w1a_ref, w1z_ref, w2_ref,
                    x1c_ref, z1_ref, x2c_ref):
    x1 = x1_ref[...]
    x2 = x2_ref[...]
    x1c_ref[...] = jnp.dot(x1, w1a_ref[...],
                           preferred_element_type=jnp.float32).astype(x1c_ref.dtype)
    z1_ref[...] = jnp.dot(x1, w1z_ref[...],
                          preferred_element_type=jnp.float32).astype(z1_ref.dtype)
    x2c_ref[...] = jnp.dot(x2, w2_ref[...],
                           preferred_element_type=jnp.float32).astype(x2c_ref.dtype)


def in_proj_pallas(x1f, x2f, w1a, w1z, w2x, m_tile=1024):
    M, Dm = x1f.shape
    Dex = w1a.shape[1]
    mt = _pick_tile(M, m_tile, 16)
    grid = (M // mt,)
    out_sds = jax.ShapeDtypeStruct((M, Dex), jnp.bfloat16)
    return pl.pallas_call(
        _in_proj_kernel,
        out_shape=(out_sds, out_sds, out_sds),
        grid=grid,
        in_specs=[
            pl.BlockSpec((mt, Dm), lambda i: (i, 0)),
            pl.BlockSpec((mt, Dm), lambda i: (i, 0)),
            pl.BlockSpec((Dm, Dex), lambda i: (0, 0)),
            pl.BlockSpec((Dm, Dex), lambda i: (0, 0)),
            pl.BlockSpec((Dm, Dex), lambda i: (0, 0)),
        ],
        out_specs=(
            pl.BlockSpec((mt, Dex), lambda i: (i, 0)),
            pl.BlockSpec((mt, Dex), lambda i: (i, 0)),
            pl.BlockSpec((mt, Dex), lambda i: (i, 0)),
        ),
        compiler_params=_compiler_params(("parallel",)),
    )(x1f, x2f, w1a, w1z, w2x)


# ----------------------------------------------------------------------------
# Kernel 2: shared depthwise 3x3 conv + bias + SiLU on both streams + cross
#           combine x1*x2 + x1 + x2.  Channel-tiled, separate stream refs.
# ----------------------------------------------------------------------------
def _conv_cross_kernel(x1_ref, x2_ref, w_ref, b_ref, o_ref):
    H, W = o_ref.shape[1], o_ref.shape[2]
    C = o_ref.shape[3]
    f32 = jnp.float32
    wv = w_ref[...].astype(f32)                       # (3, 3, tc)
    acc1 = jnp.zeros((H, W, C), f32)
    acc2 = jnp.zeros((H, W, C), f32)
    # materialize the 3 dj-shifted (sublane-shift) slabs once, reuse over di
    for dj in range(3):
        s1 = x1_ref[0, :, dj:dj + W, :].astype(f32)   # (Hp, W, tc)
        s2 = x2_ref[0, :, dj:dj + W, :].astype(f32)
        for di in range(3):
            w = wv[di, dj, :]
            acc1 = acc1 + s1[di:di + H] * w
            acc2 = acc2 + s2[di:di + H] * w
    b = b_ref[0, :].astype(f32)
    acc1 = acc1 + b
    acc2 = acc2 + b
    a1 = acc1 * jax.nn.sigmoid(acc1)                  # SiLU stream 1
    a2 = acc2 * jax.nn.sigmoid(acc2)                  # SiLU stream 2
    o_ref[0] = (a1 * a2 + a1 + a2).astype(o_ref.dtype)


def conv_cross_pallas(x1p, x2p, w, b, c_tile=128):
    B, Hp, Wp, C = x1p.shape
    H, W = Hp - 2, Wp - 2
    tc = C if C <= c_tile else max(128, (c_tile // 128) * 128)
    nc = pl.cdiv(C, tc)
    vmem = (4 * Hp * Wp * tc * 2 + 2 * H * W * tc * 2
            + 10 * H * W * tc * 4 + 6 * Hp * W * tc * 4 + 2 * _MB)
    return pl.pallas_call(
        _conv_cross_kernel,
        out_shape=jax.ShapeDtypeStruct((B, H, W, C), jnp.bfloat16),
        grid=(B, nc),
        in_specs=[
            pl.BlockSpec((1, Hp, Wp, tc), lambda bi, ci: (bi, 0, 0, ci)),
            pl.BlockSpec((1, Hp, Wp, tc), lambda bi, ci: (bi, 0, 0, ci)),
            pl.BlockSpec((3, 3, tc), lambda bi, ci: (0, 0, ci)),
            pl.BlockSpec((1, tc), lambda bi, ci: (0, ci)),
        ],
        out_specs=pl.BlockSpec((1, H, W, tc), lambda bi, ci: (bi, 0, 0, ci)),
        compiler_params=_compiler_params(("parallel", "parallel"), vmem),
    )(x1p, x2p, w, b)


# ----------------------------------------------------------------------------
# Kernel 3: fused x_proj + dt_proj in native (K, B*L, .) layout.
#           Emits dt / B / C separately so the scan is fed with zero glue.
# ----------------------------------------------------------------------------
def _xproj_kernel(x_ref, wdt_ref, wb_ref, wc_ref, dt_ref, b_ref, c_ref):
    x = x_ref[0]
    dt_ref[0] = jnp.dot(x, wdt_ref[0],
                        preferred_element_type=jnp.float32).astype(dt_ref.dtype)
    b_ref[0] = jnp.dot(x, wb_ref[0],
                       preferred_element_type=jnp.float32).astype(b_ref.dtype)
    c_ref[0] = jnp.dot(x, wc_ref[0],
                       preferred_element_type=jnp.float32).astype(c_ref.dtype)


def xproj_dtproj_pallas(xs, wdt_t, wb_t, wc_t, m_tile=512):
    K, M, Dex = xs.shape
    N = wb_t.shape[2]
    mt = _pick_tile(M, m_tile, 16)
    grid = (K, M // mt)
    return pl.pallas_call(
        _xproj_kernel,
        out_shape=(
            jax.ShapeDtypeStruct((K, M, Dex), jnp.bfloat16),
            jax.ShapeDtypeStruct((K, M, N), jnp.bfloat16),
            jax.ShapeDtypeStruct((K, M, N), jnp.bfloat16),
        ),
        grid=grid,
        in_specs=[
            pl.BlockSpec((1, mt, Dex), lambda k, i: (k, i, 0)),
            pl.BlockSpec((1, Dex, Dex), lambda k, i: (k, 0, 0)),
            pl.BlockSpec((1, Dex, N), lambda k, i: (k, 0, 0)),
            pl.BlockSpec((1, Dex, N), lambda k, i: (k, 0, 0)),
        ],
        out_specs=(
            pl.BlockSpec((1, mt, Dex), lambda k, i: (k, i, 0)),
            pl.BlockSpec((1, mt, N), lambda k, i: (k, i, 0)),
            pl.BlockSpec((1, mt, N), lambda k, i: (k, i, 0)),
        ),
        compiler_params=_compiler_params(("parallel", "parallel")),
    )(xs, wdt_t, wb_t, wc_t)


# ----------------------------------------------------------------------------
# Kernel 4: selective scan.  Grid (B, K, L-tiles); state (N, D) persists in a
#           VMEM scratch across the 'arbitrary' L axis.  Everything that does
#           not depend on the running state (softplus, dt*u, exp(dt*A), the
#           B/C fan-out via 0/1 MXU matmuls) is hoisted off the serial chain.
# ----------------------------------------------------------------------------
def _scan_kernel(u_ref, dl_ref, b_ref, c_ref, arep_ref, d_ref, bias_ref,
                 fm_ref, mm_ref, y_ref, state_ref, *, chunk):
    f32 = jnp.float32
    lt = u_ref.shape[1]
    D = u_ref.shape[2]
    N = mm_ref.shape[1]
    CH = chunk

    @pl.when(pl.program_id(2) == 0)
    def _init():
        state_ref[...] = jnp.zeros_like(state_ref)

    Fm = fm_ref[...]                       # (CH*N, CH)  0/1 fan-out
    Mm = mm_ref[...]                       # (CH*N, N)   0/1 state-row mask
    A_rep = arep_ref[0]                    # (CH*N, D)
    bias = bias_ref[0]                     # (1, D)
    Dv = d_ref[0]                          # (1, D)
    ones_nd = jnp.ones((N, D), f32)        # broadcast selected B/C over D lanes

    def chunk_body(ci, state):
        base = pl.multiple_of(ci * CH, CH)
        u_c = u_ref[0, pl.ds(base, CH), :].astype(f32)     # (CH, D)
        dl_c = dl_ref[0, pl.ds(base, CH), :].astype(f32)   # (CH, D)
        b_c = b_ref[0, pl.ds(base, CH), :].astype(f32)     # (CH, N)
        c_c = c_ref[0, pl.ds(base, CH), :].astype(f32)     # (CH, N)

        # softplus(delta + bias) with torch's threshold=20 (off the chain)
        dt_c = dl_c + bias
        dt_c = jnp.where(dt_c > 20.0, dt_c,
                         jnp.log1p(jnp.exp(jnp.minimum(dt_c, 20.0))))
        du_c = dt_c * u_c

        dt_rep = jnp.dot(Fm, dt_c, preferred_element_type=f32)     # (CH*N, D)
        du_rep = jnp.dot(Fm, du_c, preferred_element_type=f32)
        dA = jnp.exp(dt_rep * A_rep)                                # (CH*N, D)
        b_rep = jnp.dot(Fm, b_c, preferred_element_type=f32) * Mm   # (CH*N, N)
        c_rep = jnp.dot(Fm, c_c, preferred_element_type=f32) * Mm
        bdu = jnp.dot(b_rep, ones_nd, preferred_element_type=f32) * du_rep
        cex = jnp.dot(c_rep, ones_nd, preferred_element_type=f32)

        # serial recurrence: only the state fma is on the dependence chain
        s = state
        y_rows = []
        for j in range(CH):
            sl = slice(j * N, (j + 1) * N)
            s = dA[sl, :] * s + bdu[sl, :]                          # (N, D)
            y_rows.append(jnp.sum(cex[sl, :] * s, axis=0, keepdims=True))
        y_c = jnp.concatenate(y_rows, axis=0) + Dv * u_c            # (CH, D)
        y_ref[0, pl.ds(base, CH), :] = y_c.astype(y_ref.dtype)
        return s

    state = lax.fori_loop(0, lt // CH, chunk_body, state_ref[...])
    state_ref[...] = state


def selective_scan_pallas(u, dlt, Bs, Cs, A_rep, Dv, dbias, Fm, Mm,
                          batch, l_tile, chunk):
    K, BL, D = u.shape
    N = Bs.shape[2]
    CHN = Fm.shape[0]
    Lpad = BL // batch
    n_l = Lpad // l_tile
    idx_bl = lambda b, k, l: (k, b * n_l + l, 0)
    idx_k = lambda b, k, l: (k, 0, 0)
    idx_c = lambda b, k, l: (0, 0)
    vmem = (6 * l_tile * D * 2 + 8 * l_tile * N * 2
            + CHN * (D + chunk + N) * 4 + 10 * CHN * D * 4
            + 2 * N * D * 4 + 2 * _MB)
    return pl.pallas_call(
        functools.partial(_scan_kernel, chunk=chunk),
        out_shape=jax.ShapeDtypeStruct((K, BL, D), jnp.bfloat16),
        grid=(batch, K, n_l),
        in_specs=[
            pl.BlockSpec((1, l_tile, D), idx_bl),   # u
            pl.BlockSpec((1, l_tile, D), idx_bl),   # delta (pre bias/softplus)
            pl.BlockSpec((1, l_tile, N), idx_bl),   # B
            pl.BlockSpec((1, l_tile, N), idx_bl),   # C
            pl.BlockSpec((1, CHN, D), idx_k),       # A replicated per chunk row
            pl.BlockSpec((1, 1, D), idx_k),         # D (skip term)
            pl.BlockSpec((1, 1, D), idx_k),         # dt bias
            pl.BlockSpec((CHN, chunk), idx_c),      # Fm
            pl.BlockSpec((CHN, N), idx_c),          # Mm
        ],
        out_specs=pl.BlockSpec((1, l_tile, D), idx_bl),
        scratch_shapes=[pltpu.VMEM((N, D), jnp.float32)],
        compiler_params=_compiler_params(
            ("parallel", "parallel", "arbitrary"), vmem),
    )(u, dlt, Bs, Cs, A_rep, Dv, dbias, Fm, Mm)


# ----------------------------------------------------------------------------
# Kernel 5: LayerNorm + SiLU gating (z2 = silu(silu(z1)) per the reference)
#           + out_proj.  Flattened (B*L) M axis, lane-dense padded output.
# ----------------------------------------------------------------------------
def _norm_gate_proj_kernel(y_ref, z_ref, g_ref, be_ref, w_ref, o_ref):
    f32 = jnp.float32
    y = y_ref[...].astype(f32)
    mean = jnp.mean(y, axis=-1, keepdims=True)
    var = jnp.mean(jnp.square(y - mean), axis=-1, keepdims=True)
    yn = (y - mean) * lax.rsqrt(var + 1e-5)
    yn = yn * g_ref[...] + be_ref[...]
    z1 = z_ref[...].astype(f32)
    z1 = z1 * jax.nn.sigmoid(z1)         # z1 = silu(z1)
    z2 = z1 * jax.nn.sigmoid(z1)         # z2 = silu(z1)  (reference quirk)
    gate = yn * (z1 + z2)                # y*z1 + y*z2
    o_ref[...] = jnp.dot(gate.astype(jnp.bfloat16), w_ref[...],
                         preferred_element_type=jnp.float32)


def norm_gate_proj_pallas(y, z, gamma, beta, w_pad, m_tile=1024):
    M, Dex = y.shape
    Np = w_pad.shape[1]
    mt = _pick_tile(M, m_tile, 16)
    grid = (M // mt,)
    return pl.pallas_call(
        _norm_gate_proj_kernel,
        out_shape=jax.ShapeDtypeStruct((M, Np), jnp.float32),
        grid=grid,
        in_specs=[
            pl.BlockSpec((mt, Dex), lambda i: (i, 0)),
            pl.BlockSpec((mt, Dex), lambda i: (i, 0)),
            pl.BlockSpec((1, Dex), lambda i: (0, 0)),
            pl.BlockSpec((1, Dex), lambda i: (0, 0)),
            pl.BlockSpec((Dex, Np), lambda i: (0, 0)),
        ],
        out_specs=pl.BlockSpec((mt, Np), lambda i: (i, 0)),
        compiler_params=_compiler_params(("parallel",)),
    )(y, z, gamma, beta, w_pad)


# ----------------------------------------------------------------------------
# Full forward pass (glue in plain JAX)
# ----------------------------------------------------------------------------
def ss2d_cross_forward(params, x1, x2, step_size=2):
    B, H, W, Dm = x1.shape
    Dex = params["in_proj1_w"].shape[0] // 2     # d_expand == d_inner
    K = 4
    R = params["dt_projs_w"].shape[2]
    N = params["A_logs"].shape[1]
    s = step_size
    assert s == 2, "EfficientScan/Merge implemented for step_size=2"
    bf16 = jnp.bfloat16
    f32 = jnp.float32

    # ---- in_proj1 (x & z) + in_proj2 (x half only; its z half is unused) ----
    M1 = B * H * W
    w1a = params["in_proj1_w"][:Dex].T.astype(bf16)
    w1z = params["in_proj1_w"][Dex:].T.astype(bf16)
    w2x = params["in_proj2_w"][:Dex].T.astype(bf16)
    x1c, z1, x2c = in_proj_pallas(
        x1.reshape(M1, Dm).astype(bf16), x2.reshape(M1, Dm).astype(bf16),
        w1a, w1z, w2x)

    # ---- shared depthwise conv + SiLU on both streams + cross combine ----
    x1p = jnp.pad(x1c.reshape(B, H, W, Dex), ((0, 0), (1, 1), (1, 1), (0, 0)))
    x2p = jnp.pad(x2c.reshape(B, H, W, Dex), ((0, 0), (1, 1), (1, 1), (0, 0)))
    xcross = conv_cross_pallas(x1p, x2p, params["conv_w"].astype(f32),
                               params["conv_b"].astype(f32))     # bf16

    # ---- EfficientScan (strided interleave, kept in (K, B*L, D) layout) ----
    ph, pw = (-H) % s, (-W) % s
    xpad = jnp.pad(xcross, ((0, 0), (0, ph), (0, pw), (0, 0)))
    Hs, Ws = (H + ph) // s, (W + pw) // s
    Lp = Hs * Ws
    xs0 = xpad[:, ::s, ::s, :].reshape(B, Lp, Dex)
    xs1 = jnp.swapaxes(xpad[:, 1::s, ::s, :], 1, 2).reshape(B, Lp, Dex)
    xs2 = xpad[:, ::s, 1::s, :].reshape(B, Lp, Dex)
    xs3 = jnp.swapaxes(xpad[:, 1::s, 1::s, :], 1, 2).reshape(B, Lp, Dex)
    xs = jnp.stack([xs0, xs1, xs2, xs3], axis=0)                  # (K,B,Lp,Dex)

    chunk = 16
    Lpad = ((Lp + chunk - 1) // chunk) * chunk
    if Lpad != Lp:
        xs = jnp.pad(xs, ((0, 0), (0, 0), (0, Lpad - Lp), (0, 0)))
    xs = xs.reshape(K, B * Lpad, Dex)

    # ---- fused x_proj + dt_proj (weights composed on the host) ----
    Wx = params["x_proj_w"].astype(f32)                # (K, R+2N, Dex)
    Wdt = params["dt_projs_w"].astype(f32)             # (K, Dex, R)
    wdt_t = jnp.einsum("kdr,kre->ked", Wdt, Wx[:, :R, :]).astype(bf16)
    wb_t = jnp.swapaxes(Wx[:, R:R + N, :], 1, 2).astype(bf16)
    wc_t = jnp.swapaxes(Wx[:, R + N:, :], 1, 2).astype(bf16)
    dt_raw, Bmat, Cmat = xproj_dtproj_pallas(xs, wdt_t, wb_t, wc_t)

    # ---- scan constants (host precomputed) ----
    A_t = (-jnp.exp(params["A_logs"].astype(f32))).reshape(K, Dex, N)
    A_t = jnp.transpose(A_t, (0, 2, 1))                            # (K, N, Dex)
    A_rep = jnp.tile(A_t, (1, chunk, 1))                           # (K, chunk*N, Dex)
    Dv = params["Ds"].astype(f32).reshape(K, 1, Dex)
    dbias = params["dt_projs_b"].astype(f32).reshape(K, 1, Dex)
    rows = jnp.arange(chunk * N, dtype=jnp.int32)
    Fm = (rows[:, None] // N ==
          jnp.arange(chunk, dtype=jnp.int32)[None, :]).astype(f32)
    Mm = (rows[:, None] % N ==
          jnp.arange(N, dtype=jnp.int32)[None, :]).astype(f32)

    l_tile = _pick_tile(Lpad, 512, chunk)
    ys = selective_scan_pallas(xs, dt_raw, Bmat, Cmat, A_rep, Dv, dbias, Fm, Mm,
                               batch=B, l_tile=l_tile, chunk=chunk)

    # ---- EfficientMerge: stack + transpose (no scatter) ----
    ysr = ys.reshape(K, B, Lpad, Dex)[:, :, :Lp, :]
    y0 = ysr[0].reshape(B, Hs, Ws, Dex)
    y1 = jnp.swapaxes(ysr[1].reshape(B, Ws, Hs, Dex), 1, 2)
    y2 = ysr[2].reshape(B, Hs, Ws, Dex)
    y3 = jnp.swapaxes(ysr[3].reshape(B, Ws, Hs, Dex), 1, 2)
    stk = jnp.stack([y0, y1, y2, y3], axis=1).reshape(B, 2, 2, Hs, Ws, Dex)
    merged = stk.transpose(0, 3, 2, 4, 1, 5).reshape(B, Hs * s, Ws * s, Dex)
    ymerged = merged[:, :H, :W, :].reshape(M1, Dex)

    # ---- LayerNorm + gating + out_proj (output padded to 128 lanes) ----
    Npad = ((Dm + 127) // 128) * 128
    w_out = jnp.pad(params["out_proj_w"].T.astype(bf16),
                    ((0, 0), (0, Npad - Dm)))
    out = norm_gate_proj_pallas(
        ymerged, z1,
        params["ln_gamma"].astype(f32).reshape(1, Dex),
        params["ln_beta"].astype(f32).reshape(1, Dex),
        w_out)
    return out[:, :Dm].reshape(B, H, W, Dm)


# ----------------------------------------------------------------------------
# Deterministic parameter construction (shapes follow SS2D_cross_new.__init__)
# ----------------------------------------------------------------------------
def init_params(key, d_model=16, d_state=16, ssm_ratio=2.0, d_conv=3,
                dt_min=0.001, dt_max=0.1, dt_init_floor=1e-4):
    d_expand = int(ssm_ratio * d_model)
    d_inner = d_expand
    R = math.ceil(d_model / 16)
    K = 4
    ks = jax.random.split(key, 8)

    def unif(k, shape, scale):
        return jax.random.uniform(k, shape, jnp.float32, -scale, scale)

    p = {}
    p["in_proj1_w"] = unif(ks[0], (2 * d_expand, d_model), 1.0 / math.sqrt(d_model))
    p["in_proj2_w"] = unif(ks[1], (2 * d_expand, d_model), 1.0 / math.sqrt(d_model))
    p["conv_w"] = unif(ks[2], (3, 3, d_expand), 1.0 / math.sqrt(d_conv * d_conv))
    p["conv_b"] = unif(ks[3], (1, d_expand), 1.0 / math.sqrt(d_conv * d_conv))
    p["x_proj_w"] = unif(ks[4], (K, R + 2 * d_state, d_inner), 1.0 / math.sqrt(d_inner))
    p["dt_projs_w"] = unif(ks[5], (K, d_inner, R), R ** -0.5)
    dt = jnp.exp(jax.random.uniform(ks[6], (K, d_inner))
                 * (math.log(dt_max) - math.log(dt_min)) + math.log(dt_min))
    dt = jnp.maximum(dt, dt_init_floor)
    p["dt_projs_b"] = dt + jnp.log(-jnp.expm1(-dt))
    A = jnp.tile(jnp.arange(1, d_state + 1, dtype=jnp.float32)[None, :],
                 (K * d_inner, 1))
    p["A_logs"] = jnp.log(A)
    p["Ds"] = jnp.ones((K * d_inner,), jnp.float32)
    p["ln_gamma"] = jnp.ones((d_inner,), jnp.float32)
    p["ln_beta"] = jnp.zeros((d_inner,), jnp.float32)
    p["out_proj_w"] = unif(ks[7], (d_model, d_expand), 1.0 / math.sqrt(d_expand))
    return p


if __name__ == "__main__":
    key = jax.random.PRNGKey(0)
    kp, k1, k2 = jax.random.split(key, 3)

    d_model = 16
    B, H, W = 2, 8, 8
    params = init_params(kp, d_model=d_model)

    x1 = jax.random.normal(k1, (B, H, W, d_model), jnp.float32)
    x2 = jax.random.normal(k2, (B, H, W, d_model), jnp.float32)

    fwd = jax.jit(functools.partial(ss2d_cross_forward, step_size=2))
    out = fwd(params, x1, x2)
    out = jax.block_until_ready(out)

    assert out.shape == (B, H, W, d_model), out.shape
    assert bool(jnp.all(jnp.isfinite(out)))
    print("KERNEL_OK")
</pallas_src>

<mosaic_0001>
module attributes {stable_mosaic.version = 11 : i64} {
  func.func @_conv_cross_kernel(%arg0: i32, %arg1: i32, %arg2: memref<1x10x10x32xbf16, #tpu.memory_space<vmem>>, %arg3: memref<1x10x10x32xbf16, #tpu.memory_space<vmem>>, %arg4: memref<3x3x32xf32, #tpu.memory_space<vmem>>, %arg5: memref<1x32xf32, #tpu.memory_space<vmem>>, %arg6: memref<1x8x8x32xbf16, #tpu.memory_space<vmem>>) attributes {dimension_semantics = [#tpu.dimension_semantics<parallel>, #tpu.dimension_semantics<parallel>], iteration_bounds = array<i64: 2, 1>, scalar_prefetch = 0 : i64, scratch_operands = 0 : i64, tpu.core_type = #tpu.core_type<tc>, window_params = [{transform_indices = @transform_0, window_bounds = array<i64: 1, 10, 10, 32>}, {transform_indices = @transform_1, window_bounds = array<i64: 1, 10, 10, 32>}, {transform_indices = @transform_2, window_bounds = array<i64: 3, 3, 32>}, {transform_indices = @transform_3, window_bounds = array<i64: 1, 32>}, {transform_indices = @transform_4, window_bounds = array<i64: 1, 8, 8, 32>}]} {
    %c0 = arith.constant 0 : index
    %c0_0 = arith.constant 0 : index
    %c0_1 = arith.constant 0 : index
    %0 = vector.load %arg4[%c0, %c0_0, %c0_1] : memref<3x3x32xf32, #tpu.memory_space<vmem>>, vector<3x3x32xf32>
    %cst = arith.constant 0.000000e+00 : f32
    %1 = vector.broadcast %cst : f32 to vector<8x8x32xf32>
    %cst_2 = arith.constant 0.000000e+00 : f32
    %2 = vector.broadcast %cst_2 : f32 to vector<8x8x32xf32>
    %c0_3 = arith.constant 0 : index
    %c0_4 = arith.constant 0 : index
    %c0_5 = arith.constant 0 : index
    %c0_6 = arith.constant 0 : index
    %3 = vector.load %arg2[%c0_3, %c0_4, %c0_5, %c0_6] : memref<1x10x10x32xbf16, #tpu.memory_space<vmem>>, vector<1x10x8x32xbf16>
    %4 = vector.shape_cast %3 : vector<1x10x8x32xbf16> to vector<10x8x32xbf16>
    %5 = arith.extf %4 : vector<10x8x32xbf16> to vector<10x8x32xf32>
    %c0_7 = arith.constant 0 : index
    %c0_8 = arith.constant 0 : index
    %c0_9 = arith.constant 0 : index
    %c0_10 = arith.constant 0 : index
    %6 = vector.load %arg3[%c0_7, %c0_8, %c0_9, %c0_10] : memref<1x10x10x32xbf16, #tpu.memory_space<vmem>>, vector<1x10x8x32xbf16>
    %7 = vector.shape_cast %6 : vector<1x10x8x32xbf16> to vector<10x8x32xbf16>
    %8 = arith.extf %7 : vector<10x8x32xbf16> to vector<10x8x32xf32>
    %9 = vector.extract_strided_slice %0 {offsets = [0, 0, 0], sizes = [1, 1, 32], strides = [1, 1, 1]} : vector<3x3x32xf32> to vector<1x1x32xf32>
    %10 = vector.shape_cast %9 : vector<1x1x32xf32> to vector<32xf32>
    %11 = vector.extract_strided_slice %5 {offsets = [0, 0, 0], sizes = [8, 8, 32], strides = [1, 1, 1]} : vector<10x8x32xf32> to vector<8x8x32xf32>
    %12 = vector.shape_cast %10 : vector<32xf32> to vector<1x1x32xf32>
    %13 = vector.broadcast %12 : vector<1x1x32xf32> to vector<8x8x32xf32>
    %14 = arith.mulf %11, %13 : vector<8x8x32xf32>
    %15 = arith.addf %1, %14 : vector<8x8x32xf32>
    %16 = vector.extract_strided_slice %8 {offsets = [0, 0, 0], sizes = [8, 8, 32], strides = [1, 1, 1]} : vector<10x8x32xf32> to vector<8x8x32xf32>
    %17 = vector.shape_cast %10 : vector<32xf32> to vector<1x1x32xf32>
    %18 = vector.broadcast %17 : vector<1x1x32xf32> to vector<8x8x32xf32>
    %19 = arith.mulf %16, %18 : vector<8x8x32xf32>
    %20 = arith.addf %2, %19 : vector<8x8x32xf32>
    %21 = vector.extract_strided_slice %0 {offsets = [1, 0, 0], sizes = [1, 1, 32], strides = [1, 1, 1]} : vector<3x3x32xf32> to vector<1x1x32xf32>
    %22 = vector.shape_cast %21 : vector<1x1x32xf32> to vector<32xf32>
    %23 = vector.extract_strided_slice %5 {offsets = [1, 0, 0], sizes = [8, 8, 32], strides = [1, 1, 1]} : vector<10x8x32xf32> to vector<8x8x32xf32>
    %24 = vector.shape_cast %22 : vector<32xf32> to vector<1x1x32xf32>
    %25 = vector.broadcast %24 : vector<1x1x32xf32> to vector<8x8x32xf32>
    %26 = arith.mulf %23, %25 : vector<8x8x32xf32>
    %27 = arith.addf %15, %26 : vector<8x8x32xf32>
    %28 = vector.extract_strided_slice %8 {offsets = [1, 0, 0], sizes = [8, 8, 32], strides = [1, 1, 1]} : vector<10x8x32xf32> to vector<8x8x32xf32>
    %29 = vector.shape_cast %22 : vector<32xf32> to vector<1x1x32xf32>
    %30 = vector.broadcast %29 : vector<1x1x32xf32> to vector<8x8x32xf32>
    %31 = arith.mulf %28, %30 : vector<8x8x32xf32>
    %32 = arith.addf %20, %31 : vector<8x8x32xf32>
    %33 = vector.extract_strided_slice %0 {offsets = [2, 0, 0], sizes = [1, 1, 32], strides = [1, 1, 1]} : vector<3x3x32xf32> to vector<1x1x32xf32>
    %34 = vector.shape_cast %33 : vector<1x1x32xf32> to vector<32xf32>
    %35 = vector.extract_strided_slice %5 {offsets = [2, 0, 0], sizes = [8, 8, 32], strides = [1, 1, 1]} : vector<10x8x32xf32> to vector<8x8x32xf32>
    %36 = vector.shape_cast %34 : vector<32xf32> to vector<1x1x32xf32>
    %37 = vector.broadcast %36 : vector<1x1x32xf32> to vector<8x8x32xf32>
    %38 = arith.mulf %35, %37 : vector<8x8x32xf32>
    %39 = arith.addf %27, %38 : vector<8x8x32xf32>
    %40 = vector.extract_strided_slice %8 {offsets = [2, 0, 0], sizes = [8, 8, 32], strides = [1, 1, 1]} : vector<10x8x32xf32> to vector<8x8x32xf32>
    %41 = vector.shape_cast %34 : vector<32xf32> to vector<1x1x32xf32>
    %42 = vector.broadcast %41 : vector<1x1x32xf32> to vector<8x8x32xf32>
    %43 = arith.mulf %40, %42 : vector<8x8x32xf32>
    %44 = arith.addf %32, %43 : vector<8x8x32xf32>
    %c0_11 = arith.constant 0 : index
    %c0_12 = arith.constant 0 : index
    %c1 = arith.constant 1 : index
    %c0_13 = arith.constant 0 : index
    %45 = vector.load %arg2[%c0_11, %c0_12, %c1, %c0_13] : memref<1x10x10x32xbf16, #tpu.memory_space<vmem>>, vector<1x10x8x32xbf16>
    %46 = vector.shape_cast %45 : vector<1x10x8x32xbf16> to vector<10x8x32xbf16>
    %47 = arith.extf %46 : vector<10x8x32xbf16> to vector<10x8x32xf32>
    %c0_14 = arith.constant 0 : index
    %c0_15 = arith.constant 0 : index
    %c1_16 = arith.constant 1 : index
    %c0_17 = arith.constant 0 : index
    %48 = vector.load %arg3[%c0_14, %c0_15, %c1_16, %c0_17] : memref<1x10x10x32xbf16, #tpu.memory_space<vmem>>, vector<1x10x8x32xbf16>
    %49 = vector.shape_cast %48 : vector<1x10x8x32xbf16> to vector<10x8x32xbf16>
    %50 = arith.extf %49 : vector<10x8x32xbf16> to vector<10x8x32xf32>
    %51 = vector.extract_strided_slice %0 {offsets = [0, 1, 0], sizes = [1, 1, 32], strides = [1, 1, 1]} : vector<3x3x32xf32> to vector<1x1x32xf32>
    %52 = vector.shape_cast %51 : vector<1x1x32xf32> to vector<32xf32>
    %53 = vector.extract_strided_slice %47 {offsets = [0, 0, 0], sizes = [8, 8, 32], strides = [1, 1, 1]} : vector<10x8x32xf32> to vector<8x8x32xf32>
    %54 = vector.shape_cast %52 : vector<32xf32> to vector<1x1x32xf32>
    %55 = vector.broadcast %54 : vector<1x1x32xf32> to vector<8x8x32xf32>
    %56 = arith.mulf %53, %55 : vector<8x8x32xf32>
    %57 = arith.addf %39, %56 : vector<8x8x32xf32>
    %58 = vector.extract_strided_slice %50 {offsets = [0, 0, 0], sizes = [8, 8, 32], strides = [1, 1, 1]} : vector<10x8x32xf32> to vector<8x8x32xf32>
    %59 = vector.shape_cast %52 : vector<32xf32> to vector<1x1x32xf32>
    %60 = vector.broadcast %59 : vector<1x1x32xf32> to vector<8x8x32xf32>
    %61 = arith.mulf %58, %60 : vector<8x8x32xf32>
    %62 = arith.addf %44, %61 : vector<8x8x32xf32>
    %63 = vector.extract_strided_slice %0 {offsets = [1, 1, 0], sizes = [1, 1, 32], strides = [1, 1, 1]} : vector<3x3x32xf32> to vector<1x1x32xf32>
    %64 = vector.shape_cast %63 : vector<1x1x32xf32> to vector<32xf32>
    %65 = vector.extract_strided_slice %47 {offsets = [1, 0, 0], sizes = [8, 8, 32], strides = [1, 1, 1]} : vector<10x8x32xf32> to vector<8x8x32xf32>
    %66 = vector.shape_cast %64 : vector<32xf32> to vector<1x1x32xf32>
    %67 = vector.broadcast %66 : vector<1x1x32xf32> to vector<8x8x32xf32>
    %68 = arith.mulf %65, %67 : vector<8x8x32xf32>
    %69 = arith.addf %57, %68 : vector<8x8x32xf32>
    %70 = vector.extract_strided_slice %50 {offsets = [1, 0, 0], sizes = [8, 8, 32], strides = [1, 1, 1]} : vector<10x8x32xf32> to vector<8x8x32xf32>
    %71 = vector.shape_cast %64 : vector<32xf32> to vector<1x1x32xf32>
    %72 = vector.broadcast %71 : vector<1x1x32xf32> to vector<8x8x32xf32>
    %73 = arith.mulf %70, %72 : vector<8x8x32xf32>
    %74 = arith.addf %62, %73 : vector<8x8x32xf32>
    %75 = vector.extract_strided_slice %0 {offsets = [2, 1, 0], sizes = [1, 1, 32], strides = [1, 1, 1]} : vector<3x3x32xf32> to vector<1x1x32xf32>
    %76 = vector.shape_cast %75 : vector<1x1x32xf32> to vector<32xf32>
    %77 = vector.extract_strided_slice %47 {offsets = [2, 0, 0], sizes = [8, 8, 32], strides = [1, 1, 1]} : vector<10x8x32xf32> to vector<8x8x32xf32>
    %78 = vector.shape_cast %76 : vector<32xf32> to vector<1x1x32xf32>
    %79 = vector.broadcast %78 : vector<1x1x32xf32> to vector<8x8x32xf32>
    %80 = arith.mulf %77, %79 : vector<8x8x32xf32>
    %81 = arith.addf %69, %80 : vector<8x8x32xf32>
    %82 = vector.extract_strided_slice %50 {offsets = [2, 0, 0], sizes = [8, 8, 32], strides = [1, 1, 1]} : vector<10x8x32xf32> to vector<8x8x32xf32>
    %83 = vector.shape_cast %76 : vector<32xf32> to vector<1x1x32xf32>
    %84 = vector.broadcast %83 : vector<1x1x32xf32> to vector<8x8x32xf32>
    %85 = arith.mulf %82, %84 : vector<8x8x32xf32>
    %86 = arith.addf %74, %85 : vector<8x8x32xf32>
    %c0_18 = arith.constant 0 : index
    %c0_19 = arith.constant 0 : index
    %c2 = arith.constant 2 : index
    %c0_20 = arith.constant 0 : index
    %87 = vector.load %arg2[%c0_18, %c0_19, %c2, %c0_20] : memref<1x10x10x32xbf16, #tpu.memory_space<vmem>>, vector<1x10x8x32xbf16>
    %88 = vector.shape_cast %87 : vector<1x10x8x32xbf16> to vector<10x8x32xbf16>
    %89 = arith.extf %88 : vector<10x8x32xbf16> to vector<10x8x32xf32>
    %c0_21 = arith.constant 0 : index
    %c0_22 = arith.constant 0 : index
    %c2_23 = arith.constant 2 : index
    %c0_24 = arith.constant 0 : index
    %90 = vector.load %arg3[%c0_21, %c0_22, %c2_23, %c0_24] : memref<1x10x10x32xbf16, #tpu.memory_space<vmem>>, vector<1x10x8x32xbf16>
    %91 = vector.shape_cast %90 : vector<1x10x8x32xbf16> to vector<10x8x32xbf16>
    %92 = arith.extf %91 : vector<10x8x32xbf16> to vector<10x8x32xf32>
    %93 = vector.extract_strided_slice %0 {offsets = [0, 2, 0], sizes = [1, 1, 32], strides = [1, 1, 1]} : vector<3x3x32xf32> to vector<1x1x32xf32>
    %94 = vector.shape_cast %93 : vector<1x1x32xf32> to vector<32xf32>
    %95 = vector.extract_strided_slice %89 {offsets = [0, 0, 0], sizes = [8, 8, 32], strides = [1, 1, 1]} : vector<10x8x32xf32> to vector<8x8x32xf32>
    %96 = vector.shape_cast %94 : vector<32xf32> to vector<1x1x32xf32>
    %97 = vector.broadcast %96 : vector<1x1x32xf32> to vector<8x8x32xf32>
    %98 = arith.mulf %95, %97 : vector<8x8x32xf32>
    %99 = arith.addf %81, %98 : vector<8x8x32xf32>
    %100 = vector.extract_strided_slice %92 {offsets = [0, 0, 0], sizes = [8, 8, 32], strides = [1, 1, 1]} : vector<10x8x32xf32> to vector<8x8x32xf32>
    %101 = vector.shape_cast %94 : vector<32xf32> to vector<1x1x32xf32>
    %102 = vector.broadcast %101 : vector<1x1x32xf32> to vector<8x8x32xf32>
    %103 = arith.mulf %100, %102 : vector<8x8x32xf32>
    %104 = arith.addf %86, %103 : vector<8x8x32xf32>
    %105 = vector.extract_strided_slice %0 {offsets = [1, 2, 0], sizes = [1, 1, 32], strides = [1, 1, 1]} : vector<3x3x32xf32> to vector<1x1x32xf32>
    %106 = vector.shape_cast %105 : vector<1x1x32xf32> to vector<32xf32>
    %107 = vector.extract_strided_slice %89 {offsets = [1, 0, 0], sizes = [8, 8, 32], strides = [1, 1, 1]} : vector<10x8x32xf32> to vector<8x8x32xf32>
    %108 = vector.shape_cast %106 : vector<32xf32> to vector<1x1x32xf32>
    %109 = vector.broadcast %108 : vector<1x1x32xf32> to vector<8x8x32xf32>
    %110 = arith.mulf %107, %109 : vector<8x8x32xf32>
    %111 = arith.addf %99, %110 : vector<8x8x32xf32>
    %112 = vector.extract_strided_slice %92 {offsets = [1, 0, 0], sizes = [8, 8, 32], strides = [1, 1, 1]} : vector<10x8x32xf32> to vector<8x8x32xf32>
    %113 = vector.shape_cast %106 : vector<32xf32> to vector<1x1x32xf32>
    %114 = vector.broadcast %113 : vector<1x1x32xf32> to vector<8x8x32xf32>
    %115 = arith.mulf %112, %114 : vector<8x8x32xf32>
    %116 = arith.addf %104, %115 : vector<8x8x32xf32>
    %117 = vector.extract_strided_slice %0 {offsets = [2, 2, 0], sizes = [1, 1, 32], strides = [1, 1, 1]} : vector<3x3x32xf32> to vector<1x1x32xf32>
    %118 = vector.shape_cast %117 : vector<1x1x32xf32> to vector<32xf32>
    %119 = vector.extract_strided_slice %89 {offsets = [2, 0, 0], sizes = [8, 8, 32], strides = [1, 1, 1]} : vector<10x8x32xf32> to vector<8x8x32xf32>
    %120 = vector.shape_cast %118 : vector<32xf32> to vector<1x1x32xf32>
    %121 = vector.broadcast %120 : vector<1x1x32xf32> to vector<8x8x32xf32>
    %122 = arith.mulf %119, %121 : vector<8x8x32xf32>
    %123 = arith.addf %111, %122 : vector<8x8x32xf32>
    %124 = vector.extract_strided_slice %92 {offsets = [2, 0, 0], sizes = [8, 8, 32], strides = [1, 1, 1]} : vector<10x8x32xf32> to vector<8x8x32xf32>
    %125 = vector.shape_cast %118 : vector<32xf32> to vector<1x1x32xf32>
    %126 = vector.broadcast %125 : vector<1x1x32xf32> to vector<8x8x32xf32>
    %127 = arith.mulf %124, %126 : vector<8x8x32xf32>
    %128 = arith.addf %116, %127 : vector<8x8x32xf32>
    %c0_25 = arith.constant 0 : index
    %c0_26 = arith.constant 0 : index
    %129 = vector.load %arg5[%c0_25, %c0_26] : memref<1x32xf32, #tpu.memory_space<vmem>>, vector<1x32xf32>
    %130 = vector.shape_cast %129 : vector<1x32xf32> to vector<32xf32>
    %131 = vector.shape_cast %130 : vector<32xf32> to vector<1x1x32xf32>
    %132 = vector.broadcast %131 : vector<1x1x32xf32> to vector<8x8x32xf32>
    %133 = arith.addf %123, %132 : vector<8x8x32xf32>
    %134 = vector.shape_cast %130 : vector<32xf32> to vector<1x1x32xf32>
    %135 = vector.broadcast %134 : vector<1x1x32xf32> to vector<8x8x32xf32>
    %136 = arith.addf %128, %135 : vector<8x8x32xf32>
    %137 = arith.negf %133 : vector<8x8x32xf32>
    %138 = math.exp %137 : vector<8x8x32xf32>
    %cst_27 = arith.constant 1.000000e+00 : f32
    %139 = vector.broadcast %cst_27 : f32 to vector<8x8x32xf32>
    %140 = arith.addf %139, %138 : vector<8x8x32xf32>
    %141 = arith.divf %139, %140 : vector<8x8x32xf32>
    %142 = arith.mulf %133, %141 : vector<8x8x32xf32>
    %143 = arith.negf %136 : vector<8x8x32xf32>
    %144 = math.exp %143 : vector<8x8x32xf32>
    %cst_28 = arith.constant 1.000000e+00 : f32
    %145 = vector.broadcast %cst_28 : f32 to vector<8x8x32xf32>
    %146 = arith.addf %145, %144 : vector<8x8x32xf32>
    %147 = arith.divf %145, %146 : vector<8x8x32xf32>
    %148 = arith.mulf %136, %147 : vector<8x8x32xf32>
    %149 = arith.mulf %142, %148 : vector<8x8x32xf32>
    %150 = arith.addf %149, %142 : vector<8x8x32xf32>
    %151 = arith.addf %150, %148 : vector<8x8x32xf32>
    %152 = arith.truncf %151 : vector<8x8x32xf32> to vector<8x8x32xbf16>
    %c0_29 = arith.constant 0 : index
    %c0_30 = arith.constant 0 : index
    %c0_31 = arith.constant 0 : index
    %c0_32 = arith.constant 0 : index
    %153 = vector.load %arg6[%c0_29, %c0_30, %c0_31, %c0_32] : memref<1x8x8x32xbf16, #tpu.memory_space<vmem>>, vector<1x8x8x32xbf16>
    %154 = vector.shape_cast %153 : vector<1x8x8x32xbf16> to vector<8x8x32xbf16>
    %155 = vector.shape_cast %152 : vector<8x8x32xbf16> to vector<1x8x8x32xbf16>
    tpu.vector_store %arg6[%c0_29, %c0_30, %c0_31, %c0_32], %155 {strides = array<i32>} : memref<1x8x8x32xbf16, #tpu.memory_space<vmem>>, vector<1x8x8x32xbf16>,
    return
  }
  func.func @transform_0(%arg0: i32, %arg1: i32) -> (i32, i32, i32, i32) {
    %c0_i32 = arith.constant 0 : i32
    %c0_i32_0 = arith.constant 0 : i32
    %c0_i32_1 = arith.constant 0 : i32
    return %arg0, %c0_i32, %c0_i32_0, %arg1 : i32, i32, i32, i32
  }
  func.func @transform_1(%arg0: i32, %arg1: i32) -> (i32, i32, i32, i32) {
    %c0_i32 = arith.constant 0 : i32
    %c0_i32_0 = arith.constant 0 : i32
    %c0_i32_1 = arith.constant 0 : i32
    return %arg0, %c0_i32, %c0_i32_0, %arg1 : i32, i32, i32, i32
  }
  func.func @transform_2(%arg0: i32, %arg1: i32) -> (i32, i32, i32) {
    %c0_i32 = arith.constant 0 : i32
    %c0_i32_0 = arith.constant 0 : i32
    %c0_i32_1 = arith.constant 0 : i32
    return %c0_i32, %c0_i32_0, %arg1 : i32, i32, i32
  }
  func.func @transform_3(%arg0: i32, %arg1: i32) -> (i32, i32) {
    %c0_i32 = arith.constant 0 : i32
    %c0_i32_0 = arith.constant 0 : i32
    return %c0_i32, %arg1 : i32, i32
  }
  func.func @transform_4(%arg0: i32, %arg1: i32) -> (i32, i32, i32, i32) {
    %c0_i32 = arith.constant 0 : i32
    %c0_i32_0 = arith.constant 0 : i32
    %c0_i32_1 = arith.constant 0 : i32
    return %arg0, %c0_i32, %c0_i32_0, %arg1 : i32, i32, i32, i32
  }
}

module attributes {stable_mosaic.version = 11 : i64} {
  func.func @_in_proj_kernel(%arg0: i32, %arg1: memref<128x16xbf16, #tpu.memory_space<vmem>>, %arg2: memref<128x16xbf16, #tpu.memory_space<vmem>>, %arg3: memref<16x32xbf16, #tpu.memory_space<vmem>>, %arg4: memref<16x32xbf16, #tpu.memory_space<vmem>>, %arg5: memref<16x32xbf16, #tpu.memory_space<vmem>>, %arg6: memref<128x32xbf16, #tpu.memory_space<vmem>>, %arg7: memref<128x32xbf16, #tpu.memory_space<vmem>>, %arg8: memref<128x32xbf16, #tpu.memory_space<vmem>>) attributes {dimension_semantics = [#tpu.dimension_semantics<parallel>], iteration_bounds = array<i64: 1>, scalar_prefetch = 0 : i64, scratch_operands = 0 : i64, tpu.core_type = #tpu.core_type<tc>, window_params = [{transform_indices = @transform_0, window_bounds = array<i64: 128, 16>}, {transform_indices = @transform_1, window_bounds = array<i64: 128, 16>}, {pipeline_mode = #tpu.pipeline_mode<synchronous>, transform_indices = @transform_2, window_bounds = array<i64: 16, 32>}, {pipeline_mode = #tpu.pipeline_mode<synchronous>, transform_indices = @transform_3, window_bounds = array<i64: 16, 32>}, {pipeline_mode = #tpu.pipeline_mode<synchronous>, transform_indices = @transform_4, window_bounds = array<i64: 16, 32>}, {transform_indices = @transform_5, window_bounds = array<i64: 128, 32>}, {transform_indices = @transform_6, window_bounds = array<i64: 128, 32>}, {transform_indices = @transform_7, window_bounds = array<i64: 128, 32>}]} {
    %c0 = arith.constant 0 : index
    %c0_0 = arith.constant 0 : index
    %0 = vector.load %arg1[%c0, %c0_0] : memref<128x16xbf16, #tpu.memory_space<vmem>>, vector<128x16xbf16>
    %c0_1 = arith.constant 0 : index
    %c0_2 = arith.constant 0 : index
    %1 = vector.load %arg2[%c0_1, %c0_2] : memref<128x16xbf16, #tpu.memory_space<vmem>>, vector<128x16xbf16>
    %c0_3 = arith.constant 0 : index
    %c0_4 = arith.constant 0 : index
    %2 = vector.load %arg3[%c0_3, %c0_4] : memref<16x32xbf16, #tpu.memory_space<vmem>>, vector<16x32xbf16>
    %cst = arith.constant dense<0.000000e+00> : vector<128x32xf32>
    %3 = tpu.matmul %0, %2, %cst {dimension_numbers = #tpu.dot_dimension_numbers<[1], [0], [0], [1], [0, 0, 1, 1], [], []>} : vector<128x16xbf16>, vector<16x32xbf16>, vector<128x32xf32> -> vector<128x32xf32>
    %4 = arith.truncf %3 : vector<128x32xf32> to vector<128x32xbf16>
    %c0_5 = arith.constant 0 : index
    %c0_6 = arith.constant 0 : index
    %5 = vector.load %arg6[%c0_5, %c0_6] : memref<128x32xbf16, #tpu.memory_space<vmem>>, vector<128x32xbf16>
    tpu.vector_store %arg6[%c0_5, %c0_6], %4 {strides = array<i32>} : memref<128x32xbf16, #tpu.memory_space<vmem>>, vector<128x32xbf16>,
    %c0_7 = arith.constant 0 : index
    %c0_8 = arith.constant 0 : index
    %6 = vector.load %arg4[%c0_7, %c0_8] : memref<16x32xbf16, #tpu.memory_space<vmem>>, vector<16x32xbf16>
    %cst_9 = arith.constant dense<0.000000e+00> : vector<128x32xf32>
    %7 = tpu.matmul %0, %6, %cst_9 {dimension_numbers = #tpu.dot_dimension_numbers<[1], [0], [0], [1], [0, 0, 1, 1], [], []>} : vector<128x16xbf16>, vector<16x32xbf16>, vector<128x32xf32> -> vector<128x32xf32>
    %8 = arith.truncf %7 : vector<128x32xf32> to vector<128x32xbf16>
    %c0_10 = arith.constant 0 : index
    %c0_11 = arith.constant 0 : index
    %9 = vector.load %arg7[%c0_10, %c0_11] : memref<128x32xbf16, #tpu.memory_space<vmem>>, vector<128x32xbf16>
    tpu.vector_store %arg7[%c0_10, %c0_11], %8 {strides = array<i32>} : memref<128x32xbf16, #tpu.memory_space<vmem>>, vector<128x32xbf16>,
    %c0_12 = arith.constant 0 : index
    %c0_13 = arith.constant 0 : index
    %10 = vector.load %arg5[%c0_12, %c0_13] : memref<16x32xbf16, #tpu.memory_space<vmem>>, vector<16x32xbf16>
    %cst_14 = arith.constant dense<0.000000e+00> : vector<128x32xf32>
    %11 = tpu.matmul %1, %10, %cst_14 {dimension_numbers = #tpu.dot_dimension_numbers<[1], [0], [0], [1], [0, 0, 1, 1], [], []>} : vector<128x16xbf16>, vector<16x32xbf16>, vector<128x32xf32> -> vector<128x32xf32>
    %12 = arith.truncf %11 : vector<128x32xf32> to vector<128x32xbf16>
    %c0_15 = arith.constant 0 : index
    %c0_16 = arith.constant 0 : index
    %13 = vector.load %arg8[%c0_15, %c0_16] : memref<128x32xbf16, #tpu.memory_space<vmem>>, vector<128x32xbf16>
    tpu.vector_store %arg8[%c0_15, %c0_16], %12 {strides = array<i32>} : memref<128x32xbf16, #tpu.memory_space<vmem>>, vector<128x32xbf16>,
    return
  }
  func.func @transform_0(%arg0: i32) -> (i32, i32) {
    %c0_i32 = arith.constant 0 : i32
    %c0_i32_0 = arith.constant 0 : i32
    return %arg0, %c0_i32 : i32, i32
  }
  func.func @transform_1(%arg0: i32) -> (i32, i32) {
    %c0_i32 = arith.constant 0 : i32
    %c0_i32_0 = arith.constant 0 : i32
    return %arg0, %c0_i32 : i32, i32
  }
  func.func @transform_2(%arg0: i32) -> (i32, i32) {
    %c0_i32 = arith.constant 0 : i32
    %c0_i32_0 = arith.constant 0 : i32
    %c0_i32_1 = arith.constant 0 : i32
    return %c0_i32, %c0_i32_0 : i32, i32
  }
  func.func @transform_3(%arg0: i32) -> (i32, i32) {
    %c0_i32 = arith.constant 0 : i32
    %c0_i32_0 = arith.constant 0 : i32
    %c0_i32_1 = arith.constant 0 : i32
    return %c0_i32, %c0_i32_0 : i32, i32
  }
  func.func @transform_4(%arg0: i32) -> (i32, i32) {
    %c0_i32 = arith.constant 0 : i32
    %c0_i32_0 = arith.constant 0 : i32
    %c0_i32_1 = arith.constant 0 : i32
    return %c0_i32, %c0_i32_0 : i32, i32
  }
  func.func @transform_5(%arg0: i32) -> (i32, i32) {
    %c0_i32 = arith.constant 0 : i32
    %c0_i32_0 = arith.constant 0 : i32
    return %arg0, %c0_i32 : i32, i32
  }
  func.func @transform_6(%arg0: i32) -> (i32, i32) {
    %c0_i32 = arith.constant 0 : i32
    %c0_i32_0 = arith.constant 0 : i32
    return %arg0, %c0_i32 : i32, i32
  }
  func.func @transform_7(%arg0: i32) -> (i32, i32) {
    %c0_i32 = arith.constant 0 : i32
    %c0_i32_0 = arith.constant 0 : i32
    return %arg0, %c0_i32 : i32, i32
  }
}

module attributes {stable_mosaic.version = 11 : i64} {
  func.func @_xproj_kernel(%arg0: i32, %arg1: i32, %arg2: memref<1x32x32xbf16, #tpu.memory_space<vmem>>, %arg3: memref<1x32x32xbf16, #tpu.memory_space<vmem>>, %arg4: memref<1x32x16xbf16, #tpu.memory_space<vmem>>, %arg5: memref<1x32x16xbf16, #tpu.memory_space<vmem>>, %arg6: memref<1x32x32xbf16, #tpu.memory_space<vmem>>, %arg7: memref<1x32x16xbf16, #tpu.memory_space<vmem>>, %arg8: memref<1x32x16xbf16, #tpu.memory_space<vmem>>) attributes {dimension_semantics = [#tpu.dimension_semantics<parallel>, #tpu.dimension_semantics<parallel>], iteration_bounds = array<i64: 4, 1>, scalar_prefetch = 0 : i64, scratch_operands = 0 : i64, tpu.core_type = #tpu.core_type<tc>, window_params = [{transform_indices = @transform_0, window_bounds = array<i64: 1, 32, 32>}, {transform_indices = @transform_1, window_bounds = array<i64: 1, 32, 32>}, {transform_indices = @transform_2, window_bounds = array<i64: 1, 32, 16>}, {transform_indices = @transform_3, window_bounds = array<i64: 1, 32, 16>}, {transform_indices = @transform_4, window_bounds = array<i64: 1, 32, 32>}, {transform_indices = @transform_5, window_bounds = array<i64: 1, 32, 16>}, {transform_indices = @transform_6, window_bounds = array<i64: 1, 32, 16>}]} {
    %c0 = arith.constant 0 : index
    %c0_0 = arith.constant 0 : index
    %c0_1 = arith.constant 0 : index
    %0 = vector.load %arg2[%c0, %c0_0, %c0_1] : memref<1x32x32xbf16, #tpu.memory_space<vmem>>, vector<1x32x32xbf16>
    %1 = vector.shape_cast %0 : vector<1x32x32xbf16> to vector<32x32xbf16>
    %c0_2 = arith.constant 0 : index
    %c0_3 = arith.constant 0 : index
    %c0_4 = arith.constant 0 : index
    %2 = vector.load %arg3[%c0_2, %c0_3, %c0_4] : memref<1x32x32xbf16, #tpu.memory_space<vmem>>, vector<1x32x32xbf16>
    %3 = vector.shape_cast %2 : vector<1x32x32xbf16> to vector<32x32xbf16>
    %cst = arith.constant dense<0.000000e+00> : vector<32x32xf32>
    %4 = tpu.matmul %1, %3, %cst {dimension_numbers = #tpu.dot_dimension_numbers<[1], [0], [0], [1], [0, 0, 1, 1], [], []>} : vector<32x32xbf16>, vector<32x32xbf16>, vector<32x32xf32> -> vector<32x32xf32>
    %5 = arith.truncf %4 : vector<32x32xf32> to vector<32x32xbf16>
    %c0_5 = arith.constant 0 : index
    %c0_6 = arith.constant 0 : index
    %c0_7 = arith.constant 0 : index
    %6 = vector.load %arg6[%c0_5, %c0_6, %c0_7] : memref<1x32x32xbf16, #tpu.memory_space<vmem>>, vector<1x32x32xbf16>
    %7 = vector.shape_cast %6 : vector<1x32x32xbf16> to vector<32x32xbf16>
    %8 = vector.shape_cast %5 : vector<32x32xbf16> to vector<1x32x32xbf16>
    tpu.vector_store %arg6[%c0_5, %c0_6, %c0_7], %8 {strides = array<i32>} : memref<1x32x32xbf16, #tpu.memory_space<vmem>>, vector<1x32x32xbf16>,
    %c0_8 = arith.constant 0 : index
    %c0_9 = arith.constant 0 : index
    %c0_10 = arith.constant 0 : index
    %9 = vector.load %arg4[%c0_8, %c0_9, %c0_10] : memref<1x32x16xbf16, #tpu.memory_space<vmem>>, vector<1x32x16xbf16>
    %10 = vector.shape_cast %9 : vector<1x32x16xbf16> to vector<32x16xbf16>
    %cst_11 = arith.constant dense<0.000000e+00> : vector<32x16xf32>
    %11 = tpu.matmul %1, %10, %cst_11 {dimension_numbers = #tpu.dot_dimension_numbers<[1], [0], [0], [1], [0, 0, 1, 1], [], []>} : vector<32x32xbf16>, vector<32x16xbf16>, vector<32x16xf32> -> vector<32x16xf32>
    %12 = arith.truncf %11 : vector<32x16xf32> to vector<32x16xbf16>
    %c0_12 = arith.constant 0 : index
    %c0_13 = arith.constant 0 : index
    %c0_14 = arith.constant 0 : index
    %13 = vector.load %arg7[%c0_12, %c0_13, %c0_14] : memref<1x32x16xbf16, #tpu.memory_space<vmem>>, vector<1x32x16xbf16>
    %14 = vector.shape_cast %13 : vector<1x32x16xbf16> to vector<32x16xbf16>
    %15 = vector.shape_cast %12 : vector<32x16xbf16> to vector<1x32x16xbf16>
    tpu.vector_store %arg7[%c0_12, %c0_13, %c0_14], %15 {strides = array<i32>} : memref<1x32x16xbf16, #tpu.memory_space<vmem>>, vector<1x32x16xbf16>,
    %c0_15 = arith.constant 0 : index
    %c0_16 = arith.constant 0 : index
    %c0_17 = arith.constant 0 : index
    %16 = vector.load %arg5[%c0_15, %c0_16, %c0_17] : memref<1x32x16xbf16, #tpu.memory_space<vmem>>, vector<1x32x16xbf16>
    %17 = vector.shape_cast %16 : vector<1x32x16xbf16> to vector<32x16xbf16>
    %cst_18 = arith.constant dense<0.000000e+00> : vector<32x16xf32>
    %18 = tpu.matmul %1, %17, %cst_18 {dimension_numbers = #tpu.dot_dimension_numbers<[1], [0], [0], [1], [0, 0, 1, 1], [], []>} : vector<32x32xbf16>, vector<32x16xbf16>, vector<32x16xf32> -> vector<32x16xf32>
    %19 = arith.truncf %18 : vector<32x16xf32> to vector<32x16xbf16>
    %c0_19 = arith.constant 0 : index
    %c0_20 = arith.constant 0 : index
    %c0_21 = arith.constant 0 : index
    %20 = vector.load %arg8[%c0_19, %c0_20, %c0_21] : memref<1x32x16xbf16, #tpu.memory_space<vmem>>, vector<1x32x16xbf16>
    %21 = vector.shape_cast %20 : vector<1x32x16xbf16> to vector<32x16xbf16>
    %22 = vector.shape_cast %19 : vector<32x16xbf16> to vector<1x32x16xbf16>
    tpu.vector_store %arg8[%c0_19, %c0_20, %c0_21], %22 {strides = array<i32>} : memref<1x32x16xbf16, #tpu.memory_space<vmem>>, vector<1x32x16xbf16>,
    return
  }
  func.func @transform_0(%arg0: i32, %arg1: i32) -> (i32, i32, i32) {
    %c0_i32 = arith.constant 0 : i32
    %c0_i32_0 = arith.constant 0 : i32
    return %arg0, %arg1, %c0_i32 : i32, i32, i32
  }
  func.func @transform_1(%arg0: i32, %arg1: i32) -> (i32, i32, i32) {
    %c0_i32 = arith.constant 0 : i32
    %c0_i32_0 = arith.constant 0 : i32
    %c0_i32_1 = arith.constant 0 : i32
    return %arg0, %c0_i32, %c0_i32_0 : i32, i32, i32
  }
  func.func @transform_2(%arg0: i32, %arg1: i32) -> (i32, i32, i32) {
    %c0_i32 = arith.constant 0 : i32
    %c0_i32_0 = arith.constant 0 : i32
    %c0_i32_1 = arith.constant 0 : i32
    return %arg0, %c0_i32, %c0_i32_0 : i32, i32, i32
  }
  func.func @transform_3(%arg0: i32, %arg1: i32) -> (i32, i32, i32) {
    %c0_i32 = arith.constant 0 : i32
    %c0_i32_0 = arith.constant 0 : i32
    %c0_i32_1 = arith.constant 0 : i32
    return %arg0, %c0_i32, %c0_i32_0 : i32, i32, i32
  }
  func.func @transform_4(%arg0: i32, %arg1: i32) -> (i32, i32, i32) {
    %c0_i32 = arith.constant 0 : i32
    %c0_i32_0 = arith.constant 0 : i32
    return %arg0, %arg1, %c0_i32 : i32, i32, i32
  }
  func.func @transform_5(%arg0: i32, %arg1: i32) -> (i32, i32, i32) {
    %c0_i32 = arith.constant 0 : i32
    %c0_i32_0 = arith.constant 0 : i32
    return %arg0, %arg1, %c0_i32 : i32, i32, i32
  }
  func.func @transform_6(%arg0: i32, %arg1: i32) -> (i32, i32, i32) {
    %c0_i32 = arith.constant 0 : i32
    %c0_i32_0 = arith.constant 0 : i32
    return %arg0, %arg1, %c0_i32 : i32, i32, i32
  }
}

module attributes {stable_mosaic.version = 11 : i64} {
  func.func @_scan_kernel(%arg0: i32, %arg1: i32, %arg2: i32, %arg3: memref<1x16x32xbf16, #tpu.memory_space<vmem>>, %arg4: memref<1x16x32xbf16, #tpu.memory_space<vmem>>, %arg5: memref<1x16x16xbf16, #tpu.memory_space<vmem>>, %arg6: memref<1x16x16xbf16, #tpu.memory_space<vmem>>, %arg7: memref<1x256x32xf32, #tpu.memory_space<vmem>>, %arg8: memref<1x1x32xf32, #tpu.memory_space<vmem>>, %arg9: memref<1x1x32xf32, #tpu.memory_space<vmem>>, %arg10: memref<256x16xf32, #tpu.memory_space<vmem>>, %arg11: memref<256x16xf32, #tpu.memory_space<vmem>>, %arg12: memref<1x16x32xbf16, #tpu.memory_space<vmem>>, %arg13: memref<16x32xf32, #tpu.memory_space<vmem>>) attributes {dimension_semantics = [#tpu.dimension_semantics<parallel>, #tpu.dimension_semantics<parallel>, #tpu.dimension_semantics<arbitrary>], iteration_bounds = array<i64: 2, 4, 1>, scalar_prefetch = 0 : i64, scratch_operands = 1 : i64, tpu.core_type = #tpu.core_type<tc>, window_params = [{transform_indices = @transform_0, window_bounds = array<i64: 1, 16, 32>}, {transform_indices = @transform_1, window_bounds = array<i64: 1, 16, 32>}, {transform_indices = @transform_2, window_bounds = array<i64: 1, 16, 16>}, {transform_indices = @transform_3, window_bounds = array<i64: 1, 16, 16>}, {transform_indices = @transform_4, window_bounds = array<i64: 1, 256, 32>}, {transform_indices = @transform_5, window_bounds = array<i64: 1, 1, 32>}, {transform_indices = @transform_6, window_bounds = array<i64: 1, 1, 32>}, {pipeline_mode = #tpu.pipeline_mode<synchronous>, transform_indices = @transform_7, window_bounds = array<i64: 256, 16>}, {pipeline_mode = #tpu.pipeline_mode<synchronous>, transform_indices = @transform_8, window_bounds = array<i64: 256, 16>}, {transform_indices = @transform_9, window_bounds = array<i64: 1, 16, 32>}]} {
    %c0_i32 = arith.constant 0 : i32
    %0 = arith.cmpi eq, %arg2, %c0_i32 : i32
    %1 = arith.extui %0 : i1 to i32
    %c0_i32_0 = arith.constant 0 : i32
    %2 = arith.cmpi ne, %1, %c0_i32_0 : i32
    scf.if %2 {
      %cst_52 = arith.constant 0.000000e+00 : f32
      %190 = vector.broadcast %cst_52 : f32 to vector<16x32xf32>
      %c0_53 = arith.constant 0 : index
      %c0_54 = arith.constant 0 : index
      %191 = vector.load %arg13[%c0_53, %c0_54] : memref<16x32xf32, #tpu.memory_space<vmem>>, vector<16x32xf32>
      tpu.vector_store %arg13[%c0_53, %c0_54], %190 {strides = array<i32>} : memref<16x32xf32, #tpu.memory_space<vmem>>, vector<16x32xf32>,
    } else {
    }
    %c0 = arith.constant 0 : index
    %c0_1 = arith.constant 0 : index
    %3 = vector.load %arg10[%c0, %c0_1] : memref<256x16xf32, #tpu.memory_space<vmem>>, vector<256x16xf32>
    %c0_2 = arith.constant 0 : index
    %c0_3 = arith.constant 0 : index
    %4 = vector.load %arg11[%c0_2, %c0_3] : memref<256x16xf32, #tpu.memory_space<vmem>>, vector<256x16xf32>
    %c0_4 = arith.constant 0 : index
    %c0_5 = arith.constant 0 : index
    %c0_6 = arith.constant 0 : index
    %5 = vector.load %arg7[%c0_4, %c0_5, %c0_6] : memref<1x256x32xf32, #tpu.memory_space<vmem>>, vector<1x256x32xf32>
    %6 = vector.shape_cast %5 : vector<1x256x32xf32> to vector<256x32xf32>
    %c0_7 = arith.constant 0 : index
    %c0_8 = arith.constant 0 : index
    %c0_9 = arith.constant 0 : index
    %7 = vector.load %arg9[%c0_7, %c0_8, %c0_9] : memref<1x1x32xf32, #tpu.memory_space<vmem>>, vector<1x1x32xf32>
    %8 = vector.shape_cast %7 : vector<1x1x32xf32> to vector<1x32xf32>
    %c0_10 = arith.constant 0 : index
    %c0_11 = arith.constant 0 : index
    %c0_12 = arith.constant 0 : index
    %9 = vector.load %arg8[%c0_10, %c0_11, %c0_12] : memref<1x1x32xf32, #tpu.memory_space<vmem>>, vector<1x1x32xf32>
    %10 = vector.shape_cast %9 : vector<1x1x32xf32> to vector<1x32xf32>
    %cst = arith.constant 1.000000e+00 : f32
    %11 = vector.broadcast %cst : f32 to vector<16x32xf32>
    %c0_13 = arith.constant 0 : index
    %c0_14 = arith.constant 0 : index
    %12 = vector.load %arg13[%c0_13, %c0_14] : memref<16x32xf32, #tpu.memory_space<vmem>>, vector<16x32xf32>
    %c0_i32_15 = arith.constant 0 : i32
    %c16_i32 = arith.constant 16 : i32
    %13 = arith.muli %c0_i32_15, %c16_i32 : i32
    %14 = tpu.assume_multiple %13, 16 : i32
    %c0_16 = arith.constant 0 : index
    %15 = arith.index_cast %14 : i32 to index
    %c0_17 = arith.constant 0 : index
    %16 = vector.load %arg3[%c0_16, %15, %c0_17] : memref<1x16x32xbf16, #tpu.memory_space<vmem>>, vector<1x16x32xbf16>
    %17 = vector.shape_cast %16 : vector<1x16x32xbf16> to vector<16x32xbf16>
    %18 = arith.extf %17 : vector<16x32xbf16> to vector<16x32xf32>
    %c0_18 = arith.constant 0 : index
    %19 = arith.index_cast %14 : i32 to index
    %c0_19 = arith.constant 0 : index
    %20 = vector.load %arg4[%c0_18, %19, %c0_19] : memref<1x16x32xbf16, #tpu.memory_space<vmem>>, vector<1x16x32xbf16>
    %21 = vector.shape_cast %20 : vector<1x16x32xbf16> to vector<16x32xbf16>
    %22 = arith.extf %21 : vector<16x32xbf16> to vector<16x32xf32>
    %c0_20 = arith.constant 0 : index
    %23 = arith.index_cast %14 : i32 to index
    %c0_21 = arith.constant 0 : index
    %24 = vector.load %arg5[%c0_20, %23, %c0_21] : memref<1x16x16xbf16, #tpu.memory_space<vmem>>, vector<1x16x16xbf16>
    %25 = vector.shape_cast %24 : vector<1x16x16xbf16> to vector<16x16xbf16>
    %26 = arith.extf %25 : vector<16x16xbf16> to vector<16x16xf32>
    %c0_22 = arith.constant 0 : index
    %27 = arith.index_cast %14 : i32 to index
    %c0_23 = arith.constant 0 : index
    %28 = vector.load %arg6[%c0_22, %27, %c0_23] : memref<1x16x16xbf16, #tpu.memory_space<vmem>>, vector<1x16x16xbf16>
    %29 = vector.shape_cast %28 : vector<1x16x16xbf16> to vector<16x16xbf16>
    %30 = arith.extf %29 : vector<16x16xbf16> to vector<16x16xf32>
    %31 = vector.broadcast %8 : vector<1x32xf32> to vector<16x32xf32>
    %32 = arith.addf %22, %31 : vector<16x32xf32>
    %cst_24 = arith.constant 2.000000e+01 : f32
    %33 = vector.broadcast %cst_24 : f32 to vector<16x32xf32>
    %34 = arith.cmpf ogt, %32, %33 : vector<16x32xf32>
    %cst_25 = arith.constant 2.000000e+01 : f32
    %35 = vector.broadcast %cst_25 : f32 to vector<16x32xf32>
    %36 = arith.minimumf %32, %35 : vector<16x32xf32>
    %37 = math.exp %36 : vector<16x32xf32>
    %38 = math.log1p %37 : vector<16x32xf32>
    %39 = arith.select %34, %32, %38 : vector<16x32xi1>, vector<16x32xf32>
    %40 = arith.mulf %39, %18 : vector<16x32xf32>
    %cst_26 = arith.constant dense<0.000000e+00> : vector<256x32xf32>
    %41 = tpu.matmul %3, %39, %cst_26 {dimension_numbers = #tpu.dot_dimension_numbers<[1], [0], [0], [1], [0, 0, 1, 1], [], []>} : vector<256x16xf32>, vector<16x32xf32>, vector<256x32xf32> -> vector<256x32xf32>
    %cst_27 = arith.constant dense<0.000000e+00> : vector<256x32xf32>
    %42 = tpu.matmul %3, %40, %cst_27 {dimension_numbers = #tpu.dot_dimension_numbers<[1], [0], [0], [1], [0, 0, 1, 1], [], []>} : vector<256x16xf32>, vector<16x32xf32>, vector<256x32xf32> -> vector<256x32xf32>
    %43 = arith.mulf %41, %6 : vector<256x32xf32>
    %44 = math.exp %43 : vector<256x32xf32>
    %cst_28 = arith.constant dense<0.000000e+00> : vector<256x16xf32>
    %45 = tpu.matmul %3, %26, %cst_28 {dimension_numbers = #tpu.dot_dimension_numbers<[1], [0], [0], [1], [0, 0, 1, 1], [], []>} : vector<256x16xf32>, vector<16x16xf32>, vector<256x16xf32> -> vector<256x16xf32>
    %46 = arith.mulf %45, %4 : vector<256x16xf32>
    %cst_29 = arith.constant dense<0.000000e+00> : vector<256x16xf32>
    %47 = tpu.matmul %3, %30, %cst_29 {dimension_numbers = #tpu.dot_dimension_numbers<[1], [0], [0], [1], [0, 0, 1, 1], [], []>} : vector<256x16xf32>, vector<16x16xf32>, vector<256x16xf32> -> vector<256x16xf32>
    %48 = arith.mulf %47, %4 : vector<256x16xf32>
    %cst_30 = arith.constant dense<0.000000e+00> : vector<256x32xf32>
    %49 = tpu.matmul %46, %11, %cst_30 {dimension_numbers = #tpu.dot_dimension_numbers<[1], [0], [0], [1], [0, 0, 1, 1], [], []>} : vector<256x16xf32>, vector<16x32xf32>, vector<256x32xf32> -> vector<256x32xf32>
    %50 = arith.mulf %49, %42 : vector<256x32xf32>
    %cst_31 = arith.constant dense<0.000000e+00> : vector<256x32xf32>
    %51 = tpu.matmul %48, %11, %cst_31 {dimension_numbers = #tpu.dot_dimension_numbers<[1], [0], [0], [1], [0, 0, 1, 1], [], []>} : vector<256x16xf32>, vector<16x32xf32>, vector<256x32xf32> -> vector<256x32xf32>
    %52 = vector.extract_strided_slice %44 {offsets = [0, 0], sizes = [16, 32], strides = [1, 1]} : vector<256x32xf32> to vector<16x32xf32>
    %53 = arith.mulf %52, %12 : vector<16x32xf32>
    %54 = vector.extract_strided_slice %50 {offsets = [0, 0], sizes = [16, 32], strides = [1, 1]} : vector<256x32xf32> to vector<16x32xf32>
    %55 = arith.addf %53, %54 : vector<16x32xf32>
    %56 = vector.extract_strided_slice %51 {offsets = [0, 0], sizes = [16, 32], strides = [1, 1]} : vector<256x32xf32> to vector<16x32xf32>
    %57 = arith.mulf %56, %55 : vector<16x32xf32>
    %cst_32 = arith.constant dense<0.000000e+00> : vector<32xf32>
    %58 = vector.multi_reduction <add>, %57, %cst_32 [0] : vector<16x32xf32> to vector<32xf32>
    %59 = vector.shape_cast %58 : vector<32xf32> to vector<1x32xf32>
    %60 = vector.extract_strided_slice %44 {offsets = [16, 0], sizes = [16, 32], strides = [1, 1]} : vector<256x32xf32> to vector<16x32xf32>
    %61 = arith.mulf %60, %55 : vector<16x32xf32>
    %62 = vector.extract_strided_slice %50 {offsets = [16, 0], sizes = [16, 32], strides = [1, 1]} : vector<256x32xf32> to vector<16x32xf32>
    %63 = arith.addf %61, %62 : vector<16x32xf32>
    %64 = vector.extract_strided_slice %51 {offsets = [16, 0], sizes = [16, 32], strides = [1, 1]} : vector<256x32xf32> to vector<16x32xf32>
    %65 = arith.mulf %64, %63 : vector<16x32xf32>
    %cst_33 = arith.constant dense<0.000000e+00> : vector<32xf32>
    %66 = vector.multi_reduction <add>, %65, %cst_33 [0] : vector<16x32xf32> to vector<32xf32>
    %67 = vector.shape_cast %66 : vector<32xf32> to vector<1x32xf32>
    %68 = vector.extract_strided_slice %44 {offsets = [32, 0], sizes = [16, 32], strides = [1, 1]} : vector<256x32xf32> to vector<16x32xf32>
    %69 = arith.mulf %68, %63 : vector<16x32xf32>
    %70 = vector.extract_strided_slice %50 {offsets = [32, 0], sizes = [16, 32], strides = [1, 1]} : vector<256x32xf32> to vector<16x32xf32>
    %71 = arith.addf %69, %70 : vector<16x32xf32>
    %72 = vector.extract_strided_slice %51 {offsets = [32, 0], sizes = [16, 32], strides = [1, 1]} : vector<256x32xf32> to vector<16x32xf32>
    %73 = arith.mulf %72, %71 : vector<16x32xf32>
    %cst_34 = arith.constant dense<0.000000e+00> : vector<32xf32>
    %74 = vector.multi_reduction <add>, %73, %cst_34 [0] : vector<16x32xf32> to vector<32xf32>
    %75 = vector.shape_cast %74 : vector<32xf32> to vector<1x32xf32>
    %76 = vector.extract_strided_slice %44 {offsets = [48, 0], sizes = [16, 32], strides = [1, 1]} : vector<256x32xf32> to vector<16x32xf32>
    %77 = arith.mulf %76, %71 : vector<16x32xf32>
    %78 = vector.extract_strided_slice %50 {offsets = [48, 0], sizes = [16, 32], strides = [1, 1]} : vector<256x32xf32> to vector<16x32xf32>
    %79 = arith.addf %77, %78 : vector<16x32xf32>
    %80 = vector.extract_strided_slice %51 {offsets = [48, 0], sizes = [16, 32], strides = [1, 1]} : vector<256x32xf32> to vector<16x32xf32>
    %81 = arith.mulf %80, %79 : vector<16x32xf32>
    %cst_35 = arith.constant dense<0.000000e+00> : vector<32xf32>
    %82 = vector.multi_reduction <add>, %81, %cst_35 [0] : vector<16x32xf32> to vector<32xf32>
    %83 = vector.shape_cast %82 : vector<32xf32> to vector<1x32xf32>
    %84 = vector.extract_strided_slice %44 {offsets = [64, 0], sizes = [16, 32], strides = [1, 1]} : vector<256x32xf32> to vector<16x32xf32>
    %85 = arith.mulf %84, %79 : vector<16x32xf32>
    %86 = vector.extract_strided_slice %50 {offsets = [64, 0], sizes = [16, 32], strides = [1, 1]} : vector<256x32xf32> to vector<16x32xf32>
    %87 = arith.addf %85, %86 : vector<16x32xf32>
    %88 = vector.extract_strided_slice %51 {offsets = [64, 0], sizes = [16, 32], strides = [1, 1]} : vector<256x32xf32> to vector<16x32xf32>
    %89 = arith.mulf %88, %87 : vector<16x32xf32>
    %cst_36 = arith.constant dense<0.000000e+00> : vector<32xf32>
    %90 = vector.multi_reduction <add>, %89, %cst_36 [0] : vector<16x32xf32> to vector<32xf32>
    %91 = vector.shape_cast %90 : vector<32xf32> to vector<1x32xf32>
    %92 = vector.extract_strided_slice %44 {offsets = [80, 0], sizes = [16, 32], strides = [1, 1]} : vector<256x32xf32> to vector<16x32xf32>
    %93 = arith.mulf %92, %87 : vector<16x32xf32>
    %94 = vector.extract_strided_slice %50 {offsets = [80, 0], sizes = [16, 32], strides = [1, 1]} : vector<256x32xf32> to vector<16x32xf32>
    %95 = arith.addf %93, %94 : vector<16x32xf32>
    %96 = vector.extract_strided_slice %51 {offsets = [80, 0], sizes = [16, 32], strides = [1, 1]} : vector<256x32xf32> to vector<16x32xf32>
    %97 = arith.mulf %96, %95 : vector<16x32xf32>
    %cst_37 = arith.constant dense<0.000000e+00> : vector<32xf32>
    %98 = vector.multi_reduction <add>, %97, %cst_37 [0] : vector<16x32xf32> to vector<32xf32>
    %99 = vector.shape_cast %98 : vector<32xf32> to vector<1x32xf32>
    %100 = vector.extract_strided_slice %44 {offsets = [96, 0], sizes = [16, 32], strides = [1, 1]} : vector<256x32xf32> to vector<16x32xf32>
    %101 = arith.mulf %100, %95 : vector<16x32xf32>
    %102 = vector.extract_strided_slice %50 {offsets = [96, 0], sizes = [16, 32], strides = [1, 1]} : vector<256x32xf32> to vector<16x32xf32>
    %103 = arith.addf %101, %102 : vector<16x32xf32>
    %104 = vector.extract_strided_slice %51 {offsets = [96, 0], sizes = [16, 32], strides = [1, 1]} : vector<256x32xf32> to vector<16x32xf32>
    %105 = arith.mulf %104, %103 : vector<16x32xf32>
    %cst_38 = arith.constant dense<0.000000e+00> : vector<32xf32>
    %106 = vector.multi_reduction <add>, %105, %cst_38 [0] : vector<16x32xf32> to vector<32xf32>
    %107 = vector.shape_cast %106 : vector<32xf32> to vector<1x32xf32>
    %108 = vector.extract_strided_slice %44 {offsets = [112, 0], sizes = [16, 32], strides = [1, 1]} : vector<256x32xf32> to vector<16x32xf32>
    %109 = arith.mulf %108, %103 : vector<16x32xf32>
    %110 = vector.extract_strided_slice %50 {offsets = [112, 0], sizes = [16, 32], strides = [1, 1]} : vector<256x32xf32> to vector<16x32xf32>
    %111 = arith.addf %109, %110 : vector<16x32xf32>
    %112 = vector.extract_strided_slice %51 {offsets = [112, 0], sizes = [16, 32], strides = [1, 1]} : vector<256x32xf32> to vector<16x32xf32>
    %113 = arith.mulf %112, %111 : vector<16x32xf32>
    %cst_39 = arith.constant dense<0.000000e+00> : vector<32xf32>
    %114 = vector.multi_reduction <add>, %113, %cst_39 [0] : vector<16x32xf32> to vector<32xf32>
    %115 = vector.shape_cast %114 : vector<32xf32> to vector<1x32xf32>
    %116 = vector.extract_strided_slice %44 {offsets = [128, 0], sizes = [16, 32], strides = [1, 1]} : vector<256x32xf32> to vector<16x32xf32>
    %117 = arith.mulf %116, %111 : vector<16x32xf32>
    %118 = vector.extract_strided_slice %50 {offsets = [128, 0], sizes = [16, 32], strides = [1, 1]} : vector<256x32xf32> to vector<16x32xf32>
    %119 = arith.addf %117, %118 : vector<16x32xf32>
    %120 = vector.extract_strided_slice %51 {offsets = [128, 0], sizes = [16, 32], strides = [1, 1]} : vector<256x32xf32> to vector<16x32xf32>
    %121 = arith.mulf %120, %119 : vector<16x32xf32>
    %cst_40 = arith.constant dense<0.000000e+00> : vector<32xf32>
    %122 = vector.multi_reduction <add>, %121, %cst_40 [0] : vector<16x32xf32> to vector<32xf32>
    %123 = vector.shape_cast %122 : vector<32xf32> to vector<1x32xf32>
    %124 = vector.extract_strided_slice %44 {offsets = [144, 0], sizes = [16, 32], strides = [1, 1]} : vector<256x32xf32> to vector<16x32xf32>
    %125 = arith.mulf %124, %119 : vector<16x32xf32>
    %126 = vector.extract_strided_slice %50 {offsets = [144, 0], sizes = [16, 32], strides = [1, 1]} : vector<256x32xf32> to vector<16x32xf32>
    %127 = arith.addf %125, %126 : vector<16x32xf32>
    %128 = vector.extract_strided_slice %51 {offsets = [144, 0], sizes = [16, 32], strides = [1, 1]} : vector<256x32xf32> to vector<16x32xf32>
    %129 = arith.mulf %128, %127 : vector<16x32xf32>
    %cst_41 = arith.constant dense<0.000000e+00> : vector<32xf32>
    %130 = vector.multi_reduction <add>, %129, %cst_41 [0] : vector<16x32xf32> to vector<32xf32>
    %131 = vector.shape_cast %130 : vector<32xf32> to vector<1x32xf32>
    %132 = vector.extract_strided_slice %44 {offsets = [160, 0], sizes = [16, 32], strides = [1, 1]} : vector<256x32xf32> to vector<16x32xf32>
    %133 = arith.mulf %132, %127 : vector<16x32xf32>
    %134 = vector.extract_strided_slice %50 {offsets = [160, 0], sizes = [16, 32], strides = [1, 1]} : vector<256x32xf32> to vector<16x32xf32>
    %135 = arith.addf %133, %134 : vector<16x32xf32>
    %136 = vector.extract_strided_slice %51 {offsets = [160, 0], sizes = [16, 32], strides = [1, 1]} : vector<256x32xf32> to vector<16x32xf32>
    %137 = arith.mulf %136, %135 : vector<16x32xf32>
    %cst_42 = arith.constant dense<0.000000e+00> : vector<32xf32>
    %138 = vector.multi_reduction <add>, %137, %cst_42 [0] : vector<16x32xf32> to vector<32xf32>
    %139 = vector.shape_cast %138 : vector<32xf32> to vector<1x32xf32>
    %140 = vector.extract_strided_slice %44 {offsets = [176, 0], sizes = [16, 32], strides = [1, 1]} : vector<256x32xf32> to vector<16x32xf32>
    %141 = arith.mulf %140, %135 : vector<16x32xf32>
    %142 = vector.extract_strided_slice %50 {offsets = [176, 0], sizes = [16, 32], strides = [1, 1]} : vector<256x32xf32> to vector<16x32xf32>
    %143 = arith.addf %141, %142 : vector<16x32xf32>
    %144 = vector.extract_strided_slice %51 {offsets = [176, 0], sizes = [16, 32], strides = [1, 1]} : vector<256x32xf32> to vector<16x32xf32>
    %145 = arith.mulf %144, %143 : vector<16x32xf32>
    %cst_43 = arith.constant dense<0.000000e+00> : vector<32xf32>
    %146 = vector.multi_reduction <add>, %145, %cst_43 [0] : vector<16x32xf32> to vector<32xf32>
    %147 = vector.shape_cast %146 : vector<32xf32> to vector<1x32xf32>
    %148 = vector.extract_strided_slice %44 {offsets = [192, 0], sizes = [16, 32], strides = [1, 1]} : vector<256x32xf32> to vector<16x32xf32>
    %149 = arith.mulf %148, %143 : vector<16x32xf32>
    %150 = vector.extract_strided_slice %50 {offsets = [192, 0], sizes = [16, 32], strides = [1, 1]} : vector<256x32xf32> to vector<16x32xf32>
    %151 = arith.addf %149, %150 : vector<16x32xf32>
    %152 = vector.extract_strided_slice %51 {offsets = [192, 0], sizes = [16, 32], strides = [1, 1]} : vector<256x32xf32> to vector<16x32xf32>
    %153 = arith.mulf %152, %151 : vector<16x32xf32>
    %cst_44 = arith.constant dense<0.000000e+00> : vector<32xf32>
    %154 = vector.multi_reduction <add>, %153, %cst_44 [0] : vector<16x32xf32> to vector<32xf32>
    %155 = vector.shape_cast %154 : vector<32xf32> to vector<1x32xf32>
    %156 = vector.extract_strided_slice %44 {offsets = [208, 0], sizes = [16, 32], strides = [1, 1]} : vector<256x32xf32> to vector<16x32xf32>
    %157 = arith.mulf %156, %151 : vector<16x32xf32>
    %158 = vector.extract_strided_slice %50 {offsets = [208, 0], sizes = [16, 32], strides = [1, 1]} : vector<256x32xf32> to vector<16x32xf32>
    %159 = arith.addf %157, %158 : vector<16x32xf32>
    %160 = vector.extract_strided_slice %51 {offsets = [208, 0], sizes = [16, 32], strides = [1, 1]} : vector<256x32xf32> to vector<16x32xf32>
    %161 = arith.mulf %160, %159 : vector<16x32xf32>
    %cst_45 = arith.constant dense<0.000000e+00> : vector<32xf32>
    %162 = vector.multi_reduction <add>, %161, %cst_45 [0] : vector<16x32xf32> to vector<32xf32>
    %163 = vector.shape_cast %162 : vector<32xf32> to vector<1x32xf32>
    %164 = vector.extract_strided_slice %44 {offsets = [224, 0], sizes = [16, 32], strides = [1, 1]} : vector<256x32xf32> to vector<16x32xf32>
    %165 = arith.mulf %164, %159 : vector<16x32xf32>
    %166 = vector.extract_strided_slice %50 {offsets = [224, 0], sizes = [16, 32], strides = [1, 1]} : vector<256x32xf32> to vector<16x32xf32>
    %167 = arith.addf %165, %166 : vector<16x32xf32>
    %168 = vector.extract_strided_slice %51 {offsets = [224, 0], sizes = [16, 32], strides = [1, 1]} : vector<256x32xf32> to vector<16x32xf32>
    %169 = arith.mulf %168, %167 : vector<16x32xf32>
    %cst_46 = arith.constant dense<0.000000e+00> : vector<32xf32>
    %170 = vector.multi_reduction <add>, %169, %cst_46 [0] : vector<16x32xf32> to vector<32xf32>
    %171 = vector.shape_cast %170 : vector<32xf32> to vector<1x32xf32>
    %172 = vector.extract_strided_slice %44 {offsets = [240, 0], sizes = [16, 32], strides = [1, 1]} : vector<256x32xf32> to vector<16x32xf32>
    %173 = arith.mulf %172, %167 : vector<16x32xf32>
    %174 = vector.extract_strided_slice %50 {offsets = [240, 0], sizes = [16, 32], strides = [1, 1]} : vector<256x32xf32> to vector<16x32xf32>
    %175 = arith.addf %173, %174 : vector<16x32xf32>
    %176 = vector.extract_strided_slice %51 {offsets = [240, 0], sizes = [16, 32], strides = [1, 1]} : vector<256x32xf32> to vector<16x32xf32>
    %177 = arith.mulf %176, %175 : vector<16x32xf32>
    %cst_47 = arith.constant dense<0.000000e+00> : vector<32xf32>
    %178 = vector.multi_reduction <add>, %177, %cst_47 [0] : vector<16x32xf32> to vector<32xf32>
    %179 = vector.shape_cast %178 : vector<32xf32> to vector<1x32xf32>
    %180 = tpu.concatenate %59, %67, %75, %83, %91, %99, %107, %115, %123, %131, %139, %147, %155, %163, %171, %179 in 0 : vector<1x32xf32>, vector<1x32xf32>, vector<1x32xf32>, vector<1x32xf32>, vector<1x32xf32>, vector<1x32xf32>, vector<1x32xf32>, vector<1x32xf32>, vector<1x32xf32>, vector<1x32xf32>, vector<1x32xf32>, vector<1x32xf32>, vector<1x32xf32>, vector<1x32xf32>, vector<1x32xf32>, vector<1x32xf32> -> vector<16x32xf32>
    %181 = vector.broadcast %10 : vector<1x32xf32> to vector<16x32xf32>
    %182 = arith.mulf %181, %18 : vector<16x32xf32>
    %183 = arith.addf %180, %182 : vector<16x32xf32>
    %184 = arith.truncf %183 : vector<16x32xf32> to vector<16x32xbf16>
    %c0_48 = arith.constant 0 : index
    %185 = arith.index_cast %14 : i32 to index
    %c0_49 = arith.constant 0 : index
    %186 = vector.load %arg12[%c0_48, %185, %c0_49] : memref<1x16x32xbf16, #tpu.memory_space<vmem>>, vector<1x16x32xbf16>
    %187 = vector.shape_cast %186 : vector<1x16x32xbf16> to vector<16x32xbf16>
    %188 = vector.shape_cast %184 : vector<16x32xbf16> to vector<1x16x32xbf16>
    tpu.vector_store %arg12[%c0_48, %185, %c0_49], %188 {strides = array<i32>} : memref<1x16x32xbf16, #tpu.memory_space<vmem>>, vector<1x16x32xbf16>,
    %c1_i32 = arith.constant 1 : i32
    %c0_50 = arith.constant 0 : index
    %c0_51 = arith.constant 0 : index
    %189 = vector.load %arg13[%c0_50, %c0_51] : memref<16x32xf32, #tpu.memory_space<vmem>>, vector<16x32xf32>
    tpu.vector_store %arg13[%c0_50, %c0_51], %175 {strides = array<i32>} : memref<16x32xf32, #tpu.memory_space<vmem>>, vector<16x32xf32>,
    return
  }
  func.func @transform_0(%arg0: i32, %arg1: i32, %arg2: i32) -> (i32, i32, i32) {
    %c1_i32 = arith.constant 1 : i32
    %0 = arith.muli %arg0, %c1_i32 : i32
    %1 = arith.addi %0, %arg2 : i32
    %c0_i32 = arith.constant 0 : i32
    %c0_i32_0 = arith.constant 0 : i32
    return %arg1, %1, %c0_i32 : i32, i32, i32
  }
  func.func @transform_1(%arg0: i32, %arg1: i32, %arg2: i32) -> (i32, i32, i32) {
    %c1_i32 = arith.constant 1 : i32
    %0 = arith.muli %arg0, %c1_i32 : i32
    %1 = arith.addi %0, %arg2 : i32
    %c0_i32 = arith.constant 0 : i32
    %c0_i32_0 = arith.constant 0 : i32
    return %arg1, %1, %c0_i32 : i32, i32, i32
  }
  func.func @transform_2(%arg0: i32, %arg1: i32, %arg2: i32) -> (i32, i32, i32) {
    %c1_i32 = arith.constant 1 : i32
    %0 = arith.muli %arg0, %c1_i32 : i32
    %1 = arith.addi %0, %arg2 : i32
    %c0_i32 = arith.constant 0 : i32
    %c0_i32_0 = arith.constant 0 : i32
    return %arg1, %1, %c0_i32 : i32, i32, i32
  }
  func.func @transform_3(%arg0: i32, %arg1: i32, %arg2: i32) -> (i32, i32, i32) {
    %c1_i32 = arith.constant 1 : i32
    %0 = arith.muli %arg0, %c1_i32 : i32
    %1 = arith.addi %0, %arg2 : i32
    %c0_i32 = arith.constant 0 : i32
    %c0_i32_0 = arith.constant 0 : i32
    return %arg1, %1, %c0_i32 : i32, i32, i32
  }
  func.func @transform_4(%arg0: i32, %arg1: i32, %arg2: i32) -> (i32, i32, i32) {
    %c0_i32 = arith.constant 0 : i32
    %c0_i32_0 = arith.constant 0 : i32
    %c0_i32_1 = arith.constant 0 : i32
    return %arg1, %c0_i32, %c0_i32_0 : i32, i32, i32
  }
  func.func @transform_5(%arg0: i32, %arg1: i32, %arg2: i32) -> (i32, i32, i32) {
    %c0_i32 = arith.constant 0 : i32
    %c0_i32_0 = arith.constant 0 : i32
    %c0_i32_1 = arith.constant 0 : i32
    return %arg1, %c0_i32, %c0_i32_0 : i32, i32, i32
  }
  func.func @transform_6(%arg0: i32, %arg1: i32, %arg2: i32) -> (i32, i32, i32) {
    %c0_i32 = arith.constant 0 : i32
    %c0_i32_0 = arith.constant 0 : i32
    %c0_i32_1 = arith.constant 0 : i32
    return %arg1, %c0_i32, %c0_i32_0 : i32, i32, i32
  }
  func.func @transform_7(%arg0: i32, %arg1: i32, %arg2: i32) -> (i32, i32) {
    %c0_i32 = arith.constant 0 : i32
    %c0_i32_0 = arith.constant 0 : i32
    %c0_i32_1 = arith.constant 0 : i32
    return %c0_i32, %c0_i32_0 : i32, i32
  }
  func.func @transform_8(%arg0: i32, %arg1: i32, %arg2: i32) -> (i32, i32) {
    %c0_i32 = arith.constant 0 : i32
    %c0_i32_0 = arith.constant 0 : i32
    %c0_i32_1 = arith.constant 0 : i32
    return %c0_i32, %c0_i32_0 : i32, i32
  }
  func.func @transform_9(%arg0: i32, %arg1: i32, %arg2: i32) -> (i32, i32, i32) {
    %c1_i32 = arith.constant 1 : i32
    %0 = arith.muli %arg0, %c1_i32 : i32
    %1 = arith.addi %0, %arg2 : i32
    %c0_i32 = arith.constant 0 : i32
    %c0_i32_0 = arith.constant 0 : i32
    return %arg1, %1, %c0_i32 : i32, i32, i32
  }
}

module attributes {stable_mosaic.version = 11 : i64} {
  func.func @_norm_gate_proj_kernel(%arg0: i32, %arg1: memref<128x32xbf16, #tpu.memory_space<vmem>>, %arg2: memref<128x32xbf16, #tpu.memory_space<vmem>>, %arg3: memref<1x32xf32, #tpu.memory_space<vmem>>, %arg4: memref<1x32xf32, #tpu.memory_space<vmem>>, %arg5: memref<32x128xbf16, #tpu.memory_space<vmem>>, %arg6: memref<128x128xf32, #tpu.memory_space<vmem>>) attributes {dimension_semantics = [#tpu.dimension_semantics<parallel>], iteration_bounds = array<i64: 1>, scalar_prefetch = 0 : i64, scratch_operands = 0 : i64, tpu.core_type = #tpu.core_type<tc>, window_params = [{transform_indices = @transform_0, window_bounds = array<i64: 128, 32>}, {transform_indices = @transform_1, window_bounds = array<i64: 128, 32>}, {pipeline_mode = #tpu.pipeline_mode<synchronous>, transform_indices = @transform_2, window_bounds = array<i64: 1, 32>}, {pipeline_mode = #tpu.pipeline_mode<synchronous>, transform_indices = @transform_3, window_bounds = array<i64: 1, 32>}, {pipeline_mode = #tpu.pipeline_mode<synchronous>, transform_indices = @transform_4, window_bounds = array<i64: 32, 128>}, {transform_indices = @transform_5, window_bounds = array<i64: 128, 128>}]} {
    %c0 = arith.constant 0 : index
    %c0_0 = arith.constant 0 : index
    %0 = vector.load %arg1[%c0, %c0_0] : memref<128x32xbf16, #tpu.memory_space<vmem>>, vector<128x32xbf16>
    %1 = arith.extf %0 : vector<128x32xbf16> to vector<128x32xf32>
    %cst = arith.constant dense<0.000000e+00> : vector<128xf32>
    %2 = vector.multi_reduction <add>, %1, %cst [1] : vector<128x32xf32> to vector<128xf32>
    %3 = vector.shape_cast %2 : vector<128xf32> to vector<128x1xf32>
    %cst_1 = arith.constant 3.200000e+01 : f32
    %4 = vector.broadcast %cst_1 : f32 to vector<128x1xf32>
    %5 = arith.divf %3, %4 : vector<128x1xf32>
    %6 = vector.broadcast %5 : vector<128x1xf32> to vector<128x32xf32>
    %7 = arith.subf %1, %6 : vector<128x32xf32>
    %8 = arith.mulf %7, %7 : vector<128x32xf32>
    %cst_2 = arith.constant dense<0.000000e+00> : vector<128xf32>
    %9 = vector.multi_reduction <add>, %8, %cst_2 [1] : vector<128x32xf32> to vector<128xf32>
    %10 = vector.shape_cast %9 : vector<128xf32> to vector<128x1xf32>
    %cst_3 = arith.constant 3.200000e+01 : f32
    %11 = vector.broadcast %cst_3 : f32 to vector<128x1xf32>
    %12 = arith.divf %10, %11 : vector<128x1xf32>
    %13 = vector.broadcast %5 : vector<128x1xf32> to vector<128x32xf32>
    %14 = arith.subf %1, %13 : vector<128x32xf32>
    %cst_4 = arith.constant 9.99999974E-6 : f32
    %15 = vector.broadcast %cst_4 : f32 to vector<128x1xf32>
    %16 = arith.addf %12, %15 : vector<128x1xf32>
    %17 = math.rsqrt %16 : vector<128x1xf32>
    %18 = vector.broadcast %17 : vector<128x1xf32> to vector<128x32xf32>
    %19 = arith.mulf %14, %18 : vector<128x32xf32>
    %c0_5 = arith.constant 0 : index
    %c0_6 = arith.constant 0 : index
    %20 = vector.load %arg3[%c0_5, %c0_6] : memref<1x32xf32, #tpu.memory_space<vmem>>, vector<1x32xf32>
    %21 = vector.broadcast %20 : vector<1x32xf32> to vector<128x32xf32>
    %22 = arith.mulf %19, %21 : vector<128x32xf32>
    %c0_7 = arith.constant 0 : index
    %c0_8 = arith.constant 0 : index
    %23 = vector.load %arg4[%c0_7, %c0_8] : memref<1x32xf32, #tpu.memory_space<vmem>>, vector<1x32xf32>
    %24 = vector.broadcast %23 : vector<1x32xf32> to vector<128x32xf32>
    %25 = arith.addf %22, %24 : vector<128x32xf32>
    %c0_9 = arith.constant 0 : index
    %c0_10 = arith.constant 0 : index
    %26 = vector.load %arg2[%c0_9, %c0_10] : memref<128x32xbf16, #tpu.memory_space<vmem>>, vector<128x32xbf16>
    %27 = arith.extf %26 : vector<128x32xbf16> to vector<128x32xf32>
    %28 = arith.negf %27 : vector<128x32xf32>
    %29 = math.exp %28 : vector<128x32xf32>
    %cst_11 = arith.constant 1.000000e+00 : f32
    %30 = vector.broadcast %cst_11 : f32 to vector<128x32xf32>
    %31 = arith.addf %30, %29 : vector<128x32xf32>
    %32 = arith.divf %30, %31 : vector<128x32xf32>
    %33 = arith.mulf %27, %32 : vector<128x32xf32>
    %34 = arith.negf %33 : vector<128x32xf32>
    %35 = math.exp %34 : vector<128x32xf32>
    %cst_12 = arith.constant 1.000000e+00 : f32
    %36 = vector.broadcast %cst_12 : f32 to vector<128x32xf32>
    %37 = arith.addf %36, %35 : vector<128x32xf32>
    %38 = arith.divf %36, %37 : vector<128x32xf32>
    %39 = arith.mulf %33, %38 : vector<128x32xf32>
    %40 = arith.addf %33, %39 : vector<128x32xf32>
    %41 = arith.mulf %25, %40 : vector<128x32xf32>
    %42 = arith.truncf %41 : vector<128x32xf32> to vector<128x32xbf16>
    %c0_13 = arith.constant 0 : index
    %c0_14 = arith.constant 0 : index
    %43 = vector.load %arg5[%c0_13, %c0_14] : memref<32x128xbf16, #tpu.memory_space<vmem>>, vector<32x128xbf16>
    %cst_15 = arith.constant dense<0.000000e+00> : vector<128x128xf32>
    %44 = tpu.matmul %42, %43, %cst_15 {dimension_numbers = #tpu.dot_dimension_numbers<[1], [0], [0], [1], [0, 0, 1, 1], [], []>} : vector<128x32xbf16>, vector<32x128xbf16>, vector<128x128xf32> -> vector<128x128xf32>
    %c0_16 = arith.constant 0 : index
    %c0_17 = arith.constant 0 : index
    %45 = vector.load %arg6[%c0_16, %c0_17] : memref<128x128xf32, #tpu.memory_space<vmem>>, vector<128x128xf32>
    tpu.vector_store %arg6[%c0_16, %c0_17], %44 {strides = array<i32>} : memref<128x128xf32, #tpu.memory_space<vmem>>, vector<128x128xf32>,
    return
  }
  func.func @transform_0(%arg0: i32) -> (i32, i32) {
    %c0_i32 = arith.constant 0 : i32
    %c0_i32_0 = arith.constant 0 : i32
    return %arg0, %c0_i32 : i32, i32
  }
  func.func @transform_1(%arg0: i32) -> (i32, i32) {
    %c0_i32 = arith.constant 0 : i32
    %c0_i32_0 = arith.constant 0 : i32
    return %arg0, %c0_i32 : i32, i32
  }
  func.func @transform_2(%arg0: i32) -> (i32, i32) {
    %c0_i32 = arith.constant 0 : i32
    %c0_i32_0 = arith.constant 0 : i32
    %c0_i32_1 = arith.constant 0 : i32
    return %c0_i32, %c0_i32_0 : i32, i32
  }
  func.func @transform_3(%arg0: i32) -> (i32, i32) {
    %c0_i32 = arith.constant 0 : i32
    %c0_i32_0 = arith.constant 0 : i32
    %c0_i32_1 = arith.constant 0 : i32
    return %c0_i32, %c0_i32_0 : i32, i32
  }
  func.func @transform_4(%arg0: i32) -> (i32, i32) {
    %c0_i32 = arith.constant 0 : i32
    %c0_i32_0 = arith.constant 0 : i32
    %c0_i32_1 = arith.constant 0 : i32
    return %c0_i32, %c0_i32_0 : i32, i32
  }
  func.func @transform_5(%arg0: i32) -> (i32, i32) {
    %c0_i32 = arith.constant 0 : i32
    %c0_i32_0 = arith.constant 0 : i32
    return %arg0, %c0_i32 : i32, i32
  }
}

</mosaic_0001>

<bundles_post_ra>
// kernel: ss2d_cross_forward.7
= control target key start
LH: loop header
LB: loop body
LE: loop exit
PB: predicated region body
PF: predicated region fallthrough
CT: control target
= control target key end

     0   :  { %s1093_s21 = smov 0   ;;  %s1095_s22 = smov 0   ;;  %s1168_s0 = inlined_call_operand.vmem [shape: bf16[4,32,32], index: 0, kind: input, shape index: {}]   ;;  %s1169_s1 = inlined_call_operand.vmem [shape: bf16[4,32,32], index: 1, kind: input, shape index: {}]   ;;  %s1170_s2 = inlined_call_operand.vmem [shape: bf16[4,32,16], index: 2, kind: input, shape index: {}]   ;;  %s1171_s3 = inlined_call_operand.vmem [shape: bf16[4,32,16], index: 3, kind: input, shape index: {}]   ;;  %s1172_s4 = inlined_call_operand.vmem [shape: bf16[4,32,32], index: 4, kind: output, shape index: {0}]   ;;  %s1173_s5 = inlined_call_operand.vmem [shape: bf16[4,32,16], index: 5, kind: output, shape index: {1}]   ;;  %s1174_s6 = inlined_call_operand.vmem [shape: bf16[4,32,16], index: 6, kind: output, shape index: {2}]  }
   0x1   :  { %s1097_s23 = smov 0  }
   0x2 LB: > { %s29_s24 = sadd.s32 1, %s1052_s22  ;;  %p904_p0 = scmp.ge.s32.totalorder %s1056_s23, 1  ;;  %s1056_s23 = sphi %s1097_s23, %s17_s23   ;;  %s1052_s22 = sphi %s1095_s22, %s1176_s22   ;;  %s1048_s21 = sphi %s1093_s21, %s1175_s21  }
   0x3   : > { %p31_p1 = scmp.ge.s32.totalorder %s29_s24, 4  ;;  %p272_p2 = scmp.lt.s32.totalorder %s1056_s23, 5 }
   0x5   : > { %s1178_s24 = smov (%p31_p1, %s29_s24), 0  ;;  %p273_p3 = pnand %p904_p0, %p272_p2 }
   0x6   : > { %p344_p4 = scmp.lt.s32.totalorder (!%p273_p3), %s1048_s21, 3  ;;  %vm429_vm0 = vcmask (!%p273_p3), 261120   ;;  %vm501_vm1 = vcmask (!%p273_p3), 257024   ;;  %vm587_vm2 = vcmask (!%p273_p3), 125952  }
   0x7   : > { %276 = sbr.rel (%p273_p3) target bundleno = 252 (0xfc), region = 36 }
   0xe   : > { %s1180_s21 = smov (!%p344_p4, %s1048_s21), 3 }
   0xf   : > { %s1111_s25 = sshll.u32 %s1180_s21, 4 }
  0x10   : > { %s357_s28 = scalar_lea.vmem %s1169_s1, %s1111_s25  ;;  %s362_s7 = scalar_lea.vmem %s1170_s2, %s1111_s25 }
  0x11   : > { %v1026_v0 = vld [vmem:[%s357_s28] sm:$0xff]   ;;  %s351_s10 = scalar_lea.vmem %s1168_s0, %s1111_s25  ;;  %v1027_v1 = vld [vmem:[%s357_s28 + $0x8] sm:$0xff]   ;;  %s367_s13 = scalar_lea.vmem %s1171_s3, %s1111_s25 }
  0x12   : > { %978 = vmatprep.subr.bf16.mxu0 %v1026_v0  ;;  %v1028_v2 = vld [vmem:[%s362_s7] sm:$0xff]   ;;  %v1030_v4 = vld [vmem:[%s351_s10 + $0x8] sm:$0xff]   ;;  %s376_s16 = scalar_lea.vmem %s1172_s4, %s1111_s25  ;;  %s386_s19 = scalar_lea.vmem %s1173_s5, %s1111_s25 }
  0x13   : > { %979 = vmatpush3.bf16.msra.mxu0 %v1026_v0  ;;  %v1029_v3 = vld [vmem:[%s351_s10] sm:$0xff]   ;;  %986 = vmatprep.subr.bf16.mxu1 %v1028_v2  ;;  %v1032_v6 = vld [vmem:[%s362_s7 + $0x8] sm:$0xff]   ;;  %s396_s26 = scalar_lea.vmem %s1174_s6, %s1111_s25 }
  0x14   : > { %980 = vmatprep.subr.bf16.mxu0 %v1027_v1  ;;  %982 = vmatprep.mubr.msk.bf16.mxu0 %vm429_vm0, %v1029_v3  ;;  %v1031_v5 = vld [vmem:[%s367_s13] sm:$0xff]   ;;  %v1033_v7 = vld [vmem:[%s367_s13 + $0x8] sm:$0xff]  }
  0x15   : > { %987 = vmatpush3.bf16.msra.mxu1 %v1028_v2  ;;  %990 = vmatprep.mubr.msk.bf16.mxu1 %vm429_vm0, %v1029_v3 }
  0x16   : > { %988 = vmatprep.subr.bf16.mxu1 %v1032_v6 }
  0x17   : > { %981 = vmatpush3.bf16.msra.mxu0 %v1027_v1 }
  0x18   : > { %994 = vmatprep.subr.bf16.mxu0 %v1031_v5 }
  0x19   : > { %989 = vmatpush3.bf16.msra.mxu1 %v1032_v6 }
  0x1a   : > { %983 = vmatmul.mubr.msk.bf16.vlgmr.msra.gmra.mrb[0].mxu0 %vm429_vm0, %v1030_v4 }
  0x1b   : > { %995 = vmatpush3.bf16.msra.mxu0 %v1031_v5  ;;  %998 = vmatprep.mubr.msk.bf16.mxu0 %vm429_vm0, %v1029_v3 }
  0x1c   : > { %996 = vmatprep.subr.bf16.mxu0 %v1033_v7  ;;  %991 = vmatmul.mubr.msk.bf16.vlgmr.msra.gmra.mrb[0].mxu1 %vm429_vm0, %v1030_v4 }
  0x1f   : > { %997 = vmatpush3.bf16.msra.mxu0 %v1033_v7 }
  0x22   : > { %999 = vmatmul.mubr.msk.bf16.vlgmr.msra.gmra.mrb[4].mxu0 %vm429_vm0, %v1030_v4 }
  0xed   : > { %v984_v8 = vpop.f32.mrb[0].mxu0 }
  0xee   : > { %v956_v9 = vpack.c.bf16 %v984_v8, %v984_v8  ;;  %v470_v10 = vpop.f32.mrb[1].mxu0 }
  0xef   : > { %v954_v11 = vpack.c.bf16 %v470_v10, %v470_v10  ;;  %v985_v12 = vpop.f32.mrb[2].mxu0  ;;  %v992_v13 = vpop.f32.mrb[0].mxu1 }
  0xf0   : > { %504 = vst.msk [vmem:[%s376_s16 + $0x8] sm:$0xf] %vm501_vm1, %v956_v9  ;;  %v957_v14 = vpack.c.bf16 %v985_v12, %v985_v12  ;;  %v473_v15 = vpop.f32.mrb[3].mxu0  ;;  %v960_v16 = vpack.c.bf16 %v992_v13, %v992_v13  ;;  %v556_v17 = vpop.f32.mrb[1].mxu1 }
  0xf1   : > { %502 = vst.msk [vmem:[%s376_s16] sm:$0xf] %vm501_vm1, %v954_v11  ;;  %v955_v18 = vpack.c.bf16 %v473_v15, %v473_v15  ;;  %v958_v19 = vpack.c.bf16 %v556_v17, %v556_v17  ;;  %v993_v20 = vpop.f32.mrb[2].mxu1 }
  0xf2   : > { %505 = vst.msk [vmem:[%s376_s16 + $0xc] sm:$0xf] %vm501_vm1, %v957_v14  ;;  %v961_v21 = vpack.c.bf16 %v993_v20, %v993_v20  ;;  %v559_v22 = vpop.f32.mrb[3].mxu1 }
  0xf3   : > { %590 = vst.msk [vmem:[%s386_s19 + $0x8] sm:$0xf] %vm587_vm2, %v960_v16  ;;  %588 = vst.msk [vmem:[%s386_s19] sm:$0xf] %vm587_vm2, %v958_v19  ;;  %v959_v23 = vpack.c.bf16 %v559_v22, %v559_v22 }
  0xf4   : > { %503 = vst.msk [vmem:[%s376_s16 + $0x4] sm:$0xf] %vm501_vm1, %v955_v18 }
  0xf5   : > { %591 = vst.msk [vmem:[%s386_s19 + $0xc] sm:$0xf] %vm587_vm2, %v961_v21  ;;  %v1000_v24 = vpop.f32.mrb[4].mxu0  ;;  %589 = vst.msk [vmem:[%s386_s19 + $0x4] sm:$0xf] %vm587_vm2, %v959_v23 }
  0xf6   : > { %v964_v25 = vpack.c.bf16 %v1000_v24, %v1000_v24  ;;  %v642_v26 = vpop.f32.mrb[5].mxu0 }
  0xf7   : > { %v962_v27 = vpack.c.bf16 %v642_v26, %v642_v26  ;;  %v1001_v28 = vpop.f32.mrb[6].mxu0 }
  0xf8   : > { %675 = vst.msk [vmem:[%s396_s26 + $0x8] sm:$0xf] %vm587_vm2, %v964_v25  ;;  %v965_v29 = vpack.c.bf16 %v1001_v28, %v1001_v28  ;;  %v645_v30 = vpop.f32.mrb[7].mxu0 }
  0xf9   : > { %673 = vst.msk [vmem:[%s396_s26] sm:$0xf] %vm587_vm2, %v962_v27  ;;  %v963_v31 = vpack.c.bf16 %v645_v30, %v645_v30 }
  0xfa   : > { %676 = vst.msk [vmem:[%s396_s26 + $0xc] sm:$0xf] %vm587_vm2, %v965_v29 }
  0xfb   : > { %674 = vst.msk [vmem:[%s396_s26 + $0x4] sm:$0xf] %vm587_vm2, %v963_v31 }
  0xfc PF: > { %s17_s23 = sadd.s32 1, %s1056_s23   ;;  %s1175_s21 = smov %s1052_s22 }
  0xfd   : > { %p14_p5 = scmp.ge.s32.totalorder %s17_s23, 6   ;;  %s1176_s22 = smov %s1178_s24 }
  0xff   :  { %16 = sbr.rel (!%p14_p5) target bundleno = 2 (0x2), region = 99 }

// kernel: ss2d_cross_forward.5
= control target key start
LH: loop header
LB: loop body
LE: loop exit
PB: predicated region body
PF: predicated region fallthrough
CT: control target
= control target key end

     0   :  { %vm104_vm0 = vcmask 130048   ;;  %vm290_vm1 = vcmask 257024   ;;  %s1307_s2 = inlined_call_operand.vmem [shape: bf16[16,32], index: 2, kind: input, shape index: {}]   ;;  %s1308_s0 = inlined_call_operand.vmem [shape: bf16[128,16], index: 0, kind: input, shape index: {}]   ;;  %s1309_s3 = inlined_call_operand.vmem [shape: bf16[16,32], index: 3, kind: input, shape index: {}]   ;;  %s1310_s4 = inlined_call_operand.vmem [shape: bf16[16,32], index: 4, kind: input, shape index: {}]   ;;  %s1311_s1 = inlined_call_operand.vmem [shape: bf16[128,16], index: 1, kind: input, shape index: {}]   ;;  %s1312_s5 = inlined_call_operand.vmem [shape: bf16[128,32], index: 5, kind: output, shape index: {0}]   ;;  %s1313_s6 = inlined_call_operand.vmem [shape: bf16[128,32], index: 6, kind: output, shape index: {1}]   ;;  %s1314_s7 = inlined_call_operand.vmem [shape: bf16[128,32], index: 7, kind: output, shape index: {2}]  }
   0x1   :  { %v975_v0 = vld [vmem:[%s1307_s2] sm:$0xff]   ;;  %v978_v3 = vld [vmem:[%s1308_s0 + $0x8] sm:$0xff]   ;;  %v982_v7 = vld [vmem:[%s1308_s0 + $0x10] sm:$0xff]  }
   0x2   :  { %v976_v1 = vld [vmem:[%s1308_s0] sm:$0xff]   ;;  %919 = vmatprep.subr.bf16.mxu0 %v975_v0  ;;  %973 = vmatprep.subr.bf16.mxu1 %v975_v0  ;;  %v979_v4 = vld [vmem:[%s1308_s0 + $0x28] sm:$0xff]   ;;  %v983_v8 = vld [vmem:[%s1308_s0 + $0x30] sm:$0xff]  }
   0x3   :  { %v977_v2 = vld [vmem:[%s1308_s0 + $0x20] sm:$0xff]   ;;  %920 = vmatpush3.bf16.msra.mxu0 %v975_v0  ;;  %974 = vmatpush3.bf16.msra.mxu1 %v975_v0  ;;  %v984_v9 = vld [vmem:[%s1308_s0 + $0x18] sm:$0xff]   ;;  %v987_v12 = vld [vmem:[%s1311_s1 + $0x8] sm:$0xff]  }
   0x4   :  { %921 = vmatprep.mubr.msk.bf16.mxu0 %vm104_vm0, %v976_v1  ;;  %929 = vmatprep.mubr.msk.bf16.mxu1 %vm104_vm0, %v977_v2  ;;  %v980_v5 = vld [vmem:[%s1309_s3] sm:$0xff]   ;;  %v985_v10 = vld [vmem:[%s1308_s0 + $0x38] sm:$0xff]   ;;  %v988_v13 = vld [vmem:[%s1311_s1 + $0x10] sm:$0xff]  }
   0x5   :  { %v981_v6 = vld [vmem:[%s1310_s4] sm:$0xff]   ;;  %937 = vmatprep.subr.bf16.mxu1 %v980_v5  ;;  %v989_v14 = vld [vmem:[%s1311_s1 + $0x18] sm:$0xff]   ;;  %v991_v16 = vld [vmem:[%s1311_s1 + $0x28] sm:$0xff]  }
   0x6   :  { %922 = vmatmul.mubr.msk.bf16.vlgmr.msra.gmra.mrb[0].mxu0 %vm104_vm0, %v978_v3  ;;  %930 = vmatmul.mubr.msk.bf16.vlgmr.msra.gmra.mrb[0].mxu1 %vm104_vm0, %v979_v4  ;;  %v986_v11 = vld [vmem:[%s1311_s1] sm:$0xff]   ;;  %v992_v17 = vld [vmem:[%s1311_s1 + $0x30] sm:$0xff]   ;;  %v993_v18 = vld [vmem:[%s1311_s1 + $0x38] sm:$0xff]  }
   0x7   :  { %955 = vmatprep.subr.bf16.mxu0 %v981_v6  ;;  %938 = vmatpush3.bf16.msra.mxu1 %v980_v5  ;;  %v990_v15 = vld [vmem:[%s1311_s1 + $0x20] sm:$0xff]  }
   0x8   :  { %956 = vmatpush3.bf16.msra.mxu0 %v981_v6  ;;  %925 = vmatprep.mubr.msk.bf16.mxu0 %vm104_vm0, %v982_v7 }
   0x9   :  { %933 = vmatprep.mubr.msk.bf16.mxu1 %vm104_vm0, %v983_v8 }
   0xe   :  { %926 = vmatmul.mubr.msk.bf16.gmra.mrb[4].mxu0 %vm104_vm0, %v984_v9  ;;  %934 = vmatmul.mubr.msk.bf16.gmra.mrb[4].mxu1 %vm104_vm0, %v985_v10 }
   0xf   :  { %939 = vmatprep.mubr.msk.bf16.mxu1 %vm104_vm0, %v976_v1  ;;  %957 = vmatprep.mubr.msk.bf16.mxu0 %vm104_vm0, %v986_v11 }
  0x16   :  { %940 = vmatmul.mubr.msk.bf16.vlgmr.msra.gmra.mrb[8].mxu1 %vm104_vm0, %v978_v3  ;;  %958 = vmatmul.mubr.msk.bf16.vlgmr.msra.gmra.mrb[8].mxu0 %vm104_vm0, %v987_v12 }
  0x17   :  { %943 = vmatprep.mubr.msk.bf16.mxu1 %vm104_vm0, %v982_v7  ;;  %961 = vmatprep.mubr.msk.bf16.mxu0 %vm104_vm0, %v988_v13 }
  0x1e   :  { %944 = vmatmul.mubr.msk.bf16.gmra.mrb[12].mxu1 %vm104_vm0, %v984_v9  ;;  %962 = vmatmul.mubr.msk.bf16.gmra.mrb[12].mxu0 %vm104_vm0, %v989_v14 }
  0x1f   :  { %947 = vmatprep.mubr.msk.bf16.mxu1 %vm104_vm0, %v977_v2  ;;  %965 = vmatprep.mubr.msk.bf16.mxu0 %vm104_vm0, %v990_v15 }
  0x26   :  { %948 = vmatmul.mubr.msk.bf16.gmra.mrb[16].mxu1 %vm104_vm0, %v979_v4  ;;  %966 = vmatmul.mubr.msk.bf16.gmra.mrb[16].mxu0 %vm104_vm0, %v991_v16 }
  0x27   :  { %951 = vmatprep.mubr.msk.bf16.mxu1 %vm104_vm0, %v983_v8  ;;  %969 = vmatprep.mubr.msk.bf16.mxu0 %vm104_vm0, %v992_v17 }
  0x2e   :  { %952 = vmatmul.mubr.msk.bf16.gmra.mrb[20].mxu1 %vm104_vm0, %v985_v10  ;;  %970 = vmatmul.mubr.msk.bf16.gmra.mrb[20].mxu0 %vm104_vm0, %v993_v18 }
  0xd9   :  { %v923_v19 = vpop.f32.mrb[0].mxu0  ;;  %v931_v20 = vpop.f32.mrb[0].mxu1 }
  0xda   :  { %v846_v21 = vpack.c.bf16 %v923_v19, %v923_v19  ;;  %v854_v22 = vpack.c.bf16 %v931_v20, %v931_v20  ;;  %v163_v23 = vpop.f32.mrb[1].mxu0  ;;  %v195_v24 = vpop.f32.mrb[1].mxu1 }
  0xdb   :  { %v844_v25 = vpack.c.bf16 %v163_v23, %v163_v23  ;;  %v852_v26 = vpack.c.bf16 %v195_v24, %v195_v24  ;;  %v924_v27 = vpop.f32.mrb[2].mxu0  ;;  %v932_v28 = vpop.f32.mrb[2].mxu1 }
  0xdc   :  { %293 = vst.msk [vmem:[%s1312_s5 + $0x8] sm:$0xf] %vm290_vm1, %v846_v21  ;;  %301 = vst.msk [vmem:[%s1312_s5 + $0x28] sm:$0xf] %vm290_vm1, %v854_v22  ;;  %v847_v29 = vpack.c.bf16 %v924_v27, %v924_v27  ;;  %v855_v30 = vpack.c.bf16 %v932_v28, %v932_v28  ;;  %v166_v31 = vpop.f32.mrb[3].mxu0  ;;  %v198_v32 = vpop.f32.mrb[3].mxu1 }
  0xdd   :  { %291 = vst.msk [vmem:[%s1312_s5] sm:$0xf] %vm290_vm1, %v844_v25  ;;  %299 = vst.msk [vmem:[%s1312_s5 + $0x20] sm:$0xf] %vm290_vm1, %v852_v26  ;;  %v845_v33 = vpack.c.bf16 %v166_v31, %v166_v31  ;;  %v853_v34 = vpack.c.bf16 %v198_v32, %v198_v32 }
  0xde   :  { %294 = vst.msk [vmem:[%s1312_s5 + $0xc] sm:$0xf] %vm290_vm1, %v847_v29  ;;  %302 = vst.msk [vmem:[%s1312_s5 + $0x2c] sm:$0xf] %vm290_vm1, %v855_v30 }
  0xdf   :  { %292 = vst.msk [vmem:[%s1312_s5 + $0x4] sm:$0xf] %vm290_vm1, %v845_v33  ;;  %300 = vst.msk [vmem:[%s1312_s5 + $0x24] sm:$0xf] %vm290_vm1, %v853_v34 }
  0xe1   :  { %v927_v35 = vpop.f32.mrb[4].mxu0  ;;  %v935_v36 = vpop.f32.mrb[4].mxu1 }
  0xe2   :  { %v850_v37 = vpack.c.bf16 %v927_v35, %v927_v35  ;;  %v858_v38 = vpack.c.bf16 %v935_v36, %v935_v36  ;;  %v179_v39 = vpop.f32.mrb[5].mxu0  ;;  %v211_v40 = vpop.f32.mrb[5].mxu1 }
  0xe3   :  { %v848_v41 = vpack.c.bf16 %v179_v39, %v179_v39  ;;  %v856_v42 = vpack.c.bf16 %v211_v40, %v211_v40  ;;  %v928_v43 = vpop.f32.mrb[6].mxu0  ;;  %v936_v44 = vpop.f32.mrb[6].mxu1 }
  0xe4   :  { %297 = vst.msk [vmem:[%s1312_s5 + $0x18] sm:$0xf] %vm290_vm1, %v850_v37  ;;  %305 = vst.msk [vmem:[%s1312_s5 + $0x38] sm:$0xf] %vm290_vm1, %v858_v38  ;;  %v851_v45 = vpack.c.bf16 %v928_v43, %v928_v43  ;;  %v859_v46 = vpack.c.bf16 %v936_v44, %v936_v44  ;;  %v182_v47 = vpop.f32.mrb[7].mxu0  ;;  %v214_v48 = vpop.f32.mrb[7].mxu1 }
  0xe5   :  { %295 = vst.msk [vmem:[%s1312_s5 + $0x10] sm:$0xf] %vm290_vm1, %v848_v41  ;;  %303 = vst.msk [vmem:[%s1312_s5 + $0x30] sm:$0xf] %vm290_vm1, %v856_v42  ;;  %v849_v49 = vpack.c.bf16 %v182_v47, %v182_v47  ;;  %v857_v50 = vpack.c.bf16 %v214_v48, %v214_v48 }
  0xe6   :  { %298 = vst.msk [vmem:[%s1312_s5 + $0x1c] sm:$0xf] %vm290_vm1, %v851_v45  ;;  %306 = vst.msk [vmem:[%s1312_s5 + $0x3c] sm:$0xf] %vm290_vm1, %v859_v46 }
  0xe7   :  { %296 = vst.msk [vmem:[%s1312_s5 + $0x14] sm:$0xf] %vm290_vm1, %v849_v49  ;;  %304 = vst.msk [vmem:[%s1312_s5 + $0x34] sm:$0xf] %vm290_vm1, %v857_v50 }
  0xe9   :  { %v941_v51 = vpop.f32.mrb[8].mxu1  ;;  %v959_v52 = vpop.f32.mrb[8].mxu0 }
  0xea   :  { %v862_v53 = vpack.c.bf16 %v941_v51, %v941_v51  ;;  %v878_v54 = vpack.c.bf16 %v959_v52, %v959_v52  ;;  %v349_v55 = vpop.f32.mrb[9].mxu1  ;;  %v598_v56 = vpop.f32.mrb[9].mxu0 }
  0xeb   :  { %v860_v57 = vpack.c.bf16 %v349_v55, %v349_v55  ;;  %v876_v58 = vpack.c.bf16 %v598_v56, %v598_v56  ;;  %v942_v59 = vpop.f32.mrb[10].mxu1  ;;  %v960_v60 = vpop.f32.mrb[10].mxu0 }
  0xec   :  { %478 = vst.msk [vmem:[%s1313_s6 + $0x8] sm:$0xf] %vm290_vm1, %v862_v53  ;;  %727 = vst.msk [vmem:[%s1314_s7 + $0x8] sm:$0xf] %vm290_vm1, %v878_v54  ;;  %v863_v61 = vpack.c.bf16 %v942_v59, %v942_v59  ;;  %v879_v62 = vpack.c.bf16 %v960_v60, %v960_v60  ;;  %v352_v63 = vpop.f32.mrb[11].mxu1  ;;  %v601_v0 = vpop.f32.mrb[11].mxu0 }
  0xed   :  { %476 = vst.msk [vmem:[%s1313_s6] sm:$0xf] %vm290_vm1, %v860_v57  ;;  %725 = vst.msk [vmem:[%s1314_s7] sm:$0xf] %vm290_vm1, %v876_v58  ;;  %v861_v1 = vpack.c.bf16 %v352_v63, %v352_v63  ;;  %v877_v2 = vpack.c.bf16 %v601_v0, %v601_v0 }
  0xee   :  { %479 = vst.msk [vmem:[%s1313_s6 + $0xc] sm:$0xf] %vm290_vm1, %v863_v61  ;;  %728 = vst.msk [vmem:[%s1314_s7 + $0xc] sm:$0xf] %vm290_vm1, %v879_v62 }
  0xef   :  { %477 = vst.msk [vmem:[%s1313_s6 + $0x4] sm:$0xf] %vm290_vm1, %v861_v1  ;;  %726 = vst.msk [vmem:[%s1314_s7 + $0x4] sm:$0xf] %vm290_vm1, %v877_v2 }
  0xf1   :  { %v945_v3 = vpop.f32.mrb[12].mxu1  ;;  %v963_v4 = vpop.f32.mrb[12].mxu0 }
  0xf2   :  { %v866_v5 = vpack.c.bf16 %v945_v3, %v945_v3  ;;  %v882_v6 = vpack.c.bf16 %v963_v4, %v963_v4  ;;  %v365_v7 = vpop.f32.mrb[13].mxu1  ;;  %v614_v8 = vpop.f32.mrb[13].mxu0 }
  0xf3   :  { %v864_v9 = vpack.c.bf16 %v365_v7, %v365_v7  ;;  %v880_v10 = vpack.c.bf16 %v614_v8, %v614_v8  ;;  %v946_v11 = vpop.f32.mrb[14].mxu1  ;;  %v964_v12 = vpop.f32.mrb[14].mxu0 }
  0xf4   :  { %482 = vst.msk [vmem:[%s1313_s6 + $0x18] sm:$0xf] %vm290_vm1, %v866_v5  ;;  %731 = vst.msk [vmem:[%s1314_s7 + $0x18] sm:$0xf] %vm290_vm1, %v882_v6  ;;  %v867_v13 = vpack.c.bf16 %v946_v11, %v946_v11  ;;  %v883_v14 = vpack.c.bf16 %v964_v12, %v964_v12  ;;  %v368_v15 = vpop.f32.mrb[15].mxu1  ;;  %v617_v16 = vpop.f32.mrb[15].mxu0 }
  0xf5   :  { %480 = vst.msk [vmem:[%s1313_s6 + $0x10] sm:$0xf] %vm290_vm1, %v864_v9  ;;  %729 = vst.msk [vmem:[%s1314_s7 + $0x10] sm:$0xf] %vm290_vm1, %v880_v10  ;;  %v865_v17 = vpack.c.bf16 %v368_v15, %v368_v15  ;;  %v881_v18 = vpack.c.bf16 %v617_v16, %v617_v16 }
  0xf6   :  { %483 = vst.msk [vmem:[%s1313_s6 + $0x1c] sm:$0xf] %vm290_vm1, %v867_v13  ;;  %732 = vst.msk [vmem:[%s1314_s7 + $0x1c] sm:$0xf] %vm290_vm1, %v883_v14 }
  0xf7   :  { %481 = vst.msk [vmem:[%s1313_s6 + $0x14] sm:$0xf] %vm290_vm1, %v865_v17  ;;  %730 = vst.msk [vmem:[%s1314_s7 + $0x14] sm:$0xf] %vm290_vm1, %v881_v18 }
  0xf9   :  { %v949_v19 = vpop.f32.mrb[16].mxu1  ;;  %v967_v20 = vpop.f32.mrb[16].mxu0 }
  0xfa   :  { %v870_v21 = vpack.c.bf16 %v949_v19, %v949_v19  ;;  %v886_v22 = vpack.c.bf16 %v967_v20, %v967_v20  ;;  %v381_v23 = vpop.f32.mrb[17].mxu1  ;;  %v630_v24 = vpop.f32.mrb[17].mxu0 }
  0xfb   :  { %v868_v25 = vpack.c.bf16 %v381_v23, %v381_v23  ;;  %v884_v26 = vpack.c.bf16 %v630_v24, %v630_v24  ;;  %v950_v27 = vpop.f32.mrb[18].mxu1  ;;  %v968_v28 = vpop.f32.mrb[18].mxu0 }
  0xfc   :  { %486 = vst.msk [vmem:[%s1313_s6 + $0x28] sm:$0xf] %vm290_vm1, %v870_v21  ;;  %735 = vst.msk [vmem:[%s1314_s7 + $0x28] sm:$0xf] %vm290_vm1, %v886_v22  ;;  %v871_v29 = vpack.c.bf16 %v950_v27, %v950_v27  ;;  %v887_v30 = vpack.c.bf16 %v968_v28, %v968_v28  ;;  %v384_v31 = vpop.f32.mrb[19].mxu1  ;;  %v633_v32 = vpop.f32.mrb[19].mxu0 }
  0xfd   :  { %484 = vst.msk [vmem:[%s1313_s6 + $0x20] sm:$0xf] %vm290_vm1, %v868_v25  ;;  %733 = vst.msk [vmem:[%s1314_s7 + $0x20] sm:$0xf] %vm290_vm1, %v884_v26  ;;  %v869_v33 = vpack.c.bf16 %v384_v31, %v384_v31  ;;  %v885_v34 = vpack.c.bf16 %v633_v32, %v633_v32 }
  0xfe   :  { %487 = vst.msk [vmem:[%s1313_s6 + $0x2c] sm:$0xf] %vm290_vm1, %v871_v29  ;;  %736 = vst.msk [vmem:[%s1314_s7 + $0x2c] sm:$0xf] %vm290_vm1, %v887_v30 }
  0xff   :  { %485 = vst.msk [vmem:[%s1313_s6 + $0x24] sm:$0xf] %vm290_vm1, %v869_v33  ;;  %734 = vst.msk [vmem:[%s1314_s7 + $0x24] sm:$0xf] %vm290_vm1, %v885_v34 }
 0x101   :  { %v953_v35 = vpop.f32.mrb[20].mxu1  ;;  %v971_v36 = vpop.f32.mrb[20].mxu0 }
 0x102   :  { %v874_v37 = vpack.c.bf16 %v953_v35, %v953_v35  ;;  %v890_v38 = vpack.c.bf16 %v971_v36, %v971_v36  ;;  %v397_v39 = vpop.f32.mrb[21].mxu1  ;;  %v646_v40 = vpop.f32.mrb[21].mxu0 }
 0x103   :  { %v872_v41 = vpack.c.bf16 %v397_v39, %v397_v39  ;;  %v888_v42 = vpack.c.bf16 %v646_v40, %v646_v40  ;;  %v954_v43 = vpop.f32.mrb[22].mxu1  ;;  %v972_v44 = vpop.f32.mrb[22].mxu0 }
 0x104   :  { %490 = vst.msk [vmem:[%s1313_s6 + $0x38] sm:$0xf] %vm290_vm1, %v874_v37  ;;  %739 = vst.msk [vmem:[%s1314_s7 + $0x38] sm:$0xf] %vm290_vm1, %v890_v38  ;;  %v875_v45 = vpack.c.bf16 %v954_v43, %v954_v43  ;;  %v891_v46 = vpack.c.bf16 %v972_v44, %v972_v44  ;;  %v400_v47 = vpop.f32.mrb[23].mxu1  ;;  %v649_v48 = vpop.f32.mrb[23].mxu0 }
 0x105   :  { %488 = vst.msk [vmem:[%s1313_s6 + $0x30] sm:$0xf] %vm290_vm1, %v872_v41  ;;  %737 = vst.msk [vmem:[%s1314_s7 + $0x30] sm:$0xf] %vm290_vm1, %v888_v42  ;;  %v873_v49 = vpack.c.bf16 %v400_v47, %v400_v47  ;;  %v889_v50 = vpack.c.bf16 %v649_v48, %v649_v48 }
 0x106   :  { %491 = vst.msk [vmem:[%s1313_s6 + $0x3c] sm:$0xf] %vm290_vm1, %v875_v45  ;;  %740 = vst.msk [vmem:[%s1314_s7 + $0x3c] sm:$0xf] %vm290_vm1, %v891_v46 }
 0x107   :  { %489 = vst.msk [vmem:[%s1313_s6 + $0x34] sm:$0xf] %vm290_vm1, %v873_v49  ;;  %738 = vst.msk [vmem:[%s1314_s7 + $0x34] sm:$0xf] %vm290_vm1, %v889_v50 }

// kernel: ss2d_cross_forward.6
= control target key start
LH: loop header
LB: loop body
LE: loop exit
PB: predicated region body
PF: predicated region fallthrough
CT: control target
= control target key end

     0   :  { %s1887_s15 = smov 0   ;;  %s1889_s16 = smov 0   ;;  %s3129_s0 = inlined_call_operand.vmem [shape: bf16[2,10,10,32], index: 0, kind: input, shape index: {}]   ;;  %s3130_s1 = inlined_call_operand.vmem [shape: bf16[2,10,10,32], index: 1, kind: input, shape index: {}]   ;;  %s3131_s2 = inlined_call_operand.vmem [shape: f32[3,3,32], index: 2, kind: input, shape index: {}]   ;;  %s3132_s3 = inlined_call_operand.vmem [shape: f32[1,32], index: 3, kind: input, shape index: {}]   ;;  %s3133_s4 = inlined_call_operand.vmem [shape: bf16[2,8,8,32], index: 4, kind: output, shape index: {}]  }
   0x1   :  { %s1891_s17 = smov 0  }
   0x2 LB: > { %s26_s18 = sadd.s32 1, %s1856_s16  ;;  %p1723_p0 = scmp.ge.s32.totalorder %s1860_s17, 1  ;;  %s1860_s17 = sphi %s1891_s17, %s14_s17   ;;  %s1856_s16 = sphi %s1889_s16, %s3396_s16   ;;  %s1852_s15 = sphi %s1887_s15, %s3395_s15  }
   0x3   : > { %p28_p1 = scmp.ge.s32.totalorder %s26_s18, 2  ;;  %p213_p2 = scmp.lt.s32.totalorder %s1860_s17, 3 }
   0x5   : > { %s3398_s18 = smov (%p28_p1, %s26_s18), 0  ;;  %p214_p3 = pnand %p1723_p0, %p213_p2 }
   0x7   : > { %217 = sbr.rel (%p214_p3) target bundleno = 261 (0x105), region = 36 }
   0xe   : > { %p260_p4 = scmp.lt.s32.totalorder %s1852_s15, 1  ;;  %v334_v0 = vlaneseq  ;;  %v291_v3 = vld [vmem:[%s3131_s2] sm:$0x7]  ;;  %v292_v5 = vld [vmem:[%s3131_s2 + $0x4] sm:$0x7]  ;;  %vm518_vm0 = vcmask 1046528  }
   0xf   : > { %v293_v6 = vld [vmem:[%s3131_s2 + $0x8] sm:$0x7]  ;;  %vm1003_vm1 = vcmask 1045504   ;;  %vm1579_vm2 = vcmask 257024  }
  0x10   : > { %s3400_s15 = smov (!%p260_p4, %s1852_s15), 1  ;;  %v335_v1 = vshrl.u32 %v334_v0, 7 }
  0x11   : > { %s1748_s19 = smul.u32 80, %s3400_s15  ;;  %s1747_s10 = sshll.u32 %s3400_s15, 5 }
  0x12   : > { %v336_v2 = vsub.s32 0, %v335_v1  ;;  %v484_v4 = vsub.s32 1, %v335_v1  ;;  %v1922_v7 = vsub.s32 2, %v335_v1  ;;  %s3096_s13 = scalar_lea.vmem %s3133_s4, %s1747_s10 }
  0x13   : > { %s1911_s22 = scalar_lea.vmem %s3129_s0, %s1748_s19  ;;  %s1927_s5 = scalar_lea.vmem %s3130_s1, %s1748_s19 }
  0x14   : > { %3215 = vst [vmem:[#allocation2_spill] sm:$0xff] %v1922_v7  ;;  %v1930_v8 = vld [vmem:[%s1911_s22] ss:$8 sps:$4 sm:$0xff]   ;;  %v296_v9 = vld [vmem:[%s1911_s22 + $0x10] ss:$8 sps:$4 sm:$0xff]   ;;  %v337_v11 = vrot.slane %v291_v3, %v336_v2  ;;  %v1938_v14 = vrot.slane %v292_v5, %v336_v2  ;;  %v1940_v15 = vrot.slane %v293_v6, %v336_v2  ;;  %v1942_v16 = vrot.slane %v291_v3, %v484_v4 }
  0x15   : > { %v298_v10 = vld [vmem:[%s1911_s22 + $0x20] ss:$8 sps:$4 sm:$0xff]   ;;  %v300_v12 = vld [vmem:[%s1911_s22 + $0x30] ss:$8 sps:$4 sm:$0xff]   ;;  %v1944_v17 = vrot.slane %v292_v5, %v484_v4  ;;  %v3135_v18 = vunpack.c.l.bf16 %v1930_v8  ;;  %v1951_v21 = vrot.slane %v293_v6, %v484_v4  ;;  %v1954_v22 = vrot.slane %v291_v3, %v1922_v7 }
  0x16   : > { %v1936_v13 = vld [vmem:[%s1911_s22 + $0x40] ss:$8 sps:$4 sm:$0xff]   ;;  %v316_v20 = vld [vmem:[%s1927_s5 + $0x10] ss:$8 sps:$4 sm:$0xff]   ;;  %v1957_v23 = vrot.slane %v292_v5, %v1922_v7  ;;  %v1960_v24 = vunpack.c.h.bf16 %v1930_v8  ;;  %v1962_v25 = vunpack.c.l.bf16 %v296_v9  ;;  %v1964_v26 = vunpack.c.h.bf16 %v296_v9 }
  0x17   : > { %3216 = vst [vmem:[#allocation3_spill] sm:$0xff] %v1936_v13  ;;  %3217 = vst [vmem:[#allocation4_spill] sm:$0xff] %v1944_v17  ;;  %v1948_v19 = vld [vmem:[%s1927_s5] ss:$8 sps:$4 sm:$0xff]   ;;  %v1966_v27 = vunpack.c.l.bf16 %v298_v10  ;;  %v320_v29 = vld [vmem:[%s1927_s5 + $0x30] ss:$8 sps:$4 sm:$0xff]   ;;  %v1970_v30 = vunpack.c.h.bf16 %v298_v10  ;;  %v1972_v31 = vunpack.c.l.bf16 %v300_v12  ;;  %v1974_v32 = vunpack.c.h.bf16 %v300_v12 }
  0x18   : > { %3218 = vst [vmem:[#allocation5_spill] sm:$0xff] %v1951_v21  ;;  %3219 = vst [vmem:[#allocation6_spill] sm:$0xff] %v1954_v22  ;;  %v318_v28 = vld [vmem:[%s1927_s5 + $0x20] ss:$8 sps:$4 sm:$0xff]   ;;  %v1977_v33 = vunpack.c.l.bf16 %v1936_v13  ;;  %v3134_v36 = vunpack.c.l.bf16 %v1948_v19  ;;  %v1985_v37 = vunpack.c.h.bf16 %v1948_v19  ;;  %v1987_v38 = vunpack.c.l.bf16 %v316_v20 }
  0x19   : > { %3220 = vst [vmem:[#allocation7_spill] sm:$0xff] %v1957_v23  ;;  %3221 = vst [vmem:[#allocation8_spill] sm:$0xff] %v1970_v30  ;;  %v1980_v34 = vld [vmem:[%s1927_s5 + $0x40] ss:$8 sps:$4 sm:$0xff]   ;;  %v1989_v39 = vunpack.c.h.bf16 %v316_v20  ;;  %v1991_v40 = vunpack.c.l.bf16 %v318_v28  ;;  %v1993_v41 = vunpack.c.h.bf16 %v318_v28  ;;  %v1995_v42 = vunpack.c.l.bf16 %v320_v29 }
  0x1a   : > { %3222 = vst [vmem:[#allocation9_spill] sm:$0xff] %v1972_v31  ;;  %3223 = vst [vmem:[#allocation10_spill] sm:$0xff] %v1974_v32  ;;  %v1997_v43 = vunpack.c.h.bf16 %v320_v29  ;;  %v2000_v44 = vunpack.c.l.bf16 %v1980_v34  ;;  %v338_v46 = vmul.f32 %v337_v11, %v3135_v18  ;;  %v339_v47 = vmul.f32 %v337_v11, %v1960_v24 }
  0x1b   : > { %3224 = vst [vmem:[#allocation11_spill] sm:$0xff] %v1977_v33  ;;  %3225 = vst [vmem:[#allocation12_spill] sm:$0xff] %v1980_v34  ;;  %v340_v48 = vmul.f32 %v337_v11, %v1962_v25  ;;  %v341_v49 = vmul.f32 %v337_v11, %v1964_v26  ;;  %v342_v50 = vmul.f32 %v337_v11, %v1966_v27 }
  0x1c   : > { %3226 = vst [vmem:[#allocation13_spill] sm:$0xff] %v1993_v41  ;;  %3227 = vst [vmem:[#allocation14_spill] sm:$0xff] %v1995_v42  ;;  %v343_v51 = vmul.f32 %v337_v11, %v1970_v30  ;;  %v344_v52 = vmul.f32 %v337_v11, %v1972_v31  ;;  %v345_v53 = vmul.f32 %v337_v11, %v1974_v32 }
  0x1d   : > { %3228 = vst [vmem:[#allocation15_spill] sm:$0xff] %v1997_v43  ;;  %3229 = vst [vmem:[#allocation16_spill] sm:$0xff] %v2000_v44  ;;  %v354_v54 = vmul.f32 %v337_v11, %v3134_v36  ;;  %v355_v55 = vmul.f32 %v337_v11, %v1985_v37  ;;  %v356_v56 = vmul.f32 %v337_v11, %v1987_v38 }
  0x1e   : > { %v357_v57 = vmul.f32 %v337_v11, %v1989_v39  ;;  %v374_v58 = vmul.f32 %v1938_v14, %v1960_v24  ;;  %v358_v59 = vmul.f32 %v337_v11, %v1991_v40  ;;  %v359_v60 = vmul.f32 %v337_v11, %v1993_v41 }
  0x1f   : > { %v375_v61 = vmul.f32 %v1938_v14, %v1962_v25  ;;  %v376_v62 = vmul.f32 %v1938_v14, %v1964_v26  ;;  %v360_v63 = vmul.f32 %v337_v11, %v1995_v42  ;;  %v361_v0 = vmul.f32 %v337_v11, %v1997_v43 }
  0x20   : > { %v377_v1 = vmul.f32 %v1938_v14, %v1966_v27  ;;  %v378_v2 = vmul.f32 %v1938_v14, %v1970_v30  ;;  %v379_v3 = vmul.f32 %v1938_v14, %v1972_v31  ;;  %v380_v4 = vmul.f32 %v1938_v14, %v1974_v32 }
  0x21   : > { %v381_v5 = vmul.f32 %v1938_v14, %v1977_v33  ;;  %v390_v6 = vmul.f32 %v1938_v14, %v1985_v37  ;;  %v382_v9 = vadd.f32 %v374_v58, %v338_v46  ;;  %v391_v10 = vmul.f32 %v1938_v14, %v1987_v38 }
  0x22   : > { %v392_v11 = vmul.f32 %v1938_v14, %v1989_v39  ;;  %v393_v12 = vmul.f32 %v1938_v14, %v1991_v40  ;;  %v383_v20 = vadd.f32 %v375_v61, %v339_v47  ;;  %v384_v28 = vadd.f32 %v376_v62, %v340_v48 }
  0x23   : > { %v394_v29 = vmul.f32 %v1938_v14, %v1993_v41  ;;  %v395_v36 = vmul.f32 %v1938_v14, %v1995_v42  ;;  %v385_v18 = vadd.f32 %v377_v1, %v341_v49  ;;  %v386_v45 = vadd.f32 %v378_v2, %v342_v50 }
  0x24   : > { %v396_v46 = vmul.f32 %v1938_v14, %v1997_v43  ;;  %v397_v58 = vmul.f32 %v1938_v14, %v2000_v44  ;;  %v387_v35 = vadd.f32 %v379_v3, %v343_v51  ;;  %v388_v7 = vadd.f32 %v380_v4, %v344_v52 }
  0x25   : > { %v389_v23 = vadd.f32 %v381_v5, %v345_v53  ;;  %v398_v22 = vadd.f32 %v390_v6, %v354_v54  ;;  %v399_v47 = vadd.f32 %v391_v10, %v355_v55  ;;  %v400_v48 = vadd.f32 %v392_v11, %v356_v56  ;;  %v2089_v5 = vld [vmem:[%s1911_s22 + $0x4] sm:$0x1] }
  0x26   : > { %v401_v61 = vadd.f32 %v393_v12, %v357_v57  ;;  %v410_v62 = vmul.f32 %v1940_v15, %v1962_v25  ;;  %v402_v21 = vadd.f32 %v394_v29, %v358_v59  ;;  %v403_v17 = vadd.f32 %v395_v36, %v359_v60  ;;  %3231 = vst [vmem:[#allocation17_spill] sm:$0xff] %v2089_v5 }
  0x27   : > { %v411_v49 = vmul.f32 %v1940_v15, %v1964_v26  ;;  %v412_v50 = vmul.f32 %v1940_v15, %v1966_v27  ;;  %v404_v1 = vadd.f32 %v396_v46, %v360_v63  ;;  %v405_v14 = vadd.f32 %v397_v58, %v361_v0  ;;  %v445_v58 = vld [vmem:[%s1911_s22 + $0x1c] sm:$0x1] }
  0x28   : > { %v413_v51 = vmul.f32 %v1940_v15, %v1970_v30  ;;  %v414_v52 = vmul.f32 %v1940_v15, %v1972_v31  ;;  %v415_v53 = vmul.f32 %v1940_v15, %v1974_v32  ;;  %v416_v36 = vmul.f32 %v1940_v15, %v1977_v33 }
  0x29   : > { %v3230_v54 = vunpack.c.h.bf16 %v1936_v13  ;;  %v426_v56 = vmul.f32 %v1940_v15, %v1987_v38  ;;  %v2072_v57 = vadd.f32 %v410_v62, %v382_v9  ;;  %v427_v59 = vmul.f32 %v1940_v15, %v1989_v39  ;;  %v446_v62 = vld [vmem:[%s1911_s22 + $0x24] sm:$0x1]  ;;  %v469_v13 = vld [vmem:[%s1927_s5 + $0x3c] sm:$0x1] }
  0x2a   : > { %v428_v60 = vmul.f32 %v1940_v15, %v1991_v40  ;;  %v429_v63 = vmul.f32 %v1940_v15, %v1993_v41  ;;  %v2080_v0 = vadd.f32 %v411_v49, %v383_v20  ;;  %v2082_v2 = vadd.f32 %v412_v50, %v384_v28  ;;  %v443_v20 = vld [vmem:[%s1911_s22 + $0xc] sm:$0x1]  ;;  %v444_v28 = vld [vmem:[%s1911_s22 + $0x14] sm:$0x1] }
  0x2b   : > { %v417_v55 = vmul.f32 %v1940_v15, %v3230_v54  ;;  %v430_v3 = vmul.f32 %v1940_v15, %v1995_v42  ;;  %v431_v4 = vmul.f32 %v1940_v15, %v1997_v43  ;;  %v2091_v6 = vadd.f32 %v413_v51, %v385_v18  ;;  %v447_v49 = vld [vmem:[%s1911_s22 + $0x2c] sm:$0x1] }
  0x2c   : > { %v2093_v9 = vadd.f32 %v414_v52, %v386_v45  ;;  %v432_v10 = vmul.f32 %v1940_v15, %v2000_v44  ;;  %v3232_v11 = vunpack.c.h.bf16 %v1980_v34  ;;  %v2102_v29 = vadd.f32 %v415_v53, %v387_v35  ;;  %v448_v52 = vld [vmem:[%s1911_s22 + $0x34] sm:$0x1]  ;;  %v449_v35 = vld [vmem:[%s1911_s22 + $0x3c] sm:$0x1]  ;;  %v450_v53 = vld [vmem:[%s1911_s22 + $0x44] sm:$0x1] }
  0x2d   : > { %v2104_v46 = vadd.f32 %v416_v36, %v388_v7  ;;  %v2106_v18 = vadd.f32 %v417_v55, %v389_v23  ;;  %v2108_v45 = vadd.f32 %v426_v56, %v398_v22  ;;  %v2113_v50 = vadd.f32 %v427_v59, %v399_v47  ;;  %v2128_v23 = vld [vmem:[%s1911_s22 + $0x4c] sm:$0x1] }
  0x2e   : > { %v433_v12 = vmul.f32 %v1940_v15, %v3232_v11  ;;  %v2115_v51 = vadd.f32 %v428_v60, %v400_v48  ;;  %v2117_v15 = vadd.f32 %v429_v63, %v401_v61  ;;  %v3141_v7 = vunpack.c.l.bf16 %v2089_v5  ;;  %3238 = vst [vmem:[#allocation23_spill] sm:$0xff] %v2128_v23  ;;  %v2135_v48 = vld [vmem:[%s1927_s5 + $0x4] sm:$0x1]  ;;  %v468_v23 = vld [vmem:[%s1927_s5 + $0x34] sm:$0x1] }
  0x2f   : > { %3233 = vst [vmem:[#allocation18_spill] sm:$0xff] %v2113_v50  ;;  %v2123_v36 = vadd.f32 %v430_v3, %v402_v21  ;;  %v2125_v22 = vadd.f32 %v431_v4, %v403_v17  ;;  %v2130_v54 = vunpack.c.l.bf16 %v443_v20  ;;  %v2132_v47 = vunpack.c.l.bf16 %v444_v28  ;;  %3240 = vst [vmem:[#allocation25_spill] sm:$0xff] %v2135_v48  ;;  %v465_v20 = vld [vmem:[%s1927_s5 + $0x1c] sm:$0x1] }
  0x30   : > { %3234 = vst [vmem:[#allocation19_spill] sm:$0xff] %v2115_v51  ;;  %3235 = vst [vmem:[#allocation20_spill] sm:$0xff] %v2117_v15  ;;  %v2137_v61 = vadd.f32 %v432_v10, %v404_v1  ;;  %v2139_v55 = vadd.f32 %v433_v12, %v405_v14  ;;  %v2141_v56 = vunpack.c.l.bf16 %v445_v58  ;;  %v2143_v21 = vunpack.c.l.bf16 %v446_v62  ;;  %v463_v1 = vld [vmem:[%s1927_s5 + $0xc] sm:$0x1]  ;;  %v464_v14 = vld [vmem:[%s1927_s5 + $0x14] sm:$0x1] }
  0x31   : > { %3236 = vst [vmem:[#allocation21_spill] sm:$0xff] %v2123_v36  ;;  %3237 = vst [vmem:[#allocation22_spill] sm:$0xff] %v2125_v22  ;;  %v2145_v17 = vunpack.c.l.bf16 %v447_v49  ;;  %v2147_v59 = vunpack.c.l.bf16 %v448_v52  ;;  %v2149_v60 = vunpack.c.l.bf16 %v449_v35  ;;  %v2151_v63 = vunpack.c.l.bf16 %v450_v53  ;;  %v2198_v51 = vld [vmem:[%s1927_s5 + $0x4c] sm:$0x1] }
  0x32   : > { %3239 = vst [vmem:[#allocation24_spill] sm:$0xff] %v2130_v54  ;;  %3241 = vst [vmem:[#allocation26_spill] sm:$0xff] %v2137_v61  ;;  %v3248_v10 = vunpack.c.l.bf16 %v1930_v8  ;;  %v487_v12 = vmul.f32 %v1942_v16, %v3141_v7  ;;  %v488_v28 = vmul.f32 %v1942_v16, %v1960_v24  ;;  %v489_v58 = vmul.f32 %v1942_v16, %v2130_v54  ;;  %v467_v7 = vld [vmem:[%s1927_s5 + $0x2c] sm:$0x1] }
  0x33   : > { %3242 = vst [vmem:[#allocation27_spill] sm:$0xff] %v2139_v55  ;;  %3243 = vst [vmem:[#allocation28_spill] sm:$0xff] %v2143_v21  ;;  %v490_v62 = vmul.f32 %v1942_v16, %v1962_v25  ;;  %v491_v8 = vmul.f32 %v1942_v16, %v2132_v47  ;;  %v492_v49 = vmul.f32 %v1942_v16, %v1964_v26  ;;  %v2182_v3 = vunpack.c.l.bf16 %v463_v1 }
  0x34   : > { %3244 = vst [vmem:[#allocation29_spill] sm:$0xff] %v2145_v17  ;;  %3245 = vst [vmem:[#allocation30_spill] sm:$0xff] %v2147_v59  ;;  %v486_v11 = vmul.f32 %v1942_v16, %v3248_v10  ;;  %v493_v52 = vmul.f32 %v1942_v16, %v2141_v56  ;;  %v494_v35 = vmul.f32 %v1942_v16, %v1966_v27  ;;  %v466_v10 = vld [vmem:[%s1927_s5 + $0x24] sm:$0x1]  ;;  %v2184_v4 = vunpack.c.l.bf16 %v464_v14 }
  0x35   : > { %3246 = vst [vmem:[#allocation31_spill] sm:$0xff] %v2149_v60  ;;  %3247 = vst [vmem:[#allocation32_spill] sm:$0xff] %v2151_v63  ;;  %v495_v53 = vmul.f32 %v1942_v16, %v2143_v21  ;;  %v496_v5 = vmul.f32 %v1942_v16, %v1970_v30  ;;  %v497_v34 = vmul.f32 %v1942_v16, %v2145_v17  ;;  %v2192_v44 = vunpack.c.l.bf16 %v465_v20  ;;  %v470_v63 = vld [vmem:[%s1927_s5 + $0x44] sm:$0x1] }
  0x36   : > { %3249 = vst [vmem:[#allocation33_spill] sm:$0xff] %v2182_v3  ;;  %3250 = vst [vmem:[#allocation34_spill] sm:$0xff] %v2184_v4  ;;  %v498_v55 = vmul.f32 %v1942_v16, %v1972_v31  ;;  %v519_v61 = vrot.slane %v486_v11, 1  ;;  %v520_v22 = vrot.slane %v487_v12, 1  ;;  %v522_v1 = vrot.slane %v488_v28, 1 }
  0x37   : > { %3251 = vst [vmem:[#allocation35_spill] sm:$0xff] %v2192_v44  ;;  %v523_v36 = vrot.slane %v489_v58, 1  ;;  %v525_v14 = vrot.slane %v490_v62, 1  ;;  %v526_v15 = vrot.slane %v491_v8, 1  ;;  %3252 = vst [vmem:[#allocation36_spill] sm:$0xff] %v2198_v51  ;;  %v528_v33 = vrot.slane %v492_v49, 1 }
  0x38   : > { %v529_v50 = vrot.slane %v493_v52, 1  ;;  %v531_v30 = vrot.slane %v494_v35, 1  ;;  %v532_v17 = vrot.slane %v495_v53, 1  ;;  %v499_v20 = vmul.f32 %v1942_v16, %v2147_v59 }
  0x39   : > { %v500_v21 = vmul.f32 %v1942_v16, %v1974_v32  ;;  %v534_v31 = vrot.slane %v496_v5, 1  ;;  %v535_v11 = vrot.slane %v497_v34, 1  ;;  %v2204_v12 = vunpack.c.l.bf16 %v466_v10 }
  0x3a   : > { %v2206_v28 = vunpack.c.l.bf16 %v467_v7  ;;  %v2208_v58 = vunpack.c.l.bf16 %v468_v23  ;;  %v501_v62 = vmul.f32 %v1942_v16, %v2149_v60  ;;  %v2212_v8 = vunpack.c.l.bf16 %v469_v13 }
  0x3b   : > { %3253 = vst [vmem:[#allocation37_spill] sm:$0xff] %v2204_v12  ;;  %v2214_v49 = vunpack.c.l.bf16 %v470_v63  ;;  %v521_v35 = vsel %vm518_vm0, %v519_v61, %v520_v22  ;;  %v524_v5 = vsel %vm518_vm0, %v522_v1, %v523_v36  ;;  %v527_v34 = vsel %vm518_vm0, %v525_v14, %v526_v15 }
  0x3c   : > { %3254 = vst [vmem:[#allocation38_spill] sm:$0xff] %v2206_v28  ;;  %3255 = vst [vmem:[#allocation39_spill] sm:$0xff] %v2208_v58  ;;  %v530_v7 = vsel %vm518_vm0, %v528_v33, %v529_v50  ;;  %v533_v23 = vsel %vm518_vm0, %v531_v30, %v532_v17  ;;  %v536_v53 = vsel %vm518_vm0, %v534_v31, %v535_v11  ;;  %v537_v10 = vrot.slane %v498_v55, 1 }
  0x3d   : > { %3256 = vst [vmem:[#allocation40_spill] sm:$0xff] %v2212_v8  ;;  %3257 = vst [vmem:[#allocation41_spill] sm:$0xff] %v2214_v49  ;;  %v538_v60 = vrot.slane %v499_v20, 1  ;;  %v540_v13 = vrot.slane %v500_v21, 1  ;;  %v541_v32 = vrot.slane %v501_v62, 1  ;;  %v2224_v63 = vadd.f32 %v521_v35, %v2072_v57 }
  0x3e   : > { %v3258_v52 = vunpack.c.l.bf16 %v1948_v19  ;;  %v3259_v36 = vunpack.c.l.bf16 %v2135_v48  ;;  %v561_v30 = vmul.f32 %v1942_v16, %v1985_v37  ;;  %v562_v31 = vmul.f32 %v1942_v16, %v2182_v3 }
  0x3f   : > { %v563_v33 = vmul.f32 %v1942_v16, %v1987_v38  ;;  %v564_v57 = vmul.f32 %v1942_v16, %v2184_v4  ;;  %v565_v19 = vmul.f32 %v1942_v16, %v1989_v39  ;;  %v566_v50 = vmul.f32 %v1942_v16, %v2192_v44 }
  0x40   : > { %v559_v22 = vmul.f32 %v1942_v16, %v3258_v52  ;;  %v560_v15 = vmul.f32 %v1942_v16, %v3259_v36  ;;  %v567_v61 = vmul.f32 %v1942_v16, %v1991_v40  ;;  %v568_v55 = vmul.f32 %v1942_v16, %v2204_v12 }
  0x41   : > { %v539_v21 = vsel %vm518_vm0, %v537_v10, %v538_v60  ;;  %v2250_v17 = vadd.f32 %v524_v5, %v2080_v0  ;;  %v569_v1 = vmul.f32 %v1942_v16, %v1993_v41  ;;  %v570_v14 = vmul.f32 %v1942_v16, %v2206_v28 }
  0x42   : > { %v542_v20 = vsel %vm518_vm0, %v540_v13, %v541_v32  ;;  %v571_v11 = vmul.f32 %v1942_v16, %v1995_v42  ;;  %v591_v62 = vrot.slane %v559_v22, 1  ;;  %v592_v52 = vrot.slane %v560_v15, 1 }
  0x43   : > { %3260 = vst [vmem:[#allocation42_spill] sm:$0xff] %v2250_v17  ;;  %v594_v35 = vrot.slane %v561_v30, 1  ;;  %v595_v36 = vrot.slane %v562_v31, 1  ;;  %v597_v48 = vrot.slane %v563_v33, 1  ;;  %v598_v60 = vrot.slane %v564_v57, 1 }
  0x44   : > { %v600_v10 = vrot.slane %v565_v19, 1  ;;  %v601_v0 = vrot.slane %v566_v50, 1  ;;  %v603_v5 = vrot.slane %v567_v61, 1  ;;  %v604_v51 = vrot.slane %v568_v55, 1 }
  0x45   : > { %v572_v49 = vmul.f32 %v1942_v16, %v2208_v58  ;;  %v573_v17 = vmul.f32 %v1942_v16, %v1997_v43  ;;  %v606_v32 = vrot.slane %v569_v1, 1  ;;  %v607_v13 = vrot.slane %v570_v14, 1  ;;  %v3264_v14 = vld [vmem:[#allocation29_spill] sm:$0xff] }
  0x46   : > { %v2264_v42 = vadd.f32 %v527_v34, %v2082_v2  ;;  %v2267_v22 = vadd.f32 %v530_v7, %v2091_v6  ;;  %v2270_v15 = vadd.f32 %v533_v23, %v2093_v9  ;;  %v574_v30 = vmul.f32 %v1942_v16, %v2212_v8 }
  0x47   : > { %v2275_v31 = vadd.f32 %v536_v53, %v2102_v29  ;;  %v2278_v33 = vadd.f32 %v539_v21, %v2104_v46  ;;  %v2281_v57 = vadd.f32 %v542_v20, %v2106_v18  ;;  %v593_v2 = vsel %vm518_vm0, %v591_v62, %v592_v52  ;;  %v3261_v18 = vld [vmem:[#allocation4_spill] sm:$0xff]  ;;  %v3265_v62 = vld [vmem:[#allocation18_spill] sm:$0xff] }
  0x48   : > { %v596_v6 = vsel %vm518_vm0, %v594_v35, %v595_v36  ;;  %v599_v34 = vsel %vm518_vm0, %v597_v48, %v598_v60  ;;  %v602_v9 = vsel %vm518_vm0, %v600_v10, %v601_v0  ;;  %v605_v7 = vsel %vm518_vm0, %v603_v5, %v604_v51  ;;  %v3262_v21 = vld [vmem:[#allocation28_spill] sm:$0xff]  ;;  %v3267_v35 = vld [vmem:[#allocation9_spill] sm:$0xff]  ;;  %v3268_v0 = vld [vmem:[#allocation10_spill] sm:$0xff] }
  0x49   : > { %v608_v16 = vsel %vm518_vm0, %v606_v32, %v607_v13  ;;  %v609_v29 = vrot.slane %v571_v11, 1  ;;  %v610_v23 = vrot.slane %v572_v49, 1  ;;  %v612_v53 = vrot.slane %v573_v17, 1  ;;  %v3263_v17 = vld [vmem:[#allocation8_spill] sm:$0xff] }
  0x4a   : > { %v613_v46 = vrot.slane %v574_v30, 1  ;;  %v2290_v19 = vadd.f32 %v593_v2, %v2108_v45  ;;  %v635_v50 = vmul.f32 %v3261_v18, %v1960_v24  ;;  %v636_v61 = vmul.f32 %v3261_v18, %v2130_v54 }
  0x4b   : > { %v637_v48 = vmul.f32 %v3261_v18, %v1962_v25  ;;  %v638_v51 = vmul.f32 %v3261_v18, %v2132_v47  ;;  %v639_v49 = vmul.f32 %v3261_v18, %v1964_v26  ;;  %v640_v55 = vmul.f32 %v3261_v18, %v2141_v56 }
  0x4c   : > { %v641_v45 = vmul.f32 %v3261_v18, %v1966_v27  ;;  %v642_v24 = vmul.f32 %v3261_v18, %v3262_v21  ;;  %v643_v1 = vmul.f32 %v3261_v18, %v3263_v17  ;;  %v644_v20 = vmul.f32 %v3261_v18, %v3264_v14  ;;  %v3269_v14 = vld [vmem:[#allocation31_spill] sm:$0xff] }
  0x4d   : > { %v611_v11 = vsel %vm518_vm0, %v609_v29, %v610_v23  ;;  %v2314_v52 = vadd.f32 %v596_v6, %v3265_v62  ;;  %v645_v36 = vmul.f32 %v3261_v18, %v3267_v35  ;;  %v646_v60 = vmul.f32 %v3261_v18, %v2147_v59  ;;  %v3270_v17 = vld [vmem:[#allocation11_spill] sm:$0xff] }
  0x4e   : > { %v614_v10 = vsel %vm518_vm0, %v612_v53, %v613_v46  ;;  %v647_v5 = vmul.f32 %v3261_v18, %v3268_v0  ;;  %v667_v32 = vrot.slane %v635_v50, 1  ;;  %v668_v13 = vrot.slane %v636_v61, 1  ;;  %v3271_v21 = vld [vmem:[#allocation19_spill] sm:$0xff]  ;;  %v3272_v50 = vld [vmem:[#allocation20_spill] sm:$0xff] }
  0x4f   : > { %3266 = vst [vmem:[#allocation4_spill] sm:$0xff] %v2314_v52  ;;  %v670_v30 = vrot.slane %v637_v48, 1  ;;  %v671_v2 = vrot.slane %v638_v51, 1  ;;  %v673_v54 = vrot.slane %v639_v49, 1  ;;  %v674_v29 = vrot.slane %v640_v55, 1  ;;  %v3273_v48 = vld [vmem:[#allocation21_spill] sm:$0xff] }
  0x50   : > { %v676_v23 = vrot.slane %v641_v45, 1  ;;  %v677_v6 = vrot.slane %v642_v24, 1  ;;  %v679_v62 = vrot.slane %v643_v1, 1  ;;  %v680_v52 = vrot.slane %v644_v20, 1  ;;  %v3274_v49 = vld [vmem:[#allocation32_spill] sm:$0xff]  ;;  %v3275_v45 = vld [vmem:[#allocation22_spill] sm:$0xff] }
  0x51   : > { %v648_v35 = vmul.f32 %v3261_v18, %v3269_v14  ;;  %v649_v59 = vmul.f32 %v3261_v18, %v3270_v17  ;;  %v682_v53 = vrot.slane %v645_v36, 1  ;;  %v683_v46 = vrot.slane %v646_v60, 1  ;;  %v3277_v1 = vld [vmem:[#allocation26_spill] sm:$0xff]  ;;  %v3278_v36 = vld [vmem:[#allocation27_spill] sm:$0xff] }
  0x52   : > { %v2328_v0 = vadd.f32 %v599_v34, %v3271_v21  ;;  %v2331_v61 = vadd.f32 %v602_v9, %v3272_v50  ;;  %v2334_v51 = vadd.f32 %v605_v7, %v3273_v48  ;;  %v650_v55 = vmul.f32 %v3261_v18, %v3274_v49 }
  0x53   : > { %v2339_v24 = vadd.f32 %v608_v16, %v3275_v45  ;;  %v2342_v20 = vadd.f32 %v611_v11, %v3277_v1  ;;  %v2345_v60 = vadd.f32 %v614_v10, %v3278_v36  ;;  %v669_v34 = vsel %vm518_vm0, %v667_v32, %v668_v13 }
  0x54   : > { %v672_v9 = vsel %vm518_vm0, %v670_v30, %v671_v2  ;;  %v675_v21 = vsel %vm518_vm0, %v673_v54, %v674_v29  ;;  %v678_v7 = vsel %vm518_vm0, %v676_v23, %v677_v6  ;;  %v681_v50 = vsel %vm518_vm0, %v679_v62, %v680_v52  ;;  %v3279_v2 = vld [vmem:[#allocation42_spill] sm:$0xff] }
  0x55   : > { %3276 = vst [vmem:[#allocation18_spill] sm:$0xff] %v2339_v24  ;;  %v684_v48 = vsel %vm518_vm0, %v682_v53, %v683_v46  ;;  %v685_v16 = vrot.slane %v647_v5, 1  ;;  %v686_v45 = vrot.slane %v648_v35, 1  ;;  %v688_v24 = vrot.slane %v649_v59, 1  ;;  %v3281_v23 = vld [vmem:[#allocation14_spill] sm:$0xff] }
  0x56   : > { %v689_v11 = vrot.slane %v650_v55, 1  ;;  %v2354_v1 = vadd.f32 %v669_v34, %v2224_v63  ;;  %v707_v10 = vmul.f32 %v3261_v18, %v1985_v37  ;;  %v708_v32 = vmul.f32 %v3261_v18, %v2182_v3 }
  0x57   : > { %v709_v54 = vmul.f32 %v3261_v18, %v1987_v38  ;;  %v710_v52 = vmul.f32 %v3261_v18, %v2184_v4  ;;  %v711_v35 = vmul.f32 %v3261_v18, %v1989_v39  ;;  %v712_v59 = vmul.f32 %v3261_v18, %v2192_v44 }
  0x58   : > { %v713_v63 = vmul.f32 %v3261_v18, %v1991_v40  ;;  %v714_v37 = vmul.f32 %v3261_v18, %v2204_v12  ;;  %v715_v5 = vmul.f32 %v3261_v18, %v1993_v41  ;;  %v716_v13 = vmul.f32 %v3261_v18, %v2206_v28  ;;  %v3282_v41 = vld [vmem:[#allocation16_spill] sm:$0xff] }
  0x59   : > { %v687_v30 = vsel %vm518_vm0, %v685_v16, %v686_v45  ;;  %v2378_v29 = vadd.f32 %v672_v9, %v3279_v2  ;;  %v717_v6 = vmul.f32 %v3261_v18, %v3281_v23  ;;  %v718_v62 = vmul.f32 %v3261_v18, %v2208_v58 }
  0x5a   : > { %v690_v53 = vsel %vm518_vm0, %v688_v24, %v689_v11  ;;  %v719_v46 = vmul.f32 %v3261_v18, %v1997_v43  ;;  %v739_v55 = vrot.slane %v707_v10, 1  ;;  %v740_v36 = vrot.slane %v708_v32, 1 }
  0x5b   : > { %3280 = vst [vmem:[#allocation11_spill] sm:$0xff] %v2378_v29  ;;  %v742_v34 = vrot.slane %v709_v54, 1  ;;  %v743_v3 = vrot.slane %v710_v52, 1  ;;  %v745_v28 = vrot.slane %v711_v35, 1  ;;  %v746_v16 = vrot.slane %v712_v59, 1  ;;  %v3283_v54 = vld [vmem:[#allocation41_spill] sm:$0xff] }
  0x5c   : > { %v748_v45 = vrot.slane %v713_v63, 1  ;;  %v749_v9 = vrot.slane %v714_v37, 1  ;;  %v751_v2 = vrot.slane %v715_v5, 1  ;;  %v752_v29 = vrot.slane %v716_v13, 1 }
  0x5d   : > { %v720_v23 = vmul.f32 %v3261_v18, %v2212_v8  ;;  %v721_v58 = vmul.f32 %v3261_v18, %v3282_v41  ;;  %v754_v24 = vrot.slane %v717_v6, 1  ;;  %v755_v11 = vrot.slane %v718_v62, 1  ;;  %v3287_v6 = vld [vmem:[#allocation29_spill] sm:$0xff] }
  0x5e   : > { %v2392_v43 = vadd.f32 %v675_v21, %v2264_v42  ;;  %v2395_v10 = vadd.f32 %v678_v7, %v2267_v22  ;;  %v2398_v32 = vadd.f32 %v681_v50, %v2270_v15  ;;  %v722_v52 = vmul.f32 %v3261_v18, %v3283_v54  ;;  %v3288_v62 = vld [vmem:[#allocation9_spill] sm:$0xff] }
  0x5f   : > { %v2403_v35 = vadd.f32 %v684_v48, %v2275_v31  ;;  %v2406_v59 = vadd.f32 %v687_v30, %v2278_v33  ;;  %v2409_v63 = vadd.f32 %v690_v53, %v2281_v57  ;;  %v741_v42 = vsel %vm518_vm0, %v739_v55, %v740_v36  ;;  %v3284_v57 = vld [vmem:[#allocation5_spill] sm:$0xff]  ;;  %v3290_v36 = vld [vmem:[#allocation4_spill] sm:$0xff] }
  0x60   : > { %v744_v22 = vsel %vm518_vm0, %v742_v34, %v743_v3  ;;  %v747_v21 = vsel %vm518_vm0, %v745_v28, %v746_v16  ;;  %v750_v15 = vsel %vm518_vm0, %v748_v45, %v749_v9  ;;  %v753_v7 = vsel %vm518_vm0, %v751_v2, %v752_v29 }
  0x61   : > { %v756_v18 = vsel %vm518_vm0, %v754_v24, %v755_v11  ;;  %v757_v31 = vrot.slane %v719_v46, 1  ;;  %v758_v50 = vrot.slane %v720_v23, 1  ;;  %v760_v48 = vrot.slane %v721_v58, 1  ;;  %v3285_v58 = vld [vmem:[#allocation28_spill] sm:$0xff]  ;;  %v3289_v46 = vld [vmem:[#allocation30_spill] sm:$0xff] }
  0x62   : > { %v761_v33 = vrot.slane %v722_v52, 1  ;;  %v2418_v37 = vadd.f32 %v741_v42, %v2290_v19  ;;  %v783_v5 = vmul.f32 %v3284_v57, %v1962_v25  ;;  %v784_v3 = vmul.f32 %v3284_v57, %v2132_v47  ;;  %v3286_v19 = vld [vmem:[#allocation8_spill] sm:$0xff] }
  0x63   : > { %v785_v28 = vmul.f32 %v3284_v57, %v1964_v26  ;;  %v786_v13 = vmul.f32 %v3284_v57, %v2141_v56  ;;  %v787_v30 = vmul.f32 %v3284_v57, %v1966_v27  ;;  %v788_v29 = vmul.f32 %v3284_v57, %v3285_v58  ;;  %v3291_v27 = vld [vmem:[#allocation10_spill] sm:$0xff] }
  0x64   : > { %v789_v23 = vmul.f32 %v3284_v57, %v3286_v19  ;;  %v790_v25 = vmul.f32 %v3284_v57, %v3287_v6  ;;  %v791_v53 = vmul.f32 %v3284_v57, %v3288_v62  ;;  %v792_v26 = vmul.f32 %v3284_v57, %v3289_v46 }
  0x65   : > { %v759_v55 = vsel %vm518_vm0, %v757_v31, %v758_v50  ;;  %v2442_v34 = vadd.f32 %v744_v22, %v3290_v36  ;;  %v793_v16 = vmul.f32 %v3284_v57, %v3291_v27  ;;  %v794_v45 = vmul.f32 %v3284_v57, %v3269_v14  ;;  %v3292_v14 = vld [vmem:[#allocation3_spill] sm:$0xff] }
  0x66   : > { %v762_v9 = vsel %vm518_vm0, %v760_v48, %v761_v33  ;;  %v2451_v2 = vmul.f32 %v3284_v57, %v3270_v17  ;;  %v815_v24 = vrot.slane %v783_v5, 1  ;;  %v816_v11 = vrot.slane %v784_v3, 1 }
  0x67   : > { %v818_v52 = vrot.slane %v785_v28, 1  ;;  %v819_v42 = vrot.slane %v786_v13, 1  ;;  %v821_v31 = vrot.slane %v787_v30, 1  ;;  %v822_v50 = vrot.slane %v788_v29, 1  ;;  %v3294_v13 = vld [vmem:[#allocation23_spill] sm:$0xff] }
  0x68   : > { %v824_v22 = vrot.slane %v789_v23, 1  ;;  %v825_v19 = vrot.slane %v790_v25, 1  ;;  %v827_v62 = vrot.slane %v791_v53, 1  ;;  %v828_v36 = vrot.slane %v792_v26, 1  ;;  %v3296_v23 = vld [vmem:[#allocation18_spill] sm:$0xff] }
  0x69   : > { %v796_v27 = vmul.f32 %v3284_v57, %v3274_v49  ;;  %v3293_v46 = vunpack.c.h.bf16 %v3292_v14  ;;  %v830_v33 = vrot.slane %v793_v16, 1  ;;  %v831_v17 = vrot.slane %v794_v45, 1 }
  0x6a   : > { %v2459_v5 = vadd.f32 %v747_v21, %v2328_v0  ;;  %v2462_v3 = vadd.f32 %v750_v15, %v2331_v61  ;;  %v2465_v28 = vadd.f32 %v753_v7, %v2334_v51  ;;  %v3295_v30 = vunpack.c.l.bf16 %v3294_v13 }
  0x6b   : > { %v797_v48 = vmul.f32 %v3284_v57, %v3293_v46  ;;  %v2471_v25 = vadd.f32 %v756_v18, %v3296_v23  ;;  %v2474_v14 = vadd.f32 %v759_v55, %v2342_v20  ;;  %v2477_v53 = vadd.f32 %v762_v9, %v2345_v60 }
  0x6c   : > { %v798_v29 = vmul.f32 %v3284_v57, %v3295_v30  ;;  %v817_v0 = vsel %vm518_vm0, %v815_v24, %v816_v11  ;;  %v820_v61 = vsel %vm518_vm0, %v818_v52, %v819_v42  ;;  %v823_v51 = vsel %vm518_vm0, %v821_v31, %v822_v50  ;;  %v3298_v52 = vld [vmem:[#allocation38_spill] sm:$0xff]  ;;  %v3300_v50 = vld [vmem:[#allocation39_spill] sm:$0xff] }
  0x6d   : > { %v826_v21 = vsel %vm518_vm0, %v824_v22, %v825_v19  ;;  %v829_v15 = vsel %vm518_vm0, %v827_v62, %v828_v36  ;;  %v832_v7 = vsel %vm518_vm0, %v830_v33, %v831_v17  ;;  %v833_v18 = vrot.slane %v2451_v2, 1  ;;  %v3299_v42 = vld [vmem:[#allocation14_spill] sm:$0xff]  ;;  %v3301_v22 = vld [vmem:[#allocation15_spill] sm:$0xff]  ;;  %v3304_v17 = vld [vmem:[#allocation36_spill] sm:$0xff] }
  0x6e   : > { %v834_v46 = vrot.slane %v796_v27, 1  ;;  %v836_v20 = vrot.slane %v797_v48, 1  ;;  %v837_v26 = vrot.slane %v798_v29, 1  ;;  %v2487_v60 = vadd.f32 %v817_v0, %v2354_v1  ;;  %v3297_v1 = vld [vmem:[#allocation13_spill] sm:$0xff]  ;;  %v3302_v27 = vld [vmem:[#allocation12_spill] sm:$0xff] }
  0x6f   : > { %v855_v55 = vmul.f32 %v3284_v57, %v1987_v38  ;;  %v856_v16 = vmul.f32 %v3284_v57, %v2184_v4  ;;  %v857_v45 = vmul.f32 %v3284_v57, %v1989_v39  ;;  %v858_v9 = vmul.f32 %v3284_v57, %v2192_v44 }
  0x70   : > { %v859_v2 = vmul.f32 %v3284_v57, %v1991_v40  ;;  %v860_v24 = vmul.f32 %v3284_v57, %v2204_v12  ;;  %v861_v11 = vmul.f32 %v3284_v57, %v3297_v1  ;;  %v862_v38 = vmul.f32 %v3284_v57, %v3298_v52 }
  0x71   : > { %v863_v31 = vmul.f32 %v3284_v57, %v3299_v42  ;;  %v864_v39 = vmul.f32 %v3284_v57, %v3300_v50  ;;  %v865_v19 = vmul.f32 %v3284_v57, %v3301_v22  ;;  %v866_v40 = vmul.f32 %v3284_v57, %v2212_v8 }
  0x72   : > { %v867_v62 = vmul.f32 %v3284_v57, %v3282_v41  ;;  %v868_v36 = vmul.f32 %v3284_v57, %v3283_v54  ;;  %v3303_v48 = vunpack.c.h.bf16 %v3302_v27  ;;  %v3305_v30 = vunpack.c.l.bf16 %v3304_v17  ;;  %v3306_v17 = vld [vmem:[#allocation11_spill] sm:$0xff] }
  0x73   : > { %v887_v23 = vrot.slane %v855_v55, 1  ;;  %v888_v0 = vrot.slane %v856_v16, 1  ;;  %v890_v1 = vrot.slane %v857_v45, 1  ;;  %v891_v42 = vrot.slane %v858_v9, 1 }
  0x74   : > { %v869_v33 = vmul.f32 %v3284_v57, %v3303_v48  ;;  %v870_v29 = vmul.f32 %v3284_v57, %v3305_v30  ;;  %v893_v22 = vrot.slane %v859_v2, 1  ;;  %v894_v13 = vrot.slane %v860_v24, 1  ;;  %v2659_v30 = vld [vmem:[%s1927_s5 + $0x40] sm:$0xe] }
  0x75   : > { %v896_v49 = vrot.slane %v861_v11, 1  ;;  %v897_v8 = vrot.slane %v862_v38, 1  ;;  %v899_v41 = vrot.slane %v863_v31, 1  ;;  %v900_v50 = vrot.slane %v864_v39, 1  ;;  %v934_v38 = vld [vmem:[%s1911_s22 + $0x38] sm:$0xe] }
  0x76   : > { %v902_v52 = vrot.slane %v865_v19, 1  ;;  %v903_v54 = vrot.slane %v866_v40, 1  ;;  %v905_v27 = vrot.slane %v867_v62, 1  ;;  %v906_v12 = vrot.slane %v868_v36, 1  ;;  %v2583_v31 = vld [vmem:[%s1911_s22 + $0x48] sm:$0xe] }
  0x77   : > { %v835_v48 = vsel %vm518_vm0, %v833_v18, %v834_v46  ;;  %v2525_v44 = vadd.f32 %v820_v61, %v3306_v17  ;;  %v908_v57 = vrot.slane %v869_v33, 1  ;;  %v909_v55 = vrot.slane %v870_v29, 1  ;;  %3311 = vst [vmem:[#allocation26_spill] sm:$0xff] %v2583_v31  ;;  %v2593_v19 = vld [vmem:[%s1927_s5] sm:$0xe]  ;;  %3323 = vst [vmem:[#allocation29_spill] sm:$0xff] %v2659_v30 }
  0x78   : > { %v838_v16 = vsel %vm518_vm0, %v836_v20, %v837_v26  ;;  %v2529_v45 = vadd.f32 %v823_v51, %v2392_v43  ;;  %v2532_v9 = vadd.f32 %v826_v21, %v2395_v10  ;;  %v889_v2 = vsel %vm518_vm0, %v887_v23, %v888_v0  ;;  %v927_v20 = vld [vmem:[%s1911_s22] sm:$0xe] }
  0x79   : > { %v892_v18 = vsel %vm518_vm0, %v890_v1, %v891_v42  ;;  %v895_v61 = vsel %vm518_vm0, %v893_v22, %v894_v13  ;;  %v898_v46 = vsel %vm518_vm0, %v896_v49, %v897_v8  ;;  %v901_v24 = vsel %vm518_vm0, %v899_v41, %v900_v50  ;;  %v2549_v13 = vld [vmem:[%s1911_s22 + $0x8] sm:$0xe]  ;;  %v929_v8 = vld [vmem:[%s1911_s22 + $0x10] sm:$0xe]  ;;  %v930_v49 = vld [vmem:[%s1911_s22 + $0x18] sm:$0xe] }
  0x7a   : > { %v2541_v43 = vadd.f32 %v829_v15, %v2398_v32  ;;  %v2544_v10 = vadd.f32 %v832_v7, %v2403_v35  ;;  %v904_v51 = vsel %vm518_vm0, %v902_v52, %v903_v54  ;;  %v907_v21 = vsel %vm518_vm0, %v905_v27, %v906_v12  ;;  %v931_v12 = vld [vmem:[%s1911_s22 + $0x20] sm:$0xe]  ;;  %v932_v15 = vld [vmem:[%s1911_s22 + $0x28] sm:$0xe]  ;;  %v933_v7 = vld [vmem:[%s1911_s22 + $0x30] sm:$0xe] }
  0x7b   : > { %v2554_v26 = vadd.f32 %v835_v48, %v2406_v59  ;;  %v2557_v32 = vadd.f32 %v838_v16, %v2409_v63  ;;  %v910_v35 = vsel %vm518_vm0, %v908_v57, %v909_v55  ;;  %v2561_v54 = vadd.f32 %v889_v2, %v2418_v37  ;;  %v2580_v37 = vld [vmem:[%s1911_s22 + $0x40] sm:$0xe]  ;;  %v950_v1 = vld [vmem:[%s1927_s5 + $0x18] sm:$0xe]  ;;  %v3320_v55 = vld [vmem:[#allocation24_spill] sm:$0xff] }
  0x7c   : > { %v2567_v11 = vadd.f32 %v892_v18, %v2442_v34  ;;  %v2570_v59 = vadd.f32 %v895_v61, %v2459_v5  ;;  %v2573_v63 = vadd.f32 %v898_v46, %v2462_v3  ;;  %v2576_v52 = vadd.f32 %v901_v24, %v2465_v28  ;;  %3310 = vst [vmem:[#allocation22_spill] sm:$0xff] %v2580_v37  ;;  %v2596_v3 = vld [vmem:[%s1927_s5 + $0x8] sm:$0xe]  ;;  %v949_v28 = vld [vmem:[%s1927_s5 + $0x10] sm:$0xe]  ;;  %v3317_v42 = vld [vmem:[#allocation6_spill] sm:$0xff] }
  0x7d   : > { %v2586_v50 = vadd.f32 %v904_v51, %v2471_v25  ;;  %v2589_v34 = vadd.f32 %v907_v21, %v2474_v14  ;;  %v937_v39 = vunpack.c.l.bf16 %v927_v20  ;;  %v3191_v5 = vunpack.c.l.bf16 %v2549_v13  ;;  %v3318_v41 = vld [vmem:[#allocation17_spill] sm:$0xff]  ;;  %v3326_v37 = vld [vmem:[#allocation31_spill] sm:$0xff] }
  0x7e   : > { %3307 = vst [vmem:[#allocation19_spill] sm:$0xff] %v2570_v59  ;;  %3308 = vst [vmem:[#allocation20_spill] sm:$0xff] %v2573_v63  ;;  %v2600_v40 = vadd.f32 %v910_v35, %v2477_v53  ;;  %v2602_v62 = vunpack.c.l.bf16 %v929_v8  ;;  %v2604_v36 = vunpack.c.l.bf16 %v930_v49  ;;  %v2606_v25 = vunpack.c.l.bf16 %v931_v12  ;;  %v951_v8 = vld [vmem:[%s1927_s5 + $0x20] sm:$0xe]  ;;  %v952_v49 = vld [vmem:[%s1927_s5 + $0x28] sm:$0xe] }
  0x7f   : > { %3309 = vst [vmem:[#allocation21_spill] sm:$0xff] %v2576_v52  ;;  %3312 = vst [vmem:[#allocation27_spill] sm:$0xff] %v2586_v50  ;;  %v2608_v14 = vunpack.c.l.bf16 %v932_v15  ;;  %v2610_v33 = vunpack.c.l.bf16 %v933_v7  ;;  %v2612_v17 = vunpack.c.l.bf16 %v934_v38  ;;  %v957_v53 = vunpack.c.l.bf16 %v2593_v19  ;;  %v953_v35 = vld [vmem:[%s1927_s5 + $0x30] sm:$0xe]  ;;  %v3322_v7 = vld [vmem:[#allocation30_spill] sm:$0xff] }
  0x80   : > { %3313 = vst [vmem:[#allocation42_spill] sm:$0xff] %v2589_v34  ;;  %3314 = vst [vmem:[#allocation16_spill] sm:$0xff] %v2600_v40  ;;  %v2618_v0 = vunpack.c.l.bf16 %v949_v28  ;;  %v971_v22 = vmul.f32 %v3317_v42, %v937_v39  ;;  %v3319_v27 = vunpack.c.l.bf16 %v3318_v41  ;;  %v973_v57 = vmul.f32 %v3317_v42, %v3191_v5  ;;  %v954_v19 = vld [vmem:[%s1927_s5 + $0x38] sm:$0xe]  ;;  %v2662_v40 = vld [vmem:[%s1927_s5 + $0x48] sm:$0xe] }
  0x81   : > { %3315 = vst [vmem:[#allocation5_spill] sm:$0xff] %v2612_v17  ;;  %v974_v16 = vmul.f32 %v3317_v42, %v3320_v55  ;;  %v975_v2 = vmul.f32 %v3317_v42, %v2602_v62  ;;  %v976_v18 = vmul.f32 %v3317_v42, %v2132_v47  ;;  %v977_v61 = vmul.f32 %v3317_v42, %v2604_v36 }
  0x82   : > { %3316 = vst [vmem:[#allocation28_spill] sm:$0xff] %v2618_v0  ;;  %v972_v48 = vmul.f32 %v3317_v42, %v3319_v27  ;;  %v978_v46 = vmul.f32 %v3317_v42, %v2141_v56  ;;  %v979_v24 = vmul.f32 %v3317_v42, %v2606_v25  ;;  %v980_v20 = vmul.f32 %v3317_v42, %v3285_v58 }
  0x83   : > { %v981_v51 = vmul.f32 %v3317_v42, %v2608_v14  ;;  %v982_v21 = vmul.f32 %v3317_v42, %v3287_v6  ;;  %v2649_v12 = vunpack.c.l.bf16 %v950_v1  ;;  %v983_v15 = vmul.f32 %v3317_v42, %v2610_v33  ;;  %3324 = vst [vmem:[#allocation9_spill] sm:$0xff] %v2662_v40 }
  0x84   : > { %v984_v38 = vmul.f32 %v3317_v42, %v3322_v7  ;;  %v985_v39 = vmul.f32 %v3317_v42, %v2612_v17  ;;  %v1004_v28 = vrot.slane %v971_v22, 2  ;;  %v1005_v41 = vrot.slane %v972_v48, 2 }
  0x85   : > { %3321 = vst [vmem:[#allocation8_spill] sm:$0xff] %v2649_v12  ;;  %v1007_v27 = vrot.slane %v973_v57, 2  ;;  %v1008_v29 = vrot.slane %v974_v16, 2  ;;  %v1010_v5 = vrot.slane %v975_v2, 2  ;;  %v1011_v23 = vrot.slane %v976_v18, 2 }
  0x86   : > { %v1013_v1 = vrot.slane %v977_v61, 2  ;;  %v1014_v31 = vrot.slane %v978_v46, 2  ;;  %v1016_v34 = vrot.slane %v979_v24, 2  ;;  %v1017_v50 = vrot.slane %v980_v20, 2 }
  0x87   : > { %v1019_v52 = vrot.slane %v981_v51, 2  ;;  %v1020_v63 = vrot.slane %v982_v21, 2  ;;  %v2664_v59 = vunpack.c.l.bf16 %v951_v8  ;;  %v986_v22 = vmul.f32 %v3317_v42, %v3326_v37 }
  0x88   : > { %v1022_v48 = vrot.slane %v983_v15, 2  ;;  %v1023_v57 = vrot.slane %v984_v38, 2  ;;  %v2668_v16 = vunpack.c.l.bf16 %v952_v49  ;;  %v2670_v17 = vunpack.c.l.bf16 %v953_v35 }
  0x89   : > { %3325 = vst [vmem:[#allocation4_spill] sm:$0xff] %v2664_v59  ;;  %v1006_v2 = vsel %vm1003_vm1, %v1004_v28, %v1005_v41  ;;  %v1009_v18 = vsel %vm1003_vm1, %v1007_v27, %v1008_v29  ;;  %v2674_v61 = vunpack.c.l.bf16 %v954_v19  ;;  %v1012_v20 = vsel %vm1003_vm1, %v1010_v5, %v1011_v23  ;;  %v3330_v28 = vld [vmem:[#allocation25_spill] sm:$0xff]  ;;  %v3334_v23 = vld [vmem:[#allocation35_spill] sm:$0xff] }
  0x8a   : > { %3327 = vst [vmem:[#allocation10_spill] sm:$0xff] %v2668_v16  ;;  %3328 = vst [vmem:[#allocation3_spill] sm:$0xff] %v2670_v17  ;;  %v1015_v51 = vsel %vm1003_vm1, %v1013_v1, %v1014_v31  ;;  %v1018_v21 = vsel %vm1003_vm1, %v1016_v34, %v1017_v50  ;;  %v1021_v8 = vsel %vm1003_vm1, %v1019_v52, %v1020_v63  ;;  %v1025_v49 = vrot.slane %v985_v39, 2  ;;  %v3333_v52 = vld [vmem:[#allocation33_spill] sm:$0xff] }
  0x8b   : > { %3329 = vst [vmem:[#allocation18_spill] sm:$0xff] %v2674_v61  ;;  %v1024_v35 = vsel %vm1003_vm1, %v1022_v48, %v1023_v57  ;;  %v1026_v15 = vrot.slane %v986_v22, 2  ;;  %v2684_v29 = vadd.f32 %v1006_v2, %v2487_v60  ;;  %v2687_v38 = vadd.f32 %v1009_v18, %v2525_v44  ;;  %v3335_v27 = vld [vmem:[#allocation37_spill] sm:$0xff]  ;;  %v3336_v48 = vld [vmem:[#allocation38_spill] sm:$0xff] }
  0x8c   : > { %v1044_v19 = vmul.f32 %v3317_v42, %v957_v53  ;;  %v3331_v5 = vunpack.c.l.bf16 %v3330_v28  ;;  %v3332_v50 = vunpack.c.l.bf16 %v2596_v3  ;;  %v1047_v34 = vmul.f32 %v3317_v42, %v3333_v52  ;;  %v3337_v28 = vld [vmem:[#allocation39_spill] sm:$0xff] }
  0x8d   : > { %v1048_v60 = vmul.f32 %v3317_v42, %v2618_v0  ;;  %v1049_v44 = vmul.f32 %v3317_v42, %v2184_v4  ;;  %v1050_v53 = vmul.f32 %v3317_v42, %v2649_v12  ;;  %v1051_v39 = vmul.f32 %v3317_v42, %v3334_v23  ;;  %v3338_v4 = vld [vmem:[#allocation40_spill] sm:$0xff] }
  0x8e   : > { %v1045_v31 = vmul.f32 %v3317_v42, %v3331_v5  ;;  %v1046_v63 = vmul.f32 %v3317_v42, %v3332_v50  ;;  %v1052_v41 = vmul.f32 %v3317_v42, %v2664_v59  ;;  %v1053_v1 = vmul.f32 %v3317_v42, %v3335_v27 }
  0x8f   : > { %v1054_v22 = vmul.f32 %v3317_v42, %v2668_v16  ;;  %v1055_v57 = vmul.f32 %v3317_v42, %v3336_v48  ;;  %v1027_v2 = vsel %vm1003_vm1, %v1025_v49, %v1026_v15  ;;  %v1056_v18 = vmul.f32 %v3317_v42, %v2670_v17 }
  0x90   : > { %v1057_v5 = vmul.f32 %v3317_v42, %v3337_v28  ;;  %v1058_v50 = vmul.f32 %v3317_v42, %v2674_v61  ;;  %v1076_v24 = vrot.slane %v1044_v19, 2  ;;  %v1077_v46 = vrot.slane %v1045_v31, 2 }
  0x91   : > { %v1079_v40 = vrot.slane %v1046_v63, 2  ;;  %v1080_v30 = vrot.slane %v1047_v34, 2  ;;  %v1082_v27 = vrot.slane %v1048_v60, 2  ;;  %v1083_v16 = vrot.slane %v1049_v44, 2 }
  0x92   : > { %v1085_v59 = vrot.slane %v1050_v53, 2  ;;  %v1086_v23 = vrot.slane %v1051_v39, 2  ;;  %v1088_v48 = vrot.slane %v1052_v41, 2  ;;  %v1089_v12 = vrot.slane %v1053_v1, 2  ;;  %v3341_v53 = vld [vmem:[#allocation5_spill] sm:$0xff]  ;;  %v3342_v41 = vld [vmem:[#allocation22_spill] sm:$0xff] }
  0x93   : > { %v1091_v49 = vrot.slane %v1054_v22, 2  ;;  %v1092_v15 = vrot.slane %v1055_v57, 2  ;;  %v2722_v17 = vadd.f32 %v1012_v20, %v2529_v45  ;;  %v1059_v28 = vmul.f32 %v3317_v42, %v3338_v4 }
  0x94   : > { %v1094_v0 = vrot.slane %v1056_v18, 2  ;;  %v1095_v61 = vrot.slane %v1057_v5, 2  ;;  %v2727_v19 = vadd.f32 %v1015_v51, %v2532_v9  ;;  %v2730_v31 = vadd.f32 %v1018_v21, %v2541_v43 }
  0x95   : > { %v1078_v63 = vsel %vm1003_vm1, %v1076_v24, %v1077_v46  ;;  %v1081_v34 = vsel %vm1003_vm1, %v1079_v40, %v1080_v30  ;;  %v2735_v60 = vadd.f32 %v1021_v8, %v2544_v10  ;;  %v2738_v45 = vadd.f32 %v1024_v35, %v2554_v26  ;;  %v3340_v24 = vld [vmem:[#allocation7_spill] sm:$0xff] }
  0x96   : > { %v2741_v42 = vadd.f32 %v1027_v2, %v2557_v32  ;;  %v1084_v20 = vsel %vm1003_vm1, %v1082_v27, %v1083_v16  ;;  %v1087_v9 = vsel %vm1003_vm1, %v1085_v59, %v1086_v23  ;;  %v1090_v43 = vsel %vm1003_vm1, %v1088_v48, %v1089_v12 }
  0x97   : > { %v1093_v51 = vsel %vm1003_vm1, %v1091_v49, %v1092_v15  ;;  %v1097_v46 = vrot.slane %v1058_v50, 2  ;;  %v1096_v40 = vsel %vm1003_vm1, %v1094_v0, %v1095_v61  ;;  %v1098_v30 = vrot.slane %v1059_v28, 2 }
  0x98   : > { %v2749_v10 = vadd.f32 %v1078_v63, %v2561_v54  ;;  %v2752_v26 = vadd.f32 %v1081_v34, %v2567_v11  ;;  %v3339_v32 = vunpack.c.l.bf16 %v2549_v13  ;;  %v1121_v59 = vmul.f32 %v3340_v24, %v3320_v55 }
  0x99   : > { %v1122_v12 = vmul.f32 %v3340_v24, %v2602_v62  ;;  %v1123_v0 = vmul.f32 %v3340_v24, %v2132_v47  ;;  %v1124_v54 = vmul.f32 %v3340_v24, %v2604_v36  ;;  %v1125_v11 = vmul.f32 %v3340_v24, %v2141_v56 }
  0x9a   : > { %v1120_v16 = vmul.f32 %v3340_v24, %v3339_v32  ;;  %v1126_v13 = vmul.f32 %v3340_v24, %v2606_v25  ;;  %v1127_v61 = vmul.f32 %v3340_v24, %v3285_v58  ;;  %v1128_v55 = vmul.f32 %v3340_v24, %v2608_v14  ;;  %v3345_v32 = vld [vmem:[#allocation32_spill] sm:$0xff] }
  0x9b   : > { %v1129_v21 = vmul.f32 %v3340_v24, %v3287_v6  ;;  %v1130_v8 = vmul.f32 %v3340_v24, %v2610_v33  ;;  %v1131_v35 = vmul.f32 %v3340_v24, %v3322_v7  ;;  %v1099_v44 = vsel %vm1003_vm1, %v1097_v46, %v1098_v30  ;;  %v3344_v46 = vld [vmem:[#allocation19_spill] sm:$0xff] }
  0x9c   : > { %v1132_v23 = vmul.f32 %v3340_v24, %v3341_v53  ;;  %v1133_v39 = vmul.f32 %v3340_v24, %v3326_v37  ;;  %v3343_v27 = vunpack.c.l.bf16 %v3342_v41  ;;  %v1152_v22 = vrot.slane %v1120_v16, 2  ;;  %v3346_v16 = vld [vmem:[#allocation20_spill] sm:$0xff] }
  0x9d   : > { %v1153_v48 = vrot.slane %v1121_v59, 2  ;;  %v1155_v57 = vrot.slane %v1122_v12, 2  ;;  %v1156_v2 = vrot.slane %v1123_v0, 2  ;;  %v1158_v18 = vrot.slane %v1124_v54, 2  ;;  %v3347_v12 = vld [vmem:[#allocation21_spill] sm:$0xff] }
  0x9e   : > { %v1134_v1 = vmul.f32 %v3340_v24, %v3343_v27  ;;  %v1159_v28 = vrot.slane %v1125_v11, 2  ;;  %v1161_v5 = vrot.slane %v1126_v13, 2  ;;  %v1162_v50 = vrot.slane %v1127_v61, 2  ;;  %v3348_v13 = vld [vmem:[#allocation27_spill] sm:$0xff] }
  0x9f   : > { %v1164_v49 = vrot.slane %v1128_v55, 2  ;;  %v1165_v15 = vrot.slane %v1129_v21, 2  ;;  %v1167_v63 = vrot.slane %v1130_v8, 2  ;;  %v1168_v34 = vrot.slane %v1131_v35, 2  ;;  %v3352_v21 = vld [vmem:[#allocation16_spill] sm:$0xff] }
  0xa0   : > { %v2788_v30 = vadd.f32 %v1084_v20, %v3344_v46  ;;  %v1135_v41 = vmul.f32 %v3340_v24, %v3345_v32  ;;  %v1170_v37 = vrot.slane %v1132_v23, 2  ;;  %v1171_v27 = vrot.slane %v1133_v39, 2  ;;  %v3350_v20 = vld [vmem:[#allocation42_spill] sm:$0xff] }
  0xa1   : > { %v2793_v59 = vadd.f32 %v1087_v9, %v3346_v16  ;;  %v2796_v0 = vadd.f32 %v1090_v43, %v3347_v12  ;;  %v1154_v54 = vsel %vm1003_vm1, %v1152_v22, %v1153_v48  ;;  %v1157_v11 = vsel %vm1003_vm1, %v1155_v57, %v1156_v2 }
  0xa2   : > { %v2801_v61 = vadd.f32 %v1093_v51, %v3348_v13  ;;  %v2804_v55 = vadd.f32 %v1096_v40, %v3350_v20  ;;  %v2807_v8 = vadd.f32 %v1099_v44, %v3352_v21  ;;  %v1160_v35 = vsel %vm1003_vm1, %v1158_v18, %v1159_v28  ;;  %v3356_v18 = vld [vmem:[#allocation28_spill] sm:$0xff]  ;;  %v3367_v13 = vld [vmem:[#allocation39_spill] sm:$0xff]  ;;  %v3368_v21 = vld [vmem:[#allocation18_spill] sm:$0xff] }
  0xa3   : > { %v1163_v9 = vsel %vm1003_vm1, %v1161_v5, %v1162_v50  ;;  %v1166_v43 = vsel %vm1003_vm1, %v1164_v49, %v1165_v15  ;;  %v1169_v23 = vsel %vm1003_vm1, %v1167_v63, %v1168_v34  ;;  %v1173_v39 = vrot.slane %v1134_v1, 2  ;;  %v3357_v1 = vld [vmem:[#allocation34_spill] sm:$0xff]  ;;  %v3359_v5 = vld [vmem:[#allocation35_spill] sm:$0xff]  ;;  %v3360_v50 = vld [vmem:[#allocation4_spill] sm:$0xff] }
  0xa4   : > { %3349 = vst [vmem:[#allocation13_spill] sm:$0xff] %v2801_v61  ;;  %3351 = vst [vmem:[#allocation14_spill] sm:$0xff] %v2804_v55  ;;  %v1172_v22 = vsel %vm1003_vm1, %v1170_v37, %v1171_v27  ;;  %v1174_v48 = vrot.slane %v1135_v41, 2  ;;  %v2815_v51 = vadd.f32 %v1154_v54, %v2684_v29  ;;  %v2818_v40 = vadd.f32 %v1157_v11, %v2687_v38  ;;  %v3358_v41 = vld [vmem:[#allocation8_spill] sm:$0xff]  ;;  %v3361_v49 = vld [vmem:[#allocation37_spill] sm:$0xff] }
  0xa5   : > { %3353 = vst [vmem:[#allocation15_spill] sm:$0xff] %v2807_v8  ;;  %v3355_v44 = vunpack.c.l.bf16 %v2596_v3  ;;  %v1193_v2 = vmul.f32 %v3340_v24, %v3333_v52  ;;  %v1194_v28 = vmul.f32 %v3340_v24, %v3356_v18  ;;  %v1195_v37 = vmul.f32 %v3340_v24, %v3357_v1  ;;  %v3364_v34 = vld [vmem:[#allocation10_spill] sm:$0xff]  ;;  %v3366_v54 = vld [vmem:[#allocation3_spill] sm:$0xff] }
  0xa6   : > { %3354 = vst [vmem:[#allocation12_spill] sm:$0xff] %v2818_v40  ;;  %v1196_v29 = vmul.f32 %v3340_v24, %v3358_v41  ;;  %v1197_v38 = vmul.f32 %v3340_v24, %v3359_v5  ;;  %v1198_v3 = vmul.f32 %v3340_v24, %v3360_v50  ;;  %v1199_v15 = vmul.f32 %v3340_v24, %v3361_v49  ;;  %v3365_v27 = vld [vmem:[#allocation38_spill] sm:$0xff] }
  0xa7   : > { %v1192_v57 = vmul.f32 %v3340_v24, %v3355_v44  ;;  %v2838_v52 = vadd.f32 %v1160_v35, %v2722_v17  ;;  %v2841_v63 = vadd.f32 %v1163_v9, %v2727_v19  ;;  %v1200_v46 = vmul.f32 %v3340_v24, %v3364_v34 }
  0xa8   : > { %v1201_v16 = vmul.f32 %v3340_v24, %v3365_v27  ;;  %v1175_v12 = vsel %vm1003_vm1, %v1173_v39, %v1174_v48  ;;  %v1202_v11 = vmul.f32 %v3340_v24, %v3366_v54  ;;  %v1203_v20 = vmul.f32 %v3340_v24, %v3367_v13  ;;  %v3369_v48 = vld [vmem:[#allocation29_spill] sm:$0xff] }
  0xa9   : > { %3362 = vst [vmem:[#allocation11_spill] sm:$0xff] %v2838_v52  ;;  %3363 = vst [vmem:[#allocation6_spill] sm:$0xff] %v2841_v63  ;;  %v1204_v17 = vmul.f32 %v3340_v24, %v3368_v21  ;;  %v1224_v35 = vrot.slane %v1192_v57, 2  ;;  %v1225_v19 = vrot.slane %v1193_v2, 2  ;;  %v1227_v9 = vrot.slane %v1194_v28, 2  ;;  %v3371_v27 = vld [vmem:[#allocation41_spill] sm:$0xff] }
  0xaa   : > { %v1228_v44 = vrot.slane %v1195_v37, 2  ;;  %v1230_v8 = vrot.slane %v1196_v29, 2  ;;  %v1231_v55 = vrot.slane %v1197_v38, 2  ;;  %v1233_v61 = vrot.slane %v1198_v3, 2  ;;  %v1837_v28 = vld [vmem:[%s3131_s2 + $0x8] sm:$0x7] }
  0xab   : > { %v1234_v63 = vrot.slane %v1199_v15, 2  ;;  %v1205_v39 = vmul.f32 %v3340_v24, %v3338_v4  ;;  %v3370_v52 = vunpack.c.l.bf16 %v3369_v48  ;;  %v1236_v54 = vrot.slane %v1200_v46, 2  ;;  %v3372_v37 = vld [vmem:[#allocation2_spill] sm:$0xff] }
  0xac   : > { %v1237_v13 = vrot.slane %v1201_v16, 2  ;;  %v1207_v21 = vmul.f32 %v3340_v24, %v3371_v27  ;;  %v1239_v57 = vrot.slane %v1202_v11, 2  ;;  %v1240_v2 = vrot.slane %v1203_v20, 2 }
  0xad   : > { %v1206_v40 = vmul.f32 %v3340_v24, %v3370_v52  ;;  %v2865_v29 = vrot.slane %v1837_v28, %v3372_v37  ;;  %v2868_v38 = vadd.f32 %v1166_v43, %v2730_v31  ;;  %v2871_v3 = vadd.f32 %v1169_v23, %v2735_v60  ;;  %v3376_v37 = vld [vmem:[#allocation26_spill] sm:$0xff] }
  0xae   : > { %v2874_v15 = vadd.f32 %v1172_v22, %v2738_v45  ;;  %v2877_v24 = vadd.f32 %v1175_v12, %v2741_v42  ;;  %v1226_v52 = vsel %vm1003_vm1, %v1224_v35, %v1225_v19  ;;  %v1229_v46 = vsel %vm1003_vm1, %v1227_v9, %v1228_v44  ;;  %v3373_v12 = vld [vmem:[#allocation31_spill] sm:$0xff] }
  0xaf   : > { %v1232_v16 = vsel %vm1003_vm1, %v1230_v8, %v1231_v55  ;;  %v1235_v11 = vsel %vm1003_vm1, %v1233_v61, %v1234_v63  ;;  %v1238_v31 = vsel %vm1003_vm1, %v1236_v54, %v1237_v13  ;;  %v1242_v43 = vrot.slane %v1204_v17, 2 }
  0xb0   : > { %v1243_v20 = vrot.slane %v1205_v39, 2  ;;  %v1245_v60 = vrot.slane %v1206_v40, 2  ;;  %v2885_v23 = vsel %vm1003_vm1, %v1239_v57, %v1240_v2  ;;  %v1246_v45 = vrot.slane %v1207_v21, 2 }
  0xb1   : > { %v1268_v42 = vmul.f32 %v2865_v29, %v2602_v62  ;;  %v1269_v22 = vmul.f32 %v2865_v29, %v2132_v47  ;;  %v1270_v55 = vmul.f32 %v2865_v29, %v2604_v36  ;;  %v1271_v61 = vmul.f32 %v2865_v29, %v2141_v56 }
  0xb2   : > { %v1272_v8 = vmul.f32 %v2865_v29, %v2606_v25  ;;  %v1273_v40 = vmul.f32 %v2865_v29, %v3285_v58  ;;  %v1274_v63 = vmul.f32 %v2865_v29, %v2608_v14  ;;  %v1275_v62 = vmul.f32 %v2865_v29, %v3287_v6 }
  0xb3   : > { %v1276_v47 = vmul.f32 %v2865_v29, %v2610_v33  ;;  %v1277_v36 = vmul.f32 %v2865_v29, %v3322_v7  ;;  %v2908_v56 = vsel %vm1003_vm1, %v1242_v43, %v1243_v20  ;;  %v2911_v25 = vadd.f32 %v1226_v52, %v2749_v10 }
  0xb4   : > { %v2914_v58 = vadd.f32 %v1229_v46, %v2752_v26  ;;  %v2917_v14 = vadd.f32 %v1232_v16, %v2788_v30  ;;  %v1278_v6 = vmul.f32 %v2865_v29, %v3341_v53  ;;  %v1279_v33 = vmul.f32 %v2865_v29, %v3373_v12  ;;  %v3374_v53 = vld [vmem:[#allocation22_spill] sm:$0xff] }
  0xb5   : > { %v1300_v54 = vrot.slane %v1268_v42, 2  ;;  %v1301_v7 = vrot.slane %v1269_v22, 2  ;;  %v1303_v13 = vrot.slane %v1270_v55, 2  ;;  %v1304_v21 = vrot.slane %v1271_v61, 2  ;;  %v3380_v12 = vld [vmem:[#allocation38_spill] sm:$0xff] }
  0xb6   : > { %v1306_v17 = vrot.slane %v1272_v8, 2  ;;  %v1307_v35 = vrot.slane %v1273_v40, 2  ;;  %v1309_v10 = vrot.slane %v1274_v63, 2  ;;  %v1310_v19 = vrot.slane %v1275_v62, 2 }
  0xb7   : > { %v1312_v9 = vrot.slane %v1276_v47, 2  ;;  %v1313_v26 = vrot.slane %v1277_v36, 2  ;;  %v2924_v44 = vadd.f32 %v1235_v11, %v2793_v59  ;;  %v2927_v30 = vadd.f32 %v1238_v31, %v2796_v0  ;;  %v3378_v11 = vld [vmem:[#allocation23_spill] sm:$0xff] }
  0xb8   : > { %v3375_v39 = vunpack.c.l.bf16 %v3374_v53  ;;  %v1281_v2 = vmul.f32 %v2865_v29, %v3345_v32  ;;  %v2935_v28 = vsel %vm1003_vm1, %v1245_v60, %v1246_v45  ;;  %v3377_v52 = vunpack.c.l.bf16 %v3376_v37 }
  0xb9   : > { %v1315_v16 = vrot.slane %v1278_v6, 2  ;;  %v1316_v59 = vrot.slane %v1279_v33, 2  ;;  %v3379_v43 = vunpack.c.l.bf16 %v3378_v11  ;;  %v1302_v31 = vsel %vm1003_vm1, %v1300_v54, %v1301_v7  ;;  %v3381_v33 = vld [vmem:[#allocation3_spill] sm:$0xff] }
  0xba   : > { %v1280_v57 = vmul.f32 %v2865_v29, %v3375_v39  ;;  %v1282_v46 = vmul.f32 %v2865_v29, %v3377_v52  ;;  %v1305_v20 = vsel %vm1003_vm1, %v1303_v13, %v1304_v21  ;;  %v1308_v42 = vsel %vm1003_vm1, %v1306_v17, %v1307_v35  ;;  %v3382_v54 = vld [vmem:[#allocation39_spill] sm:$0xff]  ;;  %v3383_v21 = vld [vmem:[#allocation12_spill] sm:$0xff]  ;;  %v2977_v39 = vld [vmem:[%s3132_s3] ss:$0 sm:$0xff] }
  0xbb   : > { %v1283_v0 = vmul.f32 %v2865_v29, %v3379_v43  ;;  %v1311_v32 = vsel %vm1003_vm1, %v1309_v10, %v1310_v19  ;;  %v1314_v60 = vsel %vm1003_vm1, %v1312_v9, %v1313_v26  ;;  %v1340_v45 = vmul.f32 %v2865_v29, %v3356_v18 }
  0xbc   : > { %v1341_v22 = vmul.f32 %v2865_v29, %v3357_v1  ;;  %v1318_v55 = vrot.slane %v1280_v57, 2  ;;  %v1319_v61 = vrot.slane %v1281_v2, 2  ;;  %v1342_v8 = vmul.f32 %v2865_v29, %v3358_v41 }
  0xbd   : > { %v1343_v40 = vmul.f32 %v2865_v29, %v3359_v5  ;;  %v1317_v63 = vsel %vm1003_vm1, %v1315_v16, %v1316_v59  ;;  %v1321_v62 = vrot.slane %v1282_v46, 2  ;;  %v1344_v47 = vmul.f32 %v2865_v29, %v3360_v50 }
  0xbe   : > { %v1345_v18 = vmul.f32 %v2865_v29, %v3361_v49  ;;  %v1322_v36 = vrot.slane %v1283_v0, 2  ;;  %v1332_v1 = vadd.f32 %v1302_v31, %v2815_v51  ;;  %v1346_v6 = vmul.f32 %v2865_v29, %v3364_v34  ;;  %v3384_v49 = vld [vmem:[#allocation11_spill] sm:$0xff]  ;;  %v3385_v34 = vld [vmem:[#allocation6_spill] sm:$0xff] }
  0xbf   : > { %v1347_v41 = vmul.f32 %v2865_v29, %v3380_v12  ;;  %v1348_v5 = vmul.f32 %v2865_v29, %v3381_v33  ;;  %v1349_v7 = vmul.f32 %v2865_v29, %v3382_v54  ;;  %v1372_v13 = vrot.slane %v1340_v45, 2 }
  0xc0   : > { %v1373_v50 = vrot.slane %v1341_v22, 2  ;;  %v1333_v17 = vadd.f32 %v1305_v20, %v3383_v21  ;;  %v1334_v35 = vadd.f32 %v1308_v42, %v3384_v49  ;;  %v1375_v10 = vrot.slane %v1342_v8, 2  ;;  %v3386_v42 = vld [vmem:[#allocation18_spill] sm:$0xff] }
  0xc1   : > { %v1376_v51 = vrot.slane %v1343_v40, 2  ;;  %v1320_v19 = vsel %vm1003_vm1, %v1318_v55, %v1319_v61  ;;  %v1335_v9 = vadd.f32 %v1311_v32, %v3385_v34  ;;  %v1378_v26 = vrot.slane %v1344_v47, 2 }
  0xc2   : > { %v1379_v53 = vrot.slane %v1345_v18, 2  ;;  %v1323_v57 = vsel %vm1003_vm1, %v1321_v62, %v1322_v36  ;;  %v1336_v2 = vadd.f32 %v1314_v60, %v2868_v38  ;;  %v1381_v37 = vrot.slane %v1346_v6, 2  ;;  %v3388_v36 = vld [vmem:[#allocation9_spill] sm:$0xff]  ;;  %v3390_v6 = vld [vmem:[#allocation36_spill] sm:$0xff] }
  0xc3   : > { %v1382_v52 = vrot.slane %v1347_v41, 2  ;;  %v1337_v46 = vadd.f32 %v1317_v63, %v2871_v3  ;;  %v1374_v16 = vsel %vm1003_vm1, %v1372_v13, %v1373_v50  ;;  %v1384_v59 = vrot.slane %v1348_v5, 2 }
  0xc4   : > { %v1385_v11 = vrot.slane %v1349_v7, 2  ;;  %v1377_v43 = vsel %vm1003_vm1, %v1375_v10, %v1376_v51  ;;  %v2985_v0 = vadd.f32 %v2977_v39, %v1332_v1  ;;  %v2988_v31 = vadd.f32 %v2977_v39, %v1333_v17  ;;  %v3392_v10 = vld [vmem:[#allocation13_spill] sm:$0xff] }
  0xc5   : > { %v2991_v20 = vadd.f32 %v2977_v39, %v1334_v35  ;;  %v1338_v38 = vadd.f32 %v1320_v19, %v2874_v15  ;;  %v1350_v3 = vmul.f32 %v2865_v29, %v3386_v42  ;;  %v1380_v32 = vsel %vm1003_vm1, %v1378_v26, %v1379_v53 }
  0xc6   : > { %v2998_v60 = vadd.f32 %v2977_v39, %v1335_v9  ;;  %v1351_v45 = vmul.f32 %v2865_v29, %v3338_v4  ;;  %v1383_v22 = vsel %vm1003_vm1, %v1381_v37, %v1382_v52  ;;  %v1404_v55 = vadd.f32 %v1374_v16, %v2911_v25  ;;  %v3393_v9 = vld [vmem:[#allocation14_spill] sm:$0xff]  ;;  %v3394_v37 = vld [vmem:[#allocation15_spill] sm:$0xff] }
  0xc7   : > { %v3005_v61 = vadd.f32 %v2977_v39, %v1336_v2  ;;  %v3387_v15 = vunpack.c.l.bf16 %v3369_v48  ;;  %v1353_v40 = vmul.f32 %v2865_v29, %v3371_v27  ;;  %v1386_v63 = vsel %vm1003_vm1, %v1384_v59, %v1385_v11 }
  0xc8   : > { %v1405_v62 = vadd.f32 %v1377_v43, %v2914_v58  ;;  %v1406_v4 = vadd.f32 %v1380_v32, %v2917_v14  ;;  %v1729_v47 = vmul.f32 -1.442695, %v2985_v0  ;;  %v1730_v25 = vmul.f32 -1.442695, %v2988_v31 }
  0xc9   : > { %v1352_v8 = vmul.f32 %v2865_v29, %v3387_v15  ;;  %v1731_v18 = vmul.f32 -1.442695, %v2991_v20  ;;  %v3389_v1 = vunpack.c.l.bf16 %v3388_v36  ;;  %v3391_v12 = vunpack.c.l.bf16 %v3390_v6 }
  0xca   : > { %v1407_v41 = vadd.f32 %v1383_v22, %v2924_v44  ;;  %v1732_v58 = vmul.f32 -1.442695, %v2998_v60  ;;  %v1408_v14 = vadd.f32 %v1386_v63, %v2927_v30  ;;  %v3028_v33 = vadd.f32 %v2977_v39, %v1404_v55 }
  0xcb   : > { %v1354_v48 = vmul.f32 %v2865_v29, %v3389_v1  ;;  %v1355_v27 = vmul.f32 %v2865_v29, %v3391_v12  ;;  %1773 = vpow2.f32 %v1729_v47  ;;  %v1733_v5 = vmul.f32 -1.442695, %v3005_v61 }
  0xcc   : > { %v1339_v54 = vadd.f32 %v1323_v57, %v2877_v24  ;;  %v1387_v7 = vrot.slane %v1350_v3, 2  ;;  %v3033_v13 = vadd.f32 %v2977_v39, %v1405_v62  ;;  %1775 = vpow2.f32 %v1730_v25 }
  0xcd   : > { %v1388_v29 = vrot.slane %v1351_v45, 2  ;;  %v1390_v50 = vrot.slane %v1352_v8, 2  ;;  %v3036_v44 = vadd.f32 %v2977_v39, %v1406_v4  ;;  %1777 = vpow2.f32 %v1731_v18 }
  0xce   : > { %v1391_v30 = vrot.slane %v1353_v40, 2  ;;  %v1393_v21 = vrot.slane %v1354_v48, 2  ;;  %v3039_v17 = vadd.f32 %v2977_v39, %v1407_v41  ;;  %1779 = vpow2.f32 %v1732_v58 }
  0xcf   : > { %v1394_v49 = vrot.slane %v1355_v27, 2  ;;  %v3042_v24 = vadd.f32 %v2977_v39, %v1408_v14  ;;  %1781 = vpow2.f32 %v1733_v5  ;;  %v1737_v35 = vmul.f32 -1.442695, %v3028_v33 }
  0xd0   : > { %v1261_v51 = vadd.f32 %v2885_v23, %v3392_v10  ;;  %v3048_v19 = vadd.f32 %v2977_v39, %v1337_v46  ;;  %v1738_v34 = vmul.f32 -1.442695, %v3033_v13  ;;  %v1262_v26 = vadd.f32 %v2908_v56, %v3393_v9 }
  0xd1   : > { %v1389_v53 = vsel %vm1003_vm1, %v1387_v7, %v1388_v29  ;;  %v3055_v57 = vadd.f32 %v2977_v39, %v1338_v38  ;;  %v1739_v2 = vmul.f32 -1.442695, %v3036_v44  ;;  %v1263_v52 = vadd.f32 %v2935_v28, %v3394_v37 }
  0xd2   : > { %v1392_v23 = vsel %vm1003_vm1, %v1390_v50, %v1391_v30  ;;  %v3062_v46 = vadd.f32 %v2977_v39, %v1339_v54  ;;  %v1740_v16 = vmul.f32 -1.442695, %v3039_v17  ;;  %v1395_v59 = vsel %vm1003_vm1, %v1393_v21, %v1394_v49 }
  0xd3   : > { %1783 = vpow2.f32 %v1737_v35  ;;  %v1741_v56 = vmul.f32 -1.442695, %v3042_v24  ;;  %v1409_v11 = vadd.f32 %v1389_v53, %v1261_v51  ;;  %v1734_v43 = vmul.f32 -1.442695, %v3048_v19 }
  0xd4   : > { %1785 = vpow2.f32 %v1738_v34  ;;  %v1410_v42 = vadd.f32 %v1392_v23, %v1262_v26  ;;  %v1735_v28 = vmul.f32 -1.442695, %v3055_v57  ;;  %v1411_v32 = vadd.f32 %v1395_v59, %v1263_v52 }
  0xd5   : > { %v1774_v38 = vpop.eup %1773  ;;  %1787 = vpow2.f32 %v1739_v2  ;;  %v1736_v45 = vmul.f32 -1.442695, %v3062_v46  ;;  %v3071_v8 = vadd.f32 %v2977_v39, %v1409_v11 }
  0xd6   : > { %v1776_v3 = vpop.eup %1775  ;;  %1789 = vpow2.f32 %v1740_v16  ;;  %v1459_v55 = vadd.f32 1.0, %v1774_v38  ;;  %v3074_v62 = vadd.f32 %v2977_v39, %v1410_v42  ;;  %v3077_v47 = vadd.f32 %v2977_v39, %v1411_v32 }
  0xd7   : > { %v1778_v22 = vpop.eup %1777  ;;  %1791 = vpow2.f32 %v1741_v56  ;;  %v1460_v40 = vadd.f32 1.0, %v1776_v3  ;;  %v1742_v36 = vmul.f32 -1.442695, %v3071_v8 }
  0xd8   : > { %v1780_v15 = vpop.eup %1779  ;;  %1793 = vpow2.f32 %v1734_v43  ;;  %v1461_v4 = vadd.f32 1.0, %v1778_v22  ;;  %v1743_v48 = vmul.f32 -1.442695, %v3074_v62  ;;  %v1744_v12 = vmul.f32 -1.442695, %v3077_v47 }
  0xd9   : > { %v1782_v63 = vpop.eup %1781  ;;  %1795 = vpow2.f32 %v1735_v28  ;;  %v1462_v25 = vadd.f32 1.0, %v1780_v15 }
  0xda   : > { %1797 = vpow2.f32 %v1736_v45  ;;  %v1463_v18 = vadd.f32 1.0, %v1782_v63 }
  0xdb   : > { %1799 = vrcp.f32 %v1459_v55 }
  0xdc   : > { %1801 = vrcp.f32 %v1460_v40 }
  0xdd   : > { %v1784_v1 = vpop.eup %1783  ;;  %1803 = vrcp.f32 %v1461_v4 }
  0xde   : > { %v1786_v6 = vpop.eup %1785  ;;  %1805 = vrcp.f32 %v1462_v25  ;;  %v1515_v41 = vadd.f32 1.0, %v1784_v1 }
  0xdf   : > { %v1788_v27 = vpop.eup %1787  ;;  %1807 = vrcp.f32 %v1463_v18  ;;  %v1516_v58 = vadd.f32 1.0, %v1786_v6 }
  0xe0   : > { %v1790_v39 = vpop.eup %1789  ;;  %1809 = vpow2.f32 %v1742_v36  ;;  %v1517_v5 = vadd.f32 1.0, %v1788_v27 }
  0xe1   : > { %v1792_v14 = vpop.eup %1791  ;;  %1811 = vpow2.f32 %v1743_v48  ;;  %v1518_v7 = vadd.f32 1.0, %v1790_v39 }
  0xe2   : > { %v1794_v54 = vpop.eup %1793  ;;  %1813 = vpow2.f32 %v1744_v12  ;;  %v1519_v50 = vadd.f32 1.0, %v1792_v14 }
  0xe3   : > { %v1796_v29 = vpop.eup %1795  ;;  %1815 = vrcp.f32 %v1515_v41  ;;  %v1464_v49 = vadd.f32 1.0, %v1794_v54 }
  0xe4   : > { %v1798_v30 = vpop.eup %1797  ;;  %1817 = vrcp.f32 %v1516_v58  ;;  %v1465_v10 = vadd.f32 1.0, %v1796_v29 }
  0xe5   : > { %v1800_v21 = vpop.eup %1799  ;;  %1819 = vrcp.f32 %v1517_v5  ;;  %v1466_v34 = vadd.f32 1.0, %v1798_v30 }
  0xe6   : > { %v1802_v35 = vpop.eup %1801  ;;  %1821 = vrcp.f32 %v1518_v7  ;;  %v1483_v23 = vmul.f32 %v1800_v21, %v2985_v0 }
  0xe7   : > { %v1804_v51 = vpop.eup %1803  ;;  %1823 = vrcp.f32 %v1519_v50  ;;  %v1484_v56 = vmul.f32 %v1802_v35, %v2988_v31 }
  0xe8   : > { %v1806_v9 = vpop.eup %1805  ;;  %1825 = vrcp.f32 %v1464_v49  ;;  %v1485_v38 = vmul.f32 %v1804_v51, %v2991_v20 }
  0xe9   : > { %v1808_v26 = vpop.eup %1807  ;;  %1827 = vrcp.f32 %v1465_v10  ;;  %v1486_v3 = vmul.f32 %v1806_v9, %v2998_v60 }
  0xea   : > { %v1810_v53 = vpop.eup %1809  ;;  %1829 = vrcp.f32 %v1466_v34  ;;  %v1487_v45 = vmul.f32 %v1808_v26, %v3005_v61 }
  0xeb   : > { %v1812_v2 = vpop.eup %1811  ;;  %v1520_v37 = vadd.f32 1.0, %v1810_v53 }
  0xec   : > { %v1814_v52 = vpop.eup %1813  ;;  %v1521_v16 = vadd.f32 1.0, %v1812_v2 }
  0xed   : > { %v1816_v59 = vpop.eup %1815  ;;  %v1522_v11 = vadd.f32 1.0, %v1814_v52  ;;  %1831 = vrcp.f32 %v1520_v37 }
  0xee   : > { %v1818_v43 = vpop.eup %1817  ;;  %1833 = vrcp.f32 %v1521_v16  ;;  %v1539_v42 = vmul.f32 %v1816_v59, %v3028_v33 }
  0xef   : > { %v1820_v28 = vpop.eup %1819  ;;  %1835 = vrcp.f32 %v1522_v11  ;;  %v1540_v32 = vmul.f32 %v1818_v43, %v3033_v13 }
  0xf0   : > { %v1822_v0 = vpop.eup %1821  ;;  %v1541_v31 = vmul.f32 %v1820_v28, %v3036_v44  ;;  %v1547_v22 = vmul.f32 %v1539_v42, %v1483_v23 }
  0xf1   : > { %v1824_v55 = vpop.eup %1823  ;;  %v1542_v15 = vmul.f32 %v1822_v0, %v3039_v17  ;;  %v1548_v40 = vmul.f32 %v1540_v32, %v1484_v56 }
  0xf2   : > { %v1543_v20 = vmul.f32 %v1824_v55, %v3042_v24  ;;  %v1549_v33 = vmul.f32 %v1541_v31, %v1485_v38  ;;  %v1555_v63 = vadd.f32 %v1547_v22, %v1483_v23  ;;  %v1826_v4 = vpop.eup %1825 }
  0xf3   : > { %v1550_v60 = vmul.f32 %v1542_v15, %v1486_v3  ;;  %v1556_v25 = vadd.f32 %v1548_v40, %v1484_v56  ;;  %v1828_v18 = vpop.eup %1827  ;;  %v1488_v24 = vmul.f32 %v1826_v4, %v3048_v19 }
  0xf4   : > { %v1551_v13 = vmul.f32 %v1543_v20, %v1487_v45  ;;  %v1557_v36 = vadd.f32 %v1549_v33, %v1485_v38  ;;  %v1563_v1 = vadd.f32 %v1555_v63, %v1539_v42  ;;  %v1830_v61 = vpop.eup %1829  ;;  %v1489_v41 = vmul.f32 %v1828_v18, %v3055_v57 }
  0xf5   : > { %v1558_v44 = vadd.f32 %v1550_v60, %v1486_v3  ;;  %v1564_v17 = vadd.f32 %v1556_v25, %v1540_v32  ;;  %v1490_v5 = vmul.f32 %v1830_v61, %v3062_v46 }
  0xf6   : > { %v1559_v48 = vadd.f32 %v1551_v13, %v1487_v45  ;;  %v1565_v6 = vadd.f32 %v1557_v36, %v1541_v31  ;;  %v1571_v12 = vpack.c.bf16 %v1563_v1, %v1563_v1 }
  0xf7   : > { %v1832_v27 = vpop.eup %1831  ;;  %v1566_v39 = vadd.f32 %v1558_v44, %v1542_v15  ;;  %v1572_v58 = vpack.c.bf16 %v1564_v17, %v1564_v17 }
  0xf8   : > { %v1834_v14 = vpop.eup %1833  ;;  %v1544_v54 = vmul.f32 %v1832_v27, %v3071_v8  ;;  %v1567_v7 = vadd.f32 %v1559_v48, %v1543_v20  ;;  %v1573_v29 = vpack.c.bf16 %v1565_v6, %v1565_v6  ;;  %1580 = vst.msk [vmem:[%s3096_s13] sm:$0xf] %vm1579_vm2, %v1571_v12 }
  0xf9   : > { %v1836_v19 = vpop.eup %1835  ;;  %v1545_v50 = vmul.f32 %v1834_v14, %v3074_v62  ;;  %v1574_v30 = vpack.c.bf16 %v1566_v39, %v1566_v39  ;;  %1581 = vst.msk [vmem:[%s3096_s13 + $0x4] sm:$0xf] %vm1579_vm2, %v1572_v58 }
  0xfa   : > { %v1546_v57 = vmul.f32 %v1836_v19, %v3077_v47  ;;  %v1552_v21 = vmul.f32 %v1544_v54, %v1488_v24  ;;  %v1575_v49 = vpack.c.bf16 %v1567_v7, %v1567_v7  ;;  %1582 = vst.msk [vmem:[%s3096_s13 + $0x8] sm:$0xf] %vm1579_vm2, %v1573_v29 }
  0xfb   : > { %v1553_v46 = vmul.f32 %v1545_v50, %v1489_v41  ;;  %1583 = vst.msk [vmem:[%s3096_s13 + $0xc] sm:$0xf] %vm1579_vm2, %v1574_v30 }
  0xfc   : > { %v1554_v8 = vmul.f32 %v1546_v57, %v1490_v5  ;;  %v1560_v35 = vadd.f32 %v1552_v21, %v1488_v24  ;;  %1584 = vst.msk [vmem:[%s3096_s13 + $0x10] sm:$0xf] %vm1579_vm2, %v1575_v49 }
  0xfd   : > { %v1561_v62 = vadd.f32 %v1553_v46, %v1489_v41 }
  0xfe   : > { %v1562_v10 = vadd.f32 %v1554_v8, %v1490_v5  ;;  %v1568_v51 = vadd.f32 %v1560_v35, %v1544_v54 }
  0xff   : > { %v1569_v34 = vadd.f32 %v1561_v62, %v1545_v50 }
 0x100   : > { %v1570_v9 = vadd.f32 %v1562_v10, %v1546_v57  ;;  %v1576_v47 = vpack.c.bf16 %v1568_v51, %v1568_v51 }
 0x101   : > { %v1577_v26 = vpack.c.bf16 %v1569_v34, %v1569_v34 }
 0x102   : > { %v1578_v53 = vpack.c.bf16 %v1570_v9, %v1570_v9  ;;  %1585 = vst.msk [vmem:[%s3096_s13 + $0x14] sm:$0xf] %vm1579_vm2, %v1576_v47 }
 0x103   : > { %1586 = vst.msk [vmem:[%s3096_s13 + $0x18] sm:$0xf] %vm1579_vm2, %v1577_v26 }
 0x104   : > { %1587 = vst.msk [vmem:[%s3096_s13 + $0x1c] sm:$0xf] %vm1579_vm2, %v1578_v53 }
 0x105 PF: > { %s14_s17 = sadd.s32 1, %s1860_s17   ;;  %s3395_s15 = smov %s1856_s16 }
 0x106   : > { %p11_p5 = scmp.ge.s32.totalorder %s14_s17, 4   ;;  %s3396_s16 = smov %s3398_s18 }
 0x108   :  { %13 = sbr.rel (!%p11_p5) target bundleno = 2 (0x2), region = 75 }

// kernel: ss2d_cross_forward.9
= control target key start
LH: loop header
LB: loop body
LE: loop exit
PB: predicated region body
PF: predicated region fallthrough
CT: control target
= control target key end

     0   :  { %vm54_vm0 = vcmask 261120   ;;  %s1675_s0 = inlined_call_operand.vmem [shape: bf16[128,32], index: 0, kind: input, shape index: {}]   ;;  %s1676_s1 = inlined_call_operand.vmem [shape: bf16[128,32], index: 1, kind: input, shape index: {}]   ;;  %s1677_s2 = inlined_call_operand.vmem [shape: f32[1,32], index: 2, kind: input, shape index: {}]   ;;  %s1678_s3 = inlined_call_operand.vmem [shape: f32[1,32], index: 3, kind: input, shape index: {}]   ;;  %s1679_s4 = inlined_call_operand.vmem [shape: bf16[32,128], index: 4, kind: input, shape index: {}]   ;;  %s1680_s5 = inlined_call_operand.hbm [shape: f32[128,128], index: 5, kind: output, shape index: {}]  }
   0x1   :  { %v1156_v0 = vld [vmem:[%s1675_s0] sm:$0xff]   ;;  %v1170_v6 = vld [vmem:[%s1675_s0 + $0x8] sm:$0xff]  }
   0x2   :  { %v1161_v1 = vld [vmem:[%s1675_s0 + $0x20] sm:$0xff]   ;;  %v821_v2 = vunpack.c.l.bf16 %v1156_v0  ;;  %v822_v4 = vunpack.c.h.bf16 %v1156_v0  ;;  %v825_v11 = vunpack.c.l.bf16 %v1170_v6  ;;  %v826_v12 = vunpack.c.h.bf16 %v1170_v6 }
   0x3   :  { %v837_v3 = vunpack.c.l.bf16 %v1161_v1  ;;  %v838_v5 = vunpack.c.h.bf16 %v1161_v1 }
   0x4   :  { %v55_v7 = vsel %vm54_vm0, %v821_v2, 0.0  ;;  %v58_v9 = vsel %vm54_vm0, %v822_v4, 0.0 }
   0x5   :  { %v79_v8 = vsel %vm54_vm0, %v837_v3, 0.0  ;;  %56 = vadd.xlane.f32.xlu0 %v55_v7  ;;  %v82_v10 = vsel %vm54_vm0, %v838_v5, 0.0 }
   0x6   :  { %80 = vadd.xlane.f32.xlu1 %v79_v8 }
   0x7   :  { %10 = vsyncpa [#allocation3], 0  ;;  %v1185_v13 = vld [vmem:[%s1675_s0 + $0x28] sm:$0xff]   ;;  %v61_v14 = vsel %vm54_vm0, %v825_v11, 0.0  ;;  %v64_v15 = vsel %vm54_vm0, %v826_v12, 0.0  ;;  %v1198_v18 = vld [vmem:[%s1675_s0 + $0x10] sm:$0xff]  }
   0x8   :  { %v841_v16 = vunpack.c.l.bf16 %v1185_v13  ;;  %v842_v17 = vunpack.c.h.bf16 %v1185_v13  ;;  %v829_v21 = vunpack.c.l.bf16 %v1198_v18  ;;  %v830_v22 = vunpack.c.h.bf16 %v1198_v18  ;;  %v1211_v23 = vld [vmem:[%s1675_s0 + $0x30] sm:$0xff]   ;;  %v1224_v28 = vld [vmem:[%s1675_s0 + $0x18] sm:$0xff]  }
   0x9   :  { %59 = vadd.xlane.f32.xlu0 %v58_v9  ;;  %v845_v26 = vunpack.c.l.bf16 %v1211_v23  ;;  %v846_v27 = vunpack.c.h.bf16 %v1211_v23  ;;  %v833_v31 = vunpack.c.l.bf16 %v1224_v28  ;;  %v834_v32 = vunpack.c.h.bf16 %v1224_v28  ;;  %v1237_v33 = vld [vmem:[%s1675_s0 + $0x38] sm:$0xff]  }
   0xa   :  { %83 = vadd.xlane.f32.xlu1 %v82_v10  ;;  %v85_v19 = vsel %vm54_vm0, %v841_v16, 0.0  ;;  %v88_v20 = vsel %vm54_vm0, %v842_v17, 0.0  ;;  %v67_v24 = vsel %vm54_vm0, %v829_v21, 0.0  ;;  %v70_v25 = vsel %vm54_vm0, %v830_v22, 0.0 }
   0xb   :  { %v91_v29 = vsel %vm54_vm0, %v845_v26, 0.0  ;;  %v94_v30 = vsel %vm54_vm0, %v846_v27, 0.0  ;;  %v73_v34 = vsel %vm54_vm0, %v833_v31, 0.0  ;;  %v76_v35 = vsel %vm54_vm0, %v834_v32, 0.0 }
   0xc   :  { %v849_v36 = vunpack.c.l.bf16 %v1237_v33  ;;  %v850_v37 = vunpack.c.h.bf16 %v1237_v33 }
   0xd   :  { %62 = vadd.xlane.f32.xlu0 %v61_v14 }
   0xe   :  { %65 = vadd.xlane.f32.xlu1 %v64_v15  ;;  %v97_v38 = vsel %vm54_vm0, %v849_v36, 0.0  ;;  %v100_v39 = vsel %vm54_vm0, %v850_v37, 0.0 }
  0x11   :  { %86 = vadd.xlane.f32.xlu0 %v85_v19 }
  0x12   :  { %89 = vadd.xlane.f32.xlu1 %v88_v20 }
  0x15   :  { %68 = vadd.xlane.f32.xlu0 %v67_v24 }
  0x16   :  { %71 = vadd.xlane.f32.xlu1 %v70_v25 }
  0x19   :  { %92 = vadd.xlane.f32.xlu0 %v91_v29 }
  0x1a   :  { %95 = vadd.xlane.f32.xlu1 %v94_v30 }
  0x1d   :  { %74 = vadd.xlane.f32.xlu0 %v73_v34 }
  0x1e   :  { %77 = vadd.xlane.f32.xlu1 %v76_v35 }
  0x21   :  { %98 = vadd.xlane.f32.xlu0 %v97_v38 }
  0x22   :  { %101 = vadd.xlane.f32.xlu1 %v100_v39 }
  0x92   :  { %v57_v40 = vpop.xlane.xlu0 %56 }
  0x93   :  { %v81_v41 = vpop.xlane.xlu1 %80  ;;  %v104_v42 = vmul.f32 0.03125, %v57_v40 }
  0x94   :  { %v112_v43 = vmul.f32 0.03125, %v81_v41 }
  0x95   :  { %v1253_v44 = vsub.f32 %v821_v2, %v104_v42 }
  0x96   :  { %v1255_v45 = vsub.f32 %v837_v3, %v112_v43  ;;  %v60_v46 = vpop.xlane.xlu0 %59 }
  0x97   :  { %v84_v47 = vpop.xlane.xlu1 %83  ;;  %v105_v48 = vmul.f32 0.03125, %v60_v46  ;;  %v136_v50 = vmul.f32 %v1253_v44, %v1253_v44 }
  0x98   :  { %v113_v49 = vmul.f32 0.03125, %v84_v47  ;;  %v144_v51 = vmul.f32 %v1255_v45, %v1255_v45 }
  0x99   :  { %v1263_v52 = vsub.f32 %v822_v4, %v105_v48  ;;  %v152_v54 = vsel %vm54_vm0, %v136_v50, 0.0 }
  0x9a   :  { %v1267_v53 = vsub.f32 %v838_v5, %v113_v49  ;;  %153 = vadd.xlane.f32.xlu0 %v152_v54  ;;  %v63_v55 = vpop.xlane.xlu0 %62  ;;  %v176_v57 = vsel %vm54_vm0, %v144_v51, 0.0 }
  0x9b   :  { %v66_v56 = vpop.xlane.xlu1 %65  ;;  %v106_v58 = vmul.f32 0.03125, %v63_v55  ;;  %v137_v60 = vmul.f32 %v1263_v52, %v1263_v52 }
  0x9c   :  { %v107_v59 = vmul.f32 0.03125, %v66_v56  ;;  %v145_v61 = vmul.f32 %v1267_v53, %v1267_v53 }
  0x9d   :  { %v1277_v62 = vsub.f32 %v825_v11, %v106_v58  ;;  %v155_v0 = vsel %vm54_vm0, %v137_v60, 0.0 }
  0x9e   :  { %v1281_v63 = vsub.f32 %v826_v12, %v107_v59  ;;  %177 = vadd.xlane.f32.xlu0 %v176_v57  ;;  %156 = vadd.xlane.f32.xlu1 %v155_v0  ;;  %v87_v1 = vpop.xlane.xlu0 %86  ;;  %v179_v3 = vsel %vm54_vm0, %v145_v61, 0.0  ;;  %v1370_v0 = vld [vmem:[%s1676_s1] sm:$0xff]  }
  0x9f   :  { %v90_v2 = vpop.xlane.xlu1 %89  ;;  %v114_v4 = vmul.f32 0.03125, %v87_v1  ;;  %v138_v7 = vmul.f32 %v1277_v62, %v1277_v62  ;;  %v853_v1 = vunpack.c.l.bf16 %v1370_v0 }
  0xa0   :  { %v115_v5 = vmul.f32 0.03125, %v90_v2  ;;  %v139_v8 = vmul.f32 %v1281_v63, %v1281_v63  ;;  %v1376_v2 = vld [vmem:[%s1676_s1 + $0x20] sm:$0xff]  }
  0xa1   :  { %v1291_v6 = vsub.f32 %v841_v16, %v114_v4  ;;  %v158_v10 = vsel %vm54_vm0, %v138_v7, 0.0  ;;  %v777_v4 = vmul.f32 -1.442695, %v853_v1  ;;  %v1385_v7 = vld [vmem:[%s1676_s1 + $0x8] sm:$0xff]  }
  0xa2   :  { %v1295_v9 = vsub.f32 %v842_v17, %v115_v5  ;;  %180 = vadd.xlane.f32.xlu1 %v179_v3  ;;  %159 = vadd.xlane.f32.xlu0 %v158_v10  ;;  %v69_v11 = vpop.xlane.xlu0 %68  ;;  %v161_v14 = vsel %vm54_vm0, %v139_v8, 0.0  ;;  %v854_v3 = vunpack.c.h.bf16 %v1370_v0  ;;  %v869_v5 = vunpack.c.l.bf16 %v1376_v2 }
  0xa3   :  { %v72_v12 = vpop.xlane.xlu1 %71  ;;  %v108_v15 = vmul.f32 0.03125, %v69_v11  ;;  %v146_v20 = vmul.f32 %v1291_v6, %v1291_v6  ;;  %v870_v10 = vunpack.c.h.bf16 %v1376_v2  ;;  %936 = vpow2.f32 %v777_v4 }
  0xa4   :  { %v109_v19 = vmul.f32 0.03125, %v72_v12  ;;  %v147_v16 = vmul.f32 %v1295_v9, %v1295_v9  ;;  %v778_v8 = vmul.f32 -1.442695, %v854_v3  ;;  %v785_v11 = vmul.f32 -1.442695, %v869_v5 }
  0xa5   :  { %v1305_v13 = vsub.f32 %v829_v21, %v108_v15  ;;  %v182_v24 = vsel %vm54_vm0, %v146_v20, 0.0  ;;  %v857_v12 = vunpack.c.l.bf16 %v1385_v7  ;;  %v786_v15 = vmul.f32 -1.442695, %v870_v10 }
  0xa6   :  { %v1309_v17 = vsub.f32 %v830_v22, %v109_v19  ;;  %162 = vadd.xlane.f32.xlu1 %v161_v14  ;;  %183 = vadd.xlane.f32.xlu0 %v182_v24  ;;  %v93_v25 = vpop.xlane.xlu0 %92  ;;  %v185_v30 = vsel %vm54_vm0, %v147_v16, 0.0  ;;  %v1396_v14 = vld [vmem:[%s1676_s1 + $0x28] sm:$0xff]   ;;  %938 = vpow2.f32 %v778_v8  ;;  %v858_v19 = vunpack.c.h.bf16 %v1385_v7 }
  0xa7   :  { %v96_v29 = vpop.xlane.xlu1 %95  ;;  %v116_v34 = vmul.f32 0.03125, %v93_v25  ;;  %v140_v38 = vmul.f32 %v1305_v13, %v1305_v13  ;;  %940 = vpow2.f32 %v785_v11  ;;  %v779_v20 = vmul.f32 -1.442695, %v857_v12 }
  0xa8   :  { %v117_v35 = vmul.f32 0.03125, %v96_v29  ;;  %v141_v21 = vmul.f32 %v1309_v17, %v1309_v17  ;;  %v873_v16 = vunpack.c.l.bf16 %v1396_v14  ;;  %942 = vpow2.f32 %v786_v15 }
  0xa9   :  { %v1319_v18 = vsub.f32 %v845_v26, %v116_v34  ;;  %v164_v39 = vsel %vm54_vm0, %v140_v38, 0.0  ;;  %v780_v24 = vmul.f32 -1.442695, %v858_v19  ;;  %v874_v25 = vunpack.c.h.bf16 %v1396_v14 }
  0xaa   :  { %v1323_v22 = vsub.f32 %v846_v27, %v117_v35  ;;  %186 = vadd.xlane.f32.xlu1 %v185_v30  ;;  %165 = vadd.xlane.f32.xlu0 %v164_v39  ;;  %v75_v40 = vpop.xlane.xlu0 %74  ;;  %v167_v42 = vsel %vm54_vm0, %v141_v21, 0.0  ;;  %944 = vpow2.f32 %v779_v20  ;;  %v787_v29 = vmul.f32 -1.442695, %v873_v16  ;;  %v1412_v30 = vld [vmem:[%s1676_s1 + $0x10] sm:$0xff]  }
  0xab   :  { %v78_v41 = vpop.xlane.xlu1 %77  ;;  %v110_v43 = vmul.f32 0.03125, %v75_v40  ;;  %v148_v47 = vmul.f32 %v1319_v18, %v1319_v18  ;;  %946 = vpow2.f32 %v780_v24  ;;  %v788_v35 = vmul.f32 -1.442695, %v874_v25 }
  0xac   :  { %v111_v46 = vmul.f32 0.03125, %v78_v41  ;;  %v149_v26 = vmul.f32 %v1323_v22, %v1323_v22  ;;  %v861_v38 = vunpack.c.l.bf16 %v1412_v30  ;;  %948 = vpow2.f32 %v787_v29 }
  0xad   :  { %v1333_v23 = vsub.f32 %v833_v31, %v110_v43  ;;  %v188_v48 = vsel %vm54_vm0, %v148_v47, 0.0  ;;  %v937_v34 = vpop.eup %936  ;;  %950 = vpow2.f32 %v788_v35  ;;  %v862_v41 = vunpack.c.h.bf16 %v1412_v30  ;;  %v1423_v43 = vld [vmem:[%s1676_s1 + $0x30] sm:$0xff]  }
  0xae   :  { %v1337_v27 = vsub.f32 %v834_v32, %v111_v46  ;;  %168 = vadd.xlane.f32.xlu1 %v167_v42  ;;  %189 = vadd.xlane.f32.xlu0 %v188_v48  ;;  %v99_v49 = vpop.xlane.xlu0 %98  ;;  %v191_v51 = vsel %vm54_vm0, %v149_v26, 0.0  ;;  %v390_v39 = vadd.f32 1.0, %v937_v34  ;;  %v781_v42 = vmul.f32 -1.442695, %v861_v38 }
  0xaf   :  { %v102_v50 = vpop.xlane.xlu1 %101  ;;  %v118_v54 = vmul.f32 0.03125, %v99_v49  ;;  %v142_v56 = vmul.f32 %v1333_v23, %v1333_v23  ;;  %v877_v49 = vunpack.c.l.bf16 %v1423_v43 }
  0xb0   :  { %v119_v55 = vmul.f32 0.03125, %v102_v50  ;;  %v143_v31 = vmul.f32 %v1337_v27, %v1337_v27  ;;  %v939_v21 = vpop.eup %938  ;;  %952 = vrcp.f32 %v390_v39  ;;  %v782_v50 = vmul.f32 -1.442695, %v862_v41 }
  0xb1   :  { %v1347_v28 = vsub.f32 %v849_v36, %v118_v54  ;;  %v170_v57 = vsel %vm54_vm0, %v142_v56, 0.0  ;;  %v934_v36 = vld [vmem:[%s1679_s4] sm:$0xff]   ;;  %v941_v40 = vpop.eup %940  ;;  %v391_v46 = vadd.f32 1.0, %v939_v21  ;;  %954 = vpow2.f32 %v781_v42  ;;  %v1432_v54 = vld [vmem:[%s1676_s1 + $0x18] sm:$0xff]  }
  0xb2   :  { %v1351_v32 = vsub.f32 %v850_v37, %v119_v55  ;;  %192 = vadd.xlane.f32.xlu1 %v191_v51  ;;  %171 = vadd.xlane.f32.xlu0 %v170_v57  ;;  %v173_v58 = vsel %vm54_vm0, %v143_v31, 0.0  ;;  %v935_v37 = vld [vmem:[%s1679_s4 + $0x8] sm:$0xff]   ;;  %v943_v47 = vpop.eup %942  ;;  %v398_v26 = vadd.f32 1.0, %v941_v40  ;;  %v878_v51 = vunpack.c.h.bf16 %v1423_v43 }
  0xb3   :  { %v150_v59 = vmul.f32 %v1347_v28, %v1347_v28  ;;  %907 = vmatprep.subr.bf16.mxu0 %v934_v36  ;;  %927 = vmatprep.subr.bf16.mxu1 %v934_v36  ;;  %956 = vrcp.f32 %v391_v46  ;;  %v399_v55 = vadd.f32 1.0, %v943_v47 }
  0xb4   :  { %v151_v60 = vmul.f32 %v1351_v32, %v1351_v32  ;;  %908 = vmatpush3.bf16.msra.mxu0 %v934_v36  ;;  %929 = vmatpush3.bf16.msra.mxu1 %v934_v36  ;;  %v945_v48 = vpop.eup %944  ;;  %958 = vrcp.f32 %v398_v26  ;;  %v1443_v36 = vld [vmem:[%s1676_s1 + $0x38] sm:$0xff]  }
  0xb5   :  { %v194_v61 = vsel %vm54_vm0, %v150_v59, 0.0  ;;  %909 = vmatprep.subr.bf16.mxu0 %v935_v37  ;;  %928 = vmatprep.subr.bf16.mxu1 %v935_v37  ;;  %v947_v56 = vpop.eup %946  ;;  %v392_v31 = vadd.f32 1.0, %v945_v48  ;;  %v865_v59 = vunpack.c.l.bf16 %v1432_v54  ;;  %960 = vpow2.f32 %v782_v50 }
  0xb6   :  { %174 = vadd.xlane.f32.xlu1 %v173_v58  ;;  %195 = vadd.xlane.f32.xlu0 %v194_v61  ;;  %v197_v33 = vsel %vm54_vm0, %v151_v60, 0.0  ;;  %v949_v57 = vpop.eup %948  ;;  %v789_v58 = vmul.f32 -1.442695, %v877_v49  ;;  %v790_v60 = vmul.f32 -1.442695, %v878_v51  ;;  %v866_v61 = vunpack.c.h.bf16 %v1432_v54 }
  0xb7   :  { %962 = vrcp.f32 %v399_v55  ;;  %v400_v4 = vadd.f32 1.0, %v949_v57  ;;  %v783_v8 = vmul.f32 -1.442695, %v865_v59  ;;  %v881_v20 = vunpack.c.l.bf16 %v1443_v36 }
  0xb8   :  { %910 = vmatpush3.bf16.msra.mxu0 %v935_v37  ;;  %930 = vmatpush3.bf16.msra.mxu1 %v935_v37  ;;  %v951_v37 = vpop.eup %950  ;;  %964 = vrcp.f32 %v392_v31  ;;  %v784_v15 = vmul.f32 -1.442695, %v866_v61  ;;  %v882_v39 = vunpack.c.h.bf16 %v1443_v36 }
  0xb9   :  { %966 = vpow2.f32 %v789_v58  ;;  %v401_v24 = vadd.f32 1.0, %v951_v37  ;;  %v791_v40 = vmul.f32 -1.442695, %v881_v20 }
  0xba   :  { %198 = vadd.xlane.f32.xlu1 %v197_v33  ;;  %v393_v33 = vadd.f32 1.0, %v947_v56  ;;  %v953_v11 = vpop.eup %952  ;;  %968 = vpow2.f32 %v790_v60  ;;  %v792_v55 = vmul.f32 -1.442695, %v882_v39 }
  0xbb   :  { %v955_v29 = vpop.eup %954  ;;  %v1452_v35 = vmul.f32 %v953_v11, %v853_v1 }
  0xbc   :  { %970 = vrcp.f32 %v393_v33  ;;  %v394_v42 = vadd.f32 1.0, %v955_v29 }
  0xbd   :  { %972 = vrcp.f32 %v400_v4  ;;  %v957_v34 = vpop.eup %956  ;;  %v793_v48 = vmul.f32 -1.442695, %v1452_v35 }
  0xbe   :  { %974 = vpow2.f32 %v783_v8  ;;  %v959_v21 = vpop.eup %958  ;;  %v1459_v47 = vmul.f32 %v957_v34, %v854_v3 }
  0xbf   :  { %976 = vpow2.f32 %v784_v15  ;;  %v961_v46 = vpop.eup %960  ;;  %v1464_v1 = vmul.f32 %v959_v21, %v869_v5 }
  0xc0   :  { %978 = vrcp.f32 %v401_v24  ;;  %v395_v31 = vadd.f32 1.0, %v961_v46  ;;  %v794_v0 = vmul.f32 -1.442695, %v1459_v47 }
  0xc1   :  { %v963_v26 = vpop.eup %962  ;;  %980 = vpow2.f32 %v791_v40  ;;  %v801_v5 = vmul.f32 -1.442695, %v1464_v1 }
  0xc2   :  { %v965_v50 = vpop.eup %964  ;;  %982 = vrcp.f32 %v394_v42  ;;  %v1471_v3 = vmul.f32 %v963_v26, %v870_v10 }
  0xc3   :  { %v967_v56 = vpop.eup %966  ;;  %984 = vpow2.f32 %v793_v48  ;;  %v1476_v60 = vmul.f32 %v965_v50, %v857_v12 }
  0xc4   :  { %v969_v57 = vpop.eup %968  ;;  %v402_v37 = vadd.f32 1.0, %v967_v56  ;;  %986 = vpow2.f32 %v792_v55  ;;  %v802_v2 = vmul.f32 -1.442695, %v1471_v3 }
  0xc5   :  { %988 = vrcp.f32 %v395_v31  ;;  %v403_v8 = vadd.f32 1.0, %v969_v57  ;;  %v795_v24 = vmul.f32 -1.442695, %v1476_v60 }
  0xc6   :  { %v971_v58 = vpop.eup %970  ;;  %990 = vpow2.f32 %v794_v0 }
  0xc7   :  { %v973_v33 = vpop.eup %972  ;;  %v1481_v10 = vmul.f32 %v971_v58, %v858_v19  ;;  %992 = vpow2.f32 %v801_v5 }
  0xc8   :  { %v975_v4 = vpop.eup %974  ;;  %v1486_v12 = vmul.f32 %v973_v33, %v873_v16  ;;  %994 = vrcp.f32 %v402_v37 }
  0xc9   :  { %v977_v11 = vpop.eup %976  ;;  %v396_v29 = vadd.f32 1.0, %v975_v4  ;;  %996 = vrcp.f32 %v403_v8  ;;  %v796_v40 = vmul.f32 -1.442695, %v1481_v10 }
  0xca   :  { %v979_v15 = vpop.eup %978  ;;  %v397_v34 = vadd.f32 1.0, %v977_v11  ;;  %998 = vpow2.f32 %v802_v2  ;;  %v803_v42 = vmul.f32 -1.442695, %v1486_v12 }
  0xcb   :  { %v981_v21 = vpop.eup %980  ;;  %v1491_v7 = vmul.f32 %v979_v15, %v874_v25  ;;  %1000 = vpow2.f32 %v795_v24 }
  0xcc   :  { %v983_v19 = vpop.eup %982  ;;  %1002 = vrcp.f32 %v396_v29  ;;  %v404_v16 = vadd.f32 1.0, %v981_v21 }
  0xcd   :  { %v985_v46 = vpop.eup %984  ;;  %1004 = vrcp.f32 %v397_v34  ;;  %v804_v48 = vmul.f32 -1.442695, %v1491_v7  ;;  %v1497_v50 = vmul.f32 %v983_v19, %v861_v38 }
  0xce   :  { %v987_v26 = vpop.eup %986  ;;  %1006 = vpow2.f32 %v796_v40  ;;  %v502_v5 = vadd.f32 1.0, %v985_v46 }
  0xcf   :  { %v989_v55 = vpop.eup %988  ;;  %1008 = vpow2.f32 %v803_v42  ;;  %v405_v56 = vadd.f32 1.0, %v987_v26  ;;  %v797_v0 = vmul.f32 -1.442695, %v1497_v50 }
  0xd0   :  { %v991_v14 = vpop.eup %990  ;;  %1010 = vrcp.f32 %v404_v16  ;;  %v1501_v57 = vmul.f32 %v989_v55, %v862_v41 }
  0xd1   :  { %v993_v25 = vpop.eup %992  ;;  %1012 = vpow2.f32 %v804_v48  ;;  %v503_v37 = vadd.f32 1.0, %v991_v14 }
  0xd2   :  { %v995_v31 = vpop.eup %994  ;;  %v510_v4 = vadd.f32 1.0, %v993_v25  ;;  %1014 = vrcp.f32 %v405_v56  ;;  %v798_v2 = vmul.f32 -1.442695, %v1501_v57 }
  0xd3   :  { %v997_v58 = vpop.eup %996  ;;  %v1506_v8 = vmul.f32 %v995_v31, %v877_v49  ;;  %1016 = vpow2.f32 %v797_v0 }
  0xd4   :  { %v999_v33 = vpop.eup %998  ;;  %v1511_v30 = vmul.f32 %v997_v58, %v878_v51  ;;  %1018 = vrcp.f32 %v502_v5 }
  0xd5   :  { %v1001_v38 = vpop.eup %1000  ;;  %v511_v15 = vadd.f32 1.0, %v999_v33  ;;  %1020 = vrcp.f32 %v503_v37  ;;  %v805_v49 = vmul.f32 -1.442695, %v1506_v8 }
  0xd6   :  { %v1003_v11 = vpop.eup %1002  ;;  %v504_v29 = vadd.f32 1.0, %v1001_v38  ;;  %1022 = vrcp.f32 %v510_v4  ;;  %v806_v40 = vmul.f32 -1.442695, %v1511_v30 }
  0xd7   :  { %v1005_v41 = vpop.eup %1004  ;;  %v1516_v21 = vmul.f32 %v1003_v11, %v865_v59  ;;  %1024 = vpow2.f32 %v798_v2 }
  0xd8   :  { %v1007_v24 = vpop.eup %1006  ;;  %v1521_v43 = vmul.f32 %v1005_v41, %v866_v61  ;;  %1026 = vrcp.f32 %v511_v15 }
  0xd9   :  { %v1009_v34 = vpop.eup %1008  ;;  %v505_v19 = vadd.f32 1.0, %v1007_v24  ;;  %1028 = vrcp.f32 %v504_v29  ;;  %v799_v16 = vmul.f32 -1.442695, %v1516_v21 }
  0xda   :  { %v1011_v51 = vpop.eup %1010  ;;  %v512_v46 = vadd.f32 1.0, %v1009_v34  ;;  %1030 = vpow2.f32 %v805_v49  ;;  %v800_v59 = vmul.f32 -1.442695, %v1521_v43 }
  0xdb   :  { %v1013_v42 = vpop.eup %1012  ;;  %1032 = vpow2.f32 %v806_v40  ;;  %v1527_v26 = vmul.f32 %v1011_v51, %v881_v20 }
  0xdc   :  { %v1015_v48 = vpop.eup %1014  ;;  %1034 = vrcp.f32 %v505_v19  ;;  %v513_v61 = vadd.f32 1.0, %v1013_v42 }
  0xdd   :  { %v1017_v55 = vpop.eup %1016  ;;  %1036 = vrcp.f32 %v512_v46  ;;  %v1531_v0 = vmul.f32 %v1015_v48, %v882_v39  ;;  %v807_v58 = vmul.f32 -1.442695, %v1527_v26 }
  0xde   :  { %v1019_v25 = vpop.eup %1018  ;;  %1038 = vpow2.f32 %v799_v16  ;;  %v506_v37 = vadd.f32 1.0, %v1017_v55 }
  0xdf   :  { %v1021_v56 = vpop.eup %1020  ;;  %1040 = vpow2.f32 %v800_v59  ;;  %v808_v36 = vmul.f32 -1.442695, %v1531_v0  ;;  %v550_v49 = vmul.f32 %v1019_v25, %v1452_v35 }
  0xe0   :  { %v1023_v20 = vpop.eup %1022  ;;  %1042 = vrcp.f32 %v513_v61  ;;  %v551_v16 = vmul.f32 %v1021_v56, %v1459_v47 }
  0xe1   :  { %v1025_v38 = vpop.eup %1024  ;;  %v558_v59 = vmul.f32 %v1023_v20, %v1464_v1 }
  0xe2   :  { %v1027_v2 = vpop.eup %1026  ;;  %v507_v40 = vadd.f32 1.0, %v1025_v38 }
  0xe3   :  { %v1029_v41 = vpop.eup %1028 }
  0xe4   :  { %v1031_v39 = vpop.eup %1030  ;;  %v552_v20 = vmul.f32 %v1029_v41, %v1476_v60 }
  0xe5   :  { %v1033_v51 = vpop.eup %1032  ;;  %v514_v55 = vadd.f32 1.0, %v1031_v39 }
  0xe6   :  { %v1035_v46 = vpop.eup %1034 }
  0xe7   :  { %v1037_v48 = vpop.eup %1036 }
 0x127   :  { %v154_v54 = vpop.xlane.xlu0 %153 }
 0x128   :  { %v200_v14 = vmul.f32 0.03125, %v154_v54 }
 0x12a   :  { %v216_v31 = vadd.f32 1e-05, %v200_v14  ;;  %v1039_v14 = vpop.eup %1038 }
 0x12b   :  { %v157_v5 = vpop.xlane.xlu1 %156  ;;  %v178_v33 = vpop.xlane.xlu0 %177  ;;  %v508_v41 = vadd.f32 1.0, %v1039_v14 }
 0x12c   :  { %1044 = vrsqrt.f32 %v216_v31  ;;  %v201_v4 = vmul.f32 0.03125, %v157_v5  ;;  %v208_v11 = vmul.f32 0.03125, %v178_v33  ;;  %v559_v5 = vmul.f32 %v1027_v2, %v1471_v3 }
 0x12d   :  { %1046 = vpow2.f32 %v807_v58  ;;  %v1539_v58 = vadd.f32 %v550_v49, %v1452_v35  ;;  %v515_v33 = vadd.f32 1.0, %v1033_v51  ;;  %v1549_v35 = vadd.f32 %v551_v16, %v1459_v47 }
 0x12e   :  { %v217_v15 = vadd.f32 1e-05, %v201_v4  ;;  %v224_v24 = vadd.f32 1e-05, %v208_v11  ;;  %1048 = vrcp.f32 %v506_v37  ;;  %v1041_v37 = vpop.eup %1040  ;;  %v1546_v11 = vld [vmem:[%s1677_s2] ss:$0 sm:$0xff]  ;;  %v1552_v2 = vadd.f32 %v558_v59, %v1464_v1 }
 0x12f   :  { %v181_v29 = vpop.xlane.xlu1 %180  ;;  %v160_v34 = vpop.xlane.xlu0 %159  ;;  %v509_v47 = vadd.f32 1.0, %v1041_v37 }
 0x130   :  { %1050 = vrsqrt.f32 %v217_v15  ;;  %v209_v19 = vmul.f32 0.03125, %v181_v29  ;;  %v202_v42 = vmul.f32 0.03125, %v160_v34  ;;  %v1043_v4 = vpop.eup %1042  ;;  %v553_v15 = vmul.f32 %v1035_v46, %v1481_v10 }
 0x131   :  { %1052 = vrsqrt.f32 %v224_v24  ;;  %v1565_v46 = vadd.f32 %v552_v20, %v1476_v60  ;;  %v561_v59 = vmul.f32 %v1043_v4, %v1491_v7 }
 0x132   :  { %v225_v54 = vadd.f32 1e-05, %v209_v19  ;;  %v218_v61 = vadd.f32 1e-05, %v202_v42  ;;  %1054 = vpow2.f32 %v808_v36  ;;  %v1562_v42 = vld [vmem:[%s1678_s3] ss:$0 sm:$0xff]  ;;  %v1571_v14 = vadd.f32 %v553_v15, %v1481_v10 }
 0x133   :  { %v163_v31 = vpop.xlane.xlu1 %162  ;;  %v184_v25 = vpop.xlane.xlu0 %183  ;;  %1056 = vrcp.f32 %v507_v40  ;;  %v1557_v40 = vadd.f32 %v559_v5, %v1471_v3  ;;  %v560_v3 = vmul.f32 %v1037_v48, %v1486_v12  ;;  %s1120_s3 = smov [#allocation2]  }
 0x134   :  { %1058 = vrsqrt.f32 %v225_v54  ;;  %v203_v56 = vmul.f32 0.03125, %v163_v31  ;;  %v210_v38 = vmul.f32 0.03125, %v184_v25  ;;  %s764_s29 = sshll.u32 %s1120_s3, 4  ;;  %s765_s29 = int_to_ptr.vmem [resolvable:$true] %s764_s29 }
 0x135   :  { %1060 = vrsqrt.f32 %v218_v61  ;;  %v1578_v15 = vadd.f32 %v560_v3, %v1486_v12  ;;  %s1096_s30 = scalar_lea.vmem %s765_s29, 2048  ;;  %p1101_p1 = scmp.lt.s32.totalorder %s765_s29, %s765_s29 }
 0x136   :  { %v1045_v24 = vpop.eup %1044  ;;  %v219_v36 = vadd.f32 1e-05, %v203_v56  ;;  %v226_v39 = vadd.f32 1e-05, %v210_v38  ;;  %1062 = vrcp.f32 %v514_v55  ;;  %p1097_p0 = scmp.ne.s32.totalorder %s765_s29, %s1096_s30  ;;  %p1102_p2 = scmp.lt.s32.totalorder %s1096_s30, %s1096_s30 }
 0x137   :  { %v187_v29 = vpop.xlane.xlu1 %186  ;;  %v166_v34 = vpop.xlane.xlu0 %165  ;;  %v248_v49 = vmul.f32 %v1045_v24, %v1253_v44  ;;  %1064 = vrcp.f32 %v515_v33  ;;  %v1581_v24 = vadd.f32 %v561_v59, %v1491_v7 }
 0x138   :  { %v1047_v51 = vpop.eup %1046  ;;  %1066 = vrsqrt.f32 %v219_v36  ;;  %v211_v1 = vmul.f32 0.03125, %v187_v29  ;;  %v204_v19 = vmul.f32 0.03125, %v166_v34  ;;  %p1103_p3 = por %p1102_p2, %p1101_p1 }
 0x139   :  { %v1049_v16 = vpop.eup %1048  ;;  %1068 = vrsqrt.f32 %v226_v39  ;;  %v271_v44 = vmul.f32 %v1546_v11, %v248_v49  ;;  %v516_v37 = vadd.f32 1.0, %v1047_v51 }
 0x13a   :  { %v1051_v54 = vpop.eup %1050  ;;  %v227_v61 = vadd.f32 1e-05, %v211_v1  ;;  %v220_v55 = vadd.f32 1e-05, %v204_v19  ;;  %1070 = vrcp.f32 %v508_v41  ;;  %v1585_v29 = vmul.f32 %v1049_v16, %v1497_v50  ;;  %p1104_p4 = pnand %p1103_p3, %p1097_p0 }
 0x13b   :  { %v1053_v31 = vpop.eup %1052  ;;  %v169_v25 = vpop.xlane.xlu1 %168  ;;  %v249_v60 = vmul.f32 %v1051_v54, %v1263_v52  ;;  %v294_v33 = vadd.f32 %v1562_v42, %v271_v44  ;;  %1072 = vrcp.f32 %v509_v47 }
 0x13c   :  { %v190_v5 = vpop.xlane.xlu0 %189  ;;  %v1055_v56 = vpop.eup %1054  ;;  %1074 = vrsqrt.f32 %v227_v61  ;;  %v205_v48 = vmul.f32 0.03125, %v169_v25  ;;  %v256_v20 = vmul.f32 %v1053_v31, %v1255_v45 }
 0x13d   :  { %v212_v38 = vmul.f32 0.03125, %v190_v5  ;;  %v1057_v4 = vpop.eup %1056  ;;  %1076 = vrsqrt.f32 %v220_v55  ;;  %v272_v10 = vmul.f32 %v1546_v11, %v249_v60  ;;  %v582_v51 = vmul.f32 %v1539_v58, %v294_v33 }
 0x13e   :  { %v1059_v52 = vpop.eup %1058  ;;  %v221_v36 = vadd.f32 1e-05, %v205_v48  ;;  %v279_v41 = vmul.f32 %v1546_v11, %v256_v20  ;;  %1078 = vrcp.f32 %v516_v37  ;;  %v517_v31 = vadd.f32 1.0, %v1055_v56 }
 0x13f   :  { %v228_v39 = vadd.f32 1e-05, %v212_v38  ;;  %v1061_v34 = vpop.eup %1060  ;;  %v193_v45 = vpop.xlane.xlu1 %192  ;;  %v295_v47 = vadd.f32 %v1562_v42, %v272_v10  ;;  %v257_v12 = vmul.f32 %v1059_v52, %v1267_v53 }
 0x140   :  { %v172_v49 = vpop.xlane.xlu0 %171  ;;  %v1590_v7 = vpop.eup %1062  ;;  %v250_v1 = vmul.f32 %v1061_v34, %v1277_v62  ;;  %1080 = vrsqrt.f32 %v221_v36  ;;  %v213_v19 = vmul.f32 0.03125, %v193_v45  ;;  %v302_v54 = vadd.f32 %v1562_v42, %v279_v41 }
 0x141   :  { %v206_v44 = vmul.f32 0.03125, %v172_v49  ;;  %v1065_v3 = vpop.eup %1064  ;;  %1082 = vrsqrt.f32 %v228_v39  ;;  %v583_v16 = vmul.f32 %v1549_v35, %v295_v47  ;;  %v280_v59 = vmul.f32 %v1546_v11, %v257_v12 }
 0x142   :  { %v1067_v61 = vpop.eup %1066  ;;  %v229_v58 = vadd.f32 1e-05, %v213_v19  ;;  %v273_v53 = vmul.f32 %v1546_v11, %v250_v1  ;;  %v590_v35 = vmul.f32 %v1552_v2, %v302_v54 }
 0x143   :  { %v222_v55 = vadd.f32 1e-05, %v206_v44  ;;  %v1069_v25 = vpop.eup %1068  ;;  %v251_v62 = vmul.f32 %v1067_v61, %v1281_v63  ;;  %v175_v5 = vpop.xlane.xlu1 %174  ;;  %v598_v33 = vpack.c.bf16 %v583_v16, %v582_v51  ;;  %v303_v37 = vadd.f32 %v1562_v42, %v280_v59 }
 0x144   :  { %v196_v60 = vpop.xlane.xlu0 %195  ;;  %v1071_v48 = vpop.eup %1070  ;;  %v258_v38 = vmul.f32 %v1069_v25, %v1291_v6  ;;  %1084 = vrsqrt.f32 %v229_v58  ;;  %v207_v20 = vmul.f32 0.03125, %v175_v5  ;;  %v296_v36 = vadd.f32 %v1562_v42, %v273_v53 }
 0x145   :  { %v214_v10 = vmul.f32 0.03125, %v196_v60  ;;  %v1073_v52 = vpop.eup %1072  ;;  %1086 = vrsqrt.f32 %v222_v55  ;;  %911 = vmatprep.mubr.msk.bf16.mxu0 %vm54_vm0, %v598_v33  ;;  %v591_v56 = vmul.f32 %v1557_v40, %v303_v37  ;;  %v274_v63 = vmul.f32 %v1546_v11, %v251_v62 }
 0x146   :  { %v1075_v39 = vpop.eup %1074  ;;  %v223_v41 = vadd.f32 1e-05, %v207_v20  ;;  %v281_v2 = vmul.f32 %v1546_v11, %v258_v38  ;;  %v555_v6 = vmul.f32 %v1057_v4, %v1501_v57  ;;  %1088 = vrcp.f32 %v517_v31 }
 0x147   :  { %v230_v34 = vadd.f32 1e-05, %v214_v10  ;;  %v1077_v45 = vpop.eup %1076  ;;  %v259_v49 = vmul.f32 %v1075_v39, %v1295_v9  ;;  %v199_v47 = vpop.xlane.xlu1 %198  ;;  %v602_v51 = vpack.c.bf16 %v591_v56, %v590_v35  ;;  %v297_v12 = vadd.f32 %v1562_v42, %v274_v63 }
 0x148   :  { %v252_v40 = vmul.f32 %v1077_v45, %v1305_v13  ;;  %1090 = vrsqrt.f32 %v223_v41  ;;  %v215_v1 = vmul.f32 0.03125, %v199_v47  ;;  %v584_v19 = vmul.f32 %v1565_v46, %v296_v36  ;;  %v1079_v44 = vpop.eup %1078 }
 0x149   :  { %1092 = vrsqrt.f32 %v230_v34  ;;  %919 = vmatprep.mubr.msk.bf16.mxu1 %vm54_vm0, %v602_v51  ;;  %v585_v4 = vmul.f32 %v1571_v14, %v297_v12  ;;  %v282_v16 = vmul.f32 %v1546_v11, %v259_v49  ;;  %v304_v9 = vadd.f32 %v1562_v42, %v281_v2 }
 0x14a   :  { %v1081_v59 = vpop.eup %1080  ;;  %v231_v54 = vadd.f32 1e-05, %v215_v1  ;;  %v275_v61 = vmul.f32 %v1546_v11, %v252_v40  ;;  %v570_v13 = vadd.f32 %v1585_v29, %v1497_v50  ;;  %v571_v31 = vadd.f32 %v555_v6, %v1501_v57 }
 0x14b   :  { %v1083_v58 = vpop.eup %1082  ;;  %v253_v46 = vmul.f32 %v1081_v59, %v1309_v17  ;;  %v599_v55 = vpack.c.bf16 %v585_v4, %v584_v19  ;;  %v305_v53 = vadd.f32 %v1562_v42, %v282_v16  ;;  %v562_v25 = vmul.f32 %v1590_v7, %v1506_v8 }
 0x14c   :  { %v260_v14 = vmul.f32 %v1083_v58, %v1319_v18  ;;  %1094 = vrsqrt.f32 %v231_v54  ;;  %v563_v62 = vmul.f32 %v1065_v3, %v1511_v30  ;;  %v592_v50 = vmul.f32 %v1578_v15, %v304_v9 }
 0x14d   :  { %912 = vmatmul.mubr.msk.bf16.vlgmr.msra.gmra.mrb[0].mxu0 %vm54_vm0, %v599_v55  ;;  %v593_v29 = vmul.f32 %v1581_v24, %v305_v53  ;;  %v276_v17 = vmul.f32 %v1546_v11, %v253_v46  ;;  %v298_v5 = vadd.f32 %v1562_v42, %v275_v61  ;;  %v556_v3 = vmul.f32 %v1071_v48, %v1516_v21 }
 0x14e   :  { %v1085_v60 = vpop.eup %1084  ;;  %v283_v57 = vmul.f32 %v1546_v11, %v260_v14  ;;  %v578_v15 = vadd.f32 %v562_v25, %v1506_v8  ;;  %v579_v24 = vadd.f32 %v563_v62, %v1511_v30  ;;  %v557_v38 = vmul.f32 %v1073_v52, %v1521_v43 }
 0x14f   :  { %v1087_v18 = vpop.eup %1086  ;;  %v261_v33 = vmul.f32 %v1085_v60, %v1323_v22  ;;  %v603_v37 = vpack.c.bf16 %v593_v29, %v592_v50  ;;  %v299_v7 = vadd.f32 %v1562_v42, %v276_v17  ;;  %v586_v10 = vmul.f32 %v570_v13, %v298_v5 }
 0x150   :  { %v254_v35 = vmul.f32 %v1087_v18, %v1333_v23  ;;  %v1089_v20 = vpop.eup %1088  ;;  %v306_v63 = vadd.f32 %v1562_v42, %v283_v57  ;;  %v572_v52 = vadd.f32 %v556_v3, %v1516_v21  ;;  %v573_v34 = vadd.f32 %v557_v38, %v1521_v43 }
 0x151   :  { %920 = vmatmul.mubr.msk.bf16.vlgmr.msra.gmra.mrb[0].mxu1 %vm54_vm0, %v603_v37  ;;  %v587_v56 = vmul.f32 %v571_v31, %v299_v7  ;;  %v284_v22 = vmul.f32 %v1546_v11, %v261_v33  ;;  %v564_v2 = vmul.f32 %v1079_v44, %v1527_v26  ;;  %v565_v6 = vmul.f32 %v1089_v20, %v1531_v0 }
 0x152   :  { %v1091_v36 = vpop.eup %1090  ;;  %v277_v48 = vmul.f32 %v1546_v11, %v254_v35  ;;  %v594_v45 = vmul.f32 %v578_v15, %v306_v63 }
 0x153   :  { %v1093_v39 = vpop.eup %1092  ;;  %v255_v23 = vmul.f32 %v1091_v36, %v1337_v27  ;;  %v600_v8 = vpack.c.bf16 %v587_v56, %v586_v10  ;;  %v307_v30 = vadd.f32 %v1562_v42, %v284_v22  ;;  %v580_v40 = vadd.f32 %v564_v2, %v1527_v26 }
 0x154   :  { %v262_v41 = vmul.f32 %v1093_v39, %v1347_v28  ;;  %v300_v27 = vadd.f32 %v1562_v42, %v277_v48  ;;  %v581_v1 = vadd.f32 %v565_v6, %v1531_v0 }
 0x155   :  { %915 = vmatprep.mubr.msk.bf16.mxu0 %vm54_vm0, %v600_v8  ;;  %v595_v49 = vmul.f32 %v579_v24, %v307_v30  ;;  %v278_v47 = vmul.f32 %v1546_v11, %v255_v23 }
 0x156   :  { %v1095_v51 = vpop.eup %1094  ;;  %v285_v12 = vmul.f32 %v1546_v11, %v262_v41  ;;  %v588_v19 = vmul.f32 %v572_v52, %v300_v27 }
 0x157   :  { %v263_v21 = vmul.f32 %v1095_v51, %v1351_v32  ;;  %v604_v28 = vpack.c.bf16 %v595_v49, %v594_v45  ;;  %v301_v43 = vadd.f32 %v1562_v42, %v278_v47 }
 0x158   :  { %v308_v16 = vadd.f32 %v1562_v42, %v285_v12 }
 0x159   :  { %923 = vmatprep.mubr.msk.bf16.mxu1 %vm54_vm0, %v604_v28  ;;  %v589_v44 = vmul.f32 %v573_v34, %v301_v43  ;;  %v286_v4 = vmul.f32 %v1546_v11, %v263_v21 }
 0x15a   :  { %v596_v32 = vmul.f32 %v580_v40, %v308_v16 }
 0x15b   :  { %v601_v9 = vpack.c.bf16 %v589_v44, %v588_v19  ;;  %v309_v59 = vadd.f32 %v1562_v42, %v286_v4 }
 0x15d   :  { %916 = vmatmul.mubr.msk.bf16.gmra.mrb[4].mxu0 %vm54_vm0, %v601_v9  ;;  %v597_v54 = vmul.f32 %v581_v1, %v309_v59 }
 0x15f   :  { %v605_v61 = vpack.c.bf16 %v597_v54, %v596_v32 }
 0x161   :  { %924 = vmatmul.mubr.msk.bf16.gmra.mrb[4].mxu1 %vm54_vm0, %v605_v61 }
 0x220   :  { %v913_v26 = vpop.f32.mrb[0].mxu0 }
 0x221   :  { %745 = vst [vmem:[#allocation2 + $0x10] sm:$0xff] %v913_v26  ;;  %v680_v0 = vpop.f32.mrb[1].mxu0 }
 0x222   :  { %743 = vst [vmem:[#allocation2] sm:$0xff] %v680_v0  ;;  %v914_v13 = vpop.f32.mrb[2].mxu0 }
 0x223   :  { %746 = vst [vmem:[#allocation2 + $0x18] sm:$0xff] %v914_v13  ;;  %v683_v58 = vpop.f32.mrb[3].mxu0 }
 0x224   :  { %744 = vst [vmem:[#allocation2 + $0x8] sm:$0xff] %v683_v58  ;;  %v921_v11 = vpop.f32.mrb[0].mxu1 }
 0x225   :  { %753 = vst [vmem:[#allocation2 + $0x50] sm:$0xff] %v921_v11  ;;  %v712_v46 = vpop.f32.mrb[1].mxu1 }
 0x226   :  { %751 = vst [vmem:[#allocation2 + $0x40] sm:$0xff] %v712_v46  ;;  %v922_v42 = vpop.f32.mrb[2].mxu1 }
 0x227   :  { %754 = vst [vmem:[#allocation2 + $0x58] sm:$0xff] %v922_v42  ;;  %v715_v55 = vpop.f32.mrb[3].mxu1 }
 0x228   :  { %752 = vst [vmem:[#allocation2 + $0x48] sm:$0xff] %v715_v55 }
 0x230   :  { %v917_v53 = vpop.f32.mrb[4].mxu0 }
 0x231   :  { %749 = vst [vmem:[#allocation2 + $0x30] sm:$0xff] %v917_v53  ;;  %v696_v31 = vpop.f32.mrb[5].mxu0 }
 0x232   :  { %747 = vst [vmem:[#allocation2 + $0x20] sm:$0xff] %v696_v31  ;;  %v918_v14 = vpop.f32.mrb[6].mxu0 }
 0x233   :  { %750 = vst [vmem:[#allocation2 + $0x38] sm:$0xff] %v918_v14  ;;  %v699_v25 = vpop.f32.mrb[7].mxu0 }
 0x234   :  { %748 = vst [vmem:[#allocation2 + $0x28] sm:$0xff] %v699_v25  ;;  %v925_v62 = vpop.f32.mrb[4].mxu1 }
 0x235   :  { %757 = vst [vmem:[#allocation2 + $0x70] sm:$0xff] %v925_v62  ;;  %v728_v50 = vpop.f32.mrb[5].mxu1 }
 0x236   :  { %755 = vst [vmem:[#allocation2 + $0x60] sm:$0xff] %v728_v50  ;;  %v926_v29 = vpop.f32.mrb[6].mxu1 }
 0x237   :  { %758 = vst [vmem:[#allocation2 + $0x78] sm:$0xff] %v926_v29  ;;  %v731_v17 = vpop.f32.mrb[7].mxu1 }
 0x238   :  { %756 = vst [vmem:[#allocation2 + $0x68] sm:$0xff] %v731_v17 }
 0x239   :  { %1107 = shalt.err (!%p1104_p4)
}
 0x23a   :  { %s1108_s8 = scalar_lea.hbm %s1680_s5, 2048 }
 0x23b   :  { %p1109_p5 = scmp.ne.s32.totalorder %s1680_s5, %s1108_s8  ;;  %p1112_p6 = scmp.lt.u32.totalorder %s1108_s8, %s1680_s5 }
 0x23d   :  { %p1114_p7 = pnand %p1112_p6, %p1109_p5 }
 0x23f   :  { %1117 = shalt.err (!%p1114_p7)
}
 0x240   :  { %s1121_s12 = smov 128   ;;  %s1122_s13 = smov 8  }
 0x241   :  { %770 = dma.vmem_to_hbm [thread:$0]  %s765_s29, 2048, %s1680_s5, [#allocation3], %s1121_s12, %s1121_s12, %s1122_s13  }
 0x242   :  { %1118 = dma.done.wait [#allocation3], 2048  }
 0x243   :  { %1119 = vsyncadd [#allocation3], 4294965248 }
 0x244   :  { %774 = vsyncpa [#allocation3], 1 }

// kernel: ss2d_cross_forward.8
= control target key start
LH: loop header
LB: loop body
LE: loop exit
PB: predicated region body
PF: predicated region fallthrough
CT: control target
= control target key end

     0   :  { %s4006_s30 = smov 0   ;;  %s4008_s10 = smov 0   ;;  %s5036_s0 = inlined_call_operand.vmem [shape: bf16[4,32,32], index: 0, kind: input, shape index: {}]   ;;  %s5037_s1 = inlined_call_operand.vmem [shape: bf16[4,32,32], index: 1, kind: input, shape index: {}]   ;;  %s5038_s2 = inlined_call_operand.vmem [shape: bf16[4,32,16], index: 2, kind: input, shape index: {}]   ;;  %s5039_s3 = inlined_call_operand.vmem [shape: bf16[4,32,16], index: 3, kind: input, shape index: {}]   ;;  %s5040_s4 = inlined_call_operand.vmem [shape: f32[4,256,32], index: 4, kind: input, shape index: {}]   ;;  %s5041_s5 = inlined_call_operand.vmem [shape: f32[4,1,32], index: 5, kind: input, shape index: {}]   ;;  %s5042_s6 = inlined_call_operand.vmem [shape: f32[4,1,32], index: 6, kind: input, shape index: {}]   ;;  %s5043_s7 = inlined_call_operand.vmem [shape: f32[256,16], index: 7, kind: input, shape index: {}]   ;;  %s5044_s8 = inlined_call_operand.vmem [shape: f32[256,16], index: 8, kind: input, shape index: {}]   ;;  %s5045_s9 = inlined_call_operand.vmem [shape: bf16[4,32,32], index: 9, kind: output, shape index: {}]  }
   0x1   :  { %s4010_s11 = smov 0   ;;  %s4012_s12 = smov 0  }
   0x2   :  { %s4014_s13 = smov 0  }
   0x3 LB: > { %s34_s14 = sadd.s32 1, %s3944_s11  ;;  %s38_s15 = sadd.s32 1, %s3948_s12  ;;  %s3952_s13 = sphi %s4014_s13, %s19_s13   ;;  %s3948_s12 = sphi %s4012_s12, %s5085_s12   ;;  %s3944_s11 = sphi %s4010_s11, %s5084_s11   ;;  %s3940_s10 = sphi %s4008_s10, %s5083_s10   ;;  %s3936_s30 = sphi %s4006_s30, %s5082_s30  }
   0x4   : > { %p36_p0 = scmp.ge.s32.totalorder %s34_s14, 4  ;;  %p3029_p1 = scmp.ge.s32.totalorder %s3952_s13, 1 }
   0x5   : > { %p410_p2 = scmp.lt.s32.totalorder %s3952_s13, 9 }
   0x6   : > { %s5087_s14 = smov (%p36_p0, %s34_s14), 0  ;;  %s5089_s15 = smov (!%p36_p0, %s38_s15), %s3948_s12 }
   0x7   : > { %p411_p3 = pnand %p3029_p1, %p410_p2  ;;  %p40_p4 = scmp.ge.s32.totalorder %s5089_s15, 2 }
   0x9   : > { %s5091_s15 = smov (%p40_p4, %s5089_s15), 0  ;;  %414 = sbr.rel (%p411_p3) target bundleno = 655 (0x28f), region = 56 }
  0x10   : > { %s3030_s16 = sshll.u32 %s3940_s10, 1  ;;  %p499_p5 = scmp.lt.s32.totalorder %s3936_s30, 3  ;;  %v4039_v0 = vld [vmem:[%s5043_s7] sm:$0xff]  ;;  %vm729_vm0 = vcmask 130048   ;;  %v4081_v42 = vld [vmem:[%s5043_s7 + $0x8] sm:$0xff]  ;;  %v4086_v44 = vld [vmem:[%s5043_s7 + $0x10] sm:$0xff] }
  0x11   : > { %p501_p6 = scmp.lt.s32.totalorder %s3030_s16, 3  ;;  %3472 = vmatprep.mubr.msk.f32.mxu0 %vm729_vm0, %v4039_v0  ;;  %3524 = vmatprep.mubr.msk.f32.mxu1 %vm729_vm0, %v4039_v0  ;;  %v4095_v45 = vld [vmem:[%s5043_s7 + $0x18] sm:$0xff]  ;;  %v4102_v46 = vld [vmem:[%s5043_s7 + $0x20] sm:$0xff]  ;;  %v4113_v47 = vld [vmem:[%s5043_s7 + $0x28] sm:$0xff]  ;;  %vm572_vm5 = vcmask 261120   ;;  %vm2801_vm6 = vcmask 1040384  }
  0x12   : > { %s5093_s30 = smov (!%p499_p5, %s3936_s30), 3  ;;  %v4120_v48 = vld [vmem:[%s5043_s7 + $0x30] sm:$0xff]  ;;  %v4131_v49 = vld [vmem:[%s5043_s7 + $0x38] sm:$0xff]  ;;  %v4138_v50 = vld [vmem:[%s5043_s7 + $0x40] sm:$0xff]  ;;  %vm2803_vm7 = vcmask 1041408   ;;  %vm2805_vm8 = vcmask 1042432  }
  0x13   : > { %s5095_s16 = smov (!%p501_p6, %s3030_s16), 3  ;;  %s3031_s19 = sshll.u32 %s5093_s30, 2  ;;  %v4149_v51 = vld [vmem:[%s5043_s7 + $0x48] sm:$0xff]  ;;  %v4156_v52 = vld [vmem:[%s5043_s7 + $0x50] sm:$0xff]  ;;  %v4167_v53 = vld [vmem:[%s5043_s7 + $0x58] sm:$0xff]  ;;  %vm2807_vm9 = vcmask 1043456  }
  0x14   : > { %s504_s20 = sadd.s32 %s3031_s19, %s5095_s16  ;;  %s555_s24 = scalar_lea.vmem %s5042_s6, %s5093_s30  ;;  %v4174_v54 = vld [vmem:[%s5043_s7 + $0x60] sm:$0xff]  ;;  %v4185_v55 = vld [vmem:[%s5043_s7 + $0x68] sm:$0xff]  ;;  %v4192_v56 = vld [vmem:[%s5043_s7 + $0x70] sm:$0xff]  ;;  %vm2809_vm10 = vcmask 1044480   ;;  %vm2811_vm11 = vcmask 1045504   ;;  %vm2813_vm12 = vcmask 1046528  }
  0x15   : > { %s4048_s21 = sshll.u32 %s504_s20, 2  ;;  %v3047_v1 = vld [vmem:[%s555_s24] ss:$0 sm:$0xff]  ;;  %s552_s18 = scalar_lea.vmem %s5041_s5, %s5093_s30  ;;  %v4203_v57 = vld [vmem:[%s5043_s7 + $0x78] sm:$0xff]  ;;  %v4221_v59 = vld [vmem:[%s5043_s7 + $0x88] sm:$0xff]  ;;  %vm2840_vm13 = vcmask 257024  }
  0x16   : > { %s518_s27 = scalar_lea.vmem %s5037_s1, %s4048_s21  ;;  %s506_s10 = scalar_lea.vmem %s5036_s0, %s4048_s21  ;;  %v3240_v6 = vld [vmem:[%s552_s18] ss:$0 sm:$0xff]  ;;  %v4228_v60 = vld [vmem:[%s5043_s7 + $0x90] sm:$0xff]  ;;  %v4239_v61 = vld [vmem:[%s5043_s7 + $0x98] sm:$0xff] }
  0x17   : > { %v3253_v2 = vld [vmem:[%s518_s27] sm:$0xff]   ;;  %s530_s22 = scalar_lea.vmem %s5038_s2, %s4048_s21  ;;  %s542_s25 = scalar_lea.vmem %s5039_s3, %s4048_s21  ;;  %v4257_v63 = vld [vmem:[%s5043_s7 + $0xa8] sm:$0xff] }
  0x18   : > { %v3249_v3 = vld [vmem:[%s506_s10] sm:$0xff]   ;;  %v3254_v4 = vunpack.c.l.bf16 %v3253_v2  ;;  %v3255_v5 = vunpack.c.h.bf16 %v3253_v2  ;;  %v4275_v2 = vld [vmem:[%s5043_s7 + $0xb8] sm:$0xff]  ;;  %s3245_s16 = sshll.u32 %s5093_s30, 8  ;;  %s4984_s27 = scalar_lea.vmem %s5045_s9, %s4048_s21 }
  0x19   : > { %v3250_v7 = vunpack.c.l.bf16 %v3249_v3  ;;  %v3251_v8 = vunpack.c.h.bf16 %v3249_v3  ;;  %v3257_v40 = vld [vmem:[%s530_s22] sm:$0xff]   ;;  %s4491_s20 = scalar_lea.vmem %s5040_s4, %s3245_s16 }
  0x1a   : > { %v697_v9 = vadd.f32 %v3254_v4, %v3047_v1  ;;  %v698_v10 = vadd.f32 %v3255_v5, %v3047_v1  ;;  %v3261_v43 = vld [vmem:[%s542_s25] sm:$0xff]   ;;  %v4264_v1 = vld [vmem:[%s5043_s7 + $0xb0] sm:$0xff]  ;;  %v4293_v4 = vld [vmem:[%s5043_s7 + $0xc8] sm:$0xff] }
  0x1b   : > { %v4066_v11 = vmul.f32 %v3250_v7, %v3240_v6  ;;  %v4068_v12 = vmul.f32 %v3251_v8, %v3240_v6  ;;  %v4210_v58 = vld [vmem:[%s5043_s7 + $0x80] sm:$0xff]  ;;  %v4300_v5 = vld [vmem:[%s5043_s7 + $0xd0] sm:$0xff]  ;;  %v4311_v6 = vld [vmem:[%s5043_s7 + $0xd8] sm:$0xff] }
  0x1c   : > { %v701_v13 = vmin.f32 %v697_v9, 20.0  ;;  %v702_v14 = vmin.f32 %v698_v10, 20.0  ;;  %vm699_vm2 = vcmp.gt.f32.partialorder %v697_v9, 20.0  ;;  %vm700_vm4 = vcmp.gt.f32.partialorder %v698_v10, 20.0  ;;  %v4246_v62 = vld [vmem:[%s5043_s7 + $0xa0] sm:$0xff] }
  0x1d   : > { %5046 = vst [vmem:[#allocation3_spill] sm:$0xff] %v4066_v11  ;;  %5047 = vst [vmem:[#allocation4_spill] sm:$0xff] %v4068_v12  ;;  %v4282_v3 = vld [vmem:[%s5043_s7 + $0xc0] sm:$0xff]  ;;  %v668_v12 = vld [vmem:[%s4491_s20 + $0xe8] sm:$0xff] }
  0x1e   : > { %v703_v15 = vmul.f32 1.442695, %v701_v13  ;;  %v705_v16 = vmul.f32 1.442695, %v702_v14  ;;  %v3955_v13 = vmov 1.0|1.0  }
  0x1f   : > { %v640_v14 = vld [vmem:[%s4491_s20 + $0x8] sm:$0xff] }
  0x20   : > { %3842 = vpow2.f32 %v703_v15  ;;  %v639_v15 = vld [vmem:[%s4491_s20] sm:$0xff] }
  0x21   : > { %3844 = vpow2.f32 %v705_v16 }
  0x2a   : > { %v3843_v17 = vpop.eup %3842 }
  0x2b   : > { %v3845_v18 = vpop.eup %3844  ;;  %v707_v19 = vadd.f32 1.0, %v3843_v17  ;;  %v710_v21 = vmul.f32 -0.5, %v3843_v17  ;;  %v713_v24 = vand.u32 2147483647, %v3843_v17 }
  0x2c   : > { %v716_v20 = vadd.f32 1.0, %v3845_v18  ;;  %v719_v22 = vmul.f32 -0.5, %v3845_v18  ;;  %v722_v26 = vand.u32 2147483647, %v3845_v18 }
  0x2d   : > { %3846 = vlog2.f32 %v707_v19  ;;  %v711_v23 = vadd.f32 1.0, %v710_v21  ;;  %vm714_vm1 = vcmp.lt.f32.partialorder %v713_v24, 0.0004427343 }
  0x2e   : > { %3848 = vlog2.f32 %v716_v20  ;;  %v720_v25 = vadd.f32 1.0, %v719_v22  ;;  %vm723_vm3 = vcmp.lt.f32.partialorder %v722_v26, 0.0004427343  ;;  %v642_v20 = vld [vmem:[%s4491_s20 + $0x18] sm:$0xff]  ;;  %v641_v22 = vld [vmem:[%s4491_s20 + $0x10] sm:$0xff] }
  0x2f   : > { %v712_v27 = vmul.f32 %v3843_v17, %v711_v23 }
  0x30   : > { %v721_v29 = vmul.f32 %v3845_v18, %v720_v25 }
  0x37   : > { %v3847_v28 = vpop.eup %3846 }
  0x38   : > { %v3849_v30 = vpop.eup %3848  ;;  %v709_v31 = vmul.f32 0.6931472, %v3847_v28  ;;  %v644_v28 = vld [vmem:[%s4491_s20 + $0x28] sm:$0xff] }
  0x39   : > { %v718_v32 = vmul.f32 0.6931472, %v3849_v30  ;;  %v643_v30 = vld [vmem:[%s4491_s20 + $0x20] sm:$0xff] }
  0x3a   : > { %v715_v33 = vsel %vm714_vm1, %v712_v27, %v709_v31 }
  0x3b   : > { %v724_v34 = vsel %vm723_vm3, %v721_v29, %v718_v32  ;;  %v725_v35 = vsel %vm699_vm2, %v697_v9, %v715_v33  ;;  %v4336_v9 = vld [vmem:[%s5043_s7 + $0xf0] sm:$0xff] }
  0x3c   : > { %v726_v36 = vsel %vm700_vm4, %v698_v10, %v724_v34  ;;  %v727_v37 = vmul.f32 %v3250_v7, %v725_v35  ;;  %v4318_v7 = vld [vmem:[%s5043_s7 + $0xe0] sm:$0xff]  ;;  %v4347_v10 = vld [vmem:[%s5043_s7 + $0xf8] sm:$0xff] }
  0x3d   : > { %v3780_v38 = vpack.c.bf16 %v726_v36, %v725_v35  ;;  %v728_v39 = vmul.f32 %v3251_v8, %v726_v36  ;;  %v4329_v8 = vld [vmem:[%s5043_s7 + $0xe8] sm:$0xff]  ;;  %v646_v36 = vld [vmem:[%s4491_s20 + $0x38] sm:$0xff] }
  0x3f   : > { %3781 = vmatprep.subr.bf16.mxu0 %v3780_v38  ;;  %v3784_v41 = vpack.c.bf16 %v728_v39, %v727_v37 }
  0x40   : > { %3783 = vmatpush3.bf16.msra.mxu0 %v3780_v38  ;;  %v645_v38 = vld [vmem:[%s4491_s20 + $0x30] sm:$0xff] }
  0x41   : > { %3785 = vmatprep.subr.bf16.mxu1 %v3784_v41  ;;  %3789 = vmatprep.subr.bf16.mxu0 %v3257_v40 }
  0x42   : > { %3787 = vmatpush3.bf16.msra.mxu1 %v3784_v41 }
  0x43   : > { %3473 = vmatmul.mubr.msk.f32.vlgmr.msra.gmra.mrb[0].mxu0 %vm729_vm0, %v4081_v42  ;;  %3793 = vmatprep.subr.bf16.mxu1 %v3261_v43 }
  0x44   : > { %3791 = vmatpush3.bf16.msra.mxu0 %v3257_v40  ;;  %3475 = vmatprep.mubr.msk.f32.mxu0 %vm729_vm0, %v4086_v44 }
  0x45   : > { %3525 = vmatmul.mubr.msk.f32.vlgmr.msra.gmra.mrb[0].mxu1 %vm729_vm0, %v4081_v42  ;;  %3796 = vmatprep.subr.bf16.mxu0 %v3955_v13 }
  0x46   : > { %3527 = vmatprep.mubr.msk.f32.mxu1 %vm729_vm0, %v4086_v44  ;;  %3795 = vmatpush3.bf16.msra.mxu1 %v3261_v43 }
  0x47   : > { %3476 = vmatmul.mubr.msk.f32.gmra.mrb[2].mxu0 %vm729_vm0, %v4095_v45  ;;  %3798 = vmatprep.subr.bf16.mxu1 %v3955_v13 }
  0x48   : > { %3478 = vmatprep.mubr.msk.f32.mxu0 %vm729_vm0, %v4102_v46 }
  0x49   : > { %3528 = vmatmul.mubr.msk.f32.gmra.mrb[2].mxu1 %vm729_vm0, %v4095_v45 }
  0x4a   : > { %3530 = vmatprep.mubr.msk.f32.mxu1 %vm729_vm0, %v4102_v46 }
  0x4b   : > { %3479 = vmatmul.mubr.msk.f32.gmra.mrb[4].mxu0 %vm729_vm0, %v4113_v47 }
  0x4c   : > { %3481 = vmatprep.mubr.msk.f32.mxu0 %vm729_vm0, %v4120_v48 }
  0x4d   : > { %3531 = vmatmul.mubr.msk.f32.gmra.mrb[4].mxu1 %vm729_vm0, %v4113_v47 }
  0x4e   : > { %3533 = vmatprep.mubr.msk.f32.mxu1 %vm729_vm0, %v4120_v48 }
  0x4f   : > { %3482 = vmatmul.mubr.msk.f32.gmra.mrb[6].mxu0 %vm729_vm0, %v4131_v49 }
  0x50   : > { %3484 = vmatprep.mubr.msk.f32.mxu0 %vm729_vm0, %v4138_v50 }
  0x51   : > { %3534 = vmatmul.mubr.msk.f32.gmra.mrb[6].mxu1 %vm729_vm0, %v4131_v49 }
  0x52   : > { %3536 = vmatprep.mubr.msk.f32.mxu1 %vm729_vm0, %v4138_v50 }
  0x53   : > { %3485 = vmatmul.mubr.msk.f32.gmra.mrb[8].mxu0 %vm729_vm0, %v4149_v51 }
  0x54   : > { %3487 = vmatprep.mubr.msk.f32.mxu0 %vm729_vm0, %v4156_v52 }
  0x55   : > { %3537 = vmatmul.mubr.msk.f32.gmra.mrb[8].mxu1 %vm729_vm0, %v4149_v51 }
  0x56   : > { %3539 = vmatprep.mubr.msk.f32.mxu1 %vm729_vm0, %v4156_v52 }
  0x57   : > { %3488 = vmatmul.mubr.msk.f32.gmra.mrb[10].mxu0 %vm729_vm0, %v4167_v53 }
  0x58   : > { %3490 = vmatprep.mubr.msk.f32.mxu0 %vm729_vm0, %v4174_v54 }
  0x59   : > { %3540 = vmatmul.mubr.msk.f32.gmra.mrb[10].mxu1 %vm729_vm0, %v4167_v53 }
  0x5a   : > { %3542 = vmatprep.mubr.msk.f32.mxu1 %vm729_vm0, %v4174_v54 }
  0x5b   : > { %3491 = vmatmul.mubr.msk.f32.gmra.mrb[12].mxu0 %vm729_vm0, %v4185_v55 }
  0x5c   : > { %3493 = vmatprep.mubr.msk.f32.mxu0 %vm729_vm0, %v4192_v56 }
  0x5d   : > { %3543 = vmatmul.mubr.msk.f32.gmra.mrb[12].mxu1 %vm729_vm0, %v4185_v55 }
  0x5e   : > { %3545 = vmatprep.mubr.msk.f32.mxu1 %vm729_vm0, %v4192_v56 }
  0x5f   : > { %3494 = vmatmul.mubr.msk.f32.gmra.mrb[14].mxu0 %vm729_vm0, %v4203_v57 }
  0x60   : > { %3496 = vmatprep.mubr.msk.f32.mxu0 %vm729_vm0, %v4210_v58 }
  0x61   : > { %3546 = vmatmul.mubr.msk.f32.gmra.mrb[14].mxu1 %vm729_vm0, %v4203_v57 }
  0x62   : > { %3548 = vmatprep.mubr.msk.f32.mxu1 %vm729_vm0, %v4210_v58 }
  0x63   : > { %3497 = vmatmul.mubr.msk.f32.gmra.mrb[16].mxu0 %vm729_vm0, %v4221_v59 }
  0x64   : > { %3499 = vmatprep.mubr.msk.f32.mxu0 %vm729_vm0, %v4228_v60 }
  0x65   : > { %3549 = vmatmul.mubr.msk.f32.gmra.mrb[16].mxu1 %vm729_vm0, %v4221_v59 }
  0x66   : > { %3551 = vmatprep.mubr.msk.f32.mxu1 %vm729_vm0, %v4228_v60 }
  0x67   : > { %3500 = vmatmul.mubr.msk.f32.gmra.mrb[18].mxu0 %vm729_vm0, %v4239_v61 }
  0x68   : > { %3502 = vmatprep.mubr.msk.f32.mxu0 %vm729_vm0, %v4246_v62 }
  0x69   : > { %3552 = vmatmul.mubr.msk.f32.gmra.mrb[18].mxu1 %vm729_vm0, %v4239_v61 }
  0x6a   : > { %3554 = vmatprep.mubr.msk.f32.mxu1 %vm729_vm0, %v4246_v62 }
  0x6b   : > { %3503 = vmatmul.mubr.msk.f32.gmra.mrb[20].mxu0 %vm729_vm0, %v4257_v63 }
  0x6c   : > { %3505 = vmatprep.mubr.msk.f32.mxu0 %vm729_vm0, %v4264_v1 }
  0x6d   : > { %3555 = vmatmul.mubr.msk.f32.gmra.mrb[20].mxu1 %vm729_vm0, %v4257_v63 }
  0x6e   : > { %3557 = vmatprep.mubr.msk.f32.mxu1 %vm729_vm0, %v4264_v1 }
  0x6f   : > { %3506 = vmatmul.mubr.msk.f32.gmra.mrb[22].mxu0 %vm729_vm0, %v4275_v2 }
  0x70   : > { %3508 = vmatprep.mubr.msk.f32.mxu0 %vm729_vm0, %v4282_v3 }
  0x71   : > { %3558 = vmatmul.mubr.msk.f32.gmra.mrb[22].mxu1 %vm729_vm0, %v4275_v2 }
  0x72   : > { %3560 = vmatprep.mubr.msk.f32.mxu1 %vm729_vm0, %v4282_v3 }
  0x73   : > { %3509 = vmatmul.mubr.msk.f32.gmra.mrb[24].mxu0 %vm729_vm0, %v4293_v4 }
  0x74   : > { %3511 = vmatprep.mubr.msk.f32.mxu0 %vm729_vm0, %v4300_v5 }
  0x75   : > { %3561 = vmatmul.mubr.msk.f32.gmra.mrb[24].mxu1 %vm729_vm0, %v4293_v4 }
  0x76   : > { %3563 = vmatprep.mubr.msk.f32.mxu1 %vm729_vm0, %v4300_v5 }
  0x77   : > { %3512 = vmatmul.mubr.msk.f32.gmra.mrb[26].mxu0 %vm729_vm0, %v4311_v6 }
  0x78   : > { %3514 = vmatprep.mubr.msk.f32.mxu0 %vm729_vm0, %v4318_v7 }
  0x79   : > { %3564 = vmatmul.mubr.msk.f32.gmra.mrb[26].mxu1 %vm729_vm0, %v4311_v6 }
  0x7a   : > { %3566 = vmatprep.mubr.msk.f32.mxu1 %vm729_vm0, %v4318_v7 }
  0x7b   : > { %3515 = vmatmul.mubr.msk.f32.gmra.mrb[28].mxu0 %vm729_vm0, %v4329_v8 }
  0x7c   : > { %3517 = vmatprep.mubr.msk.f32.mxu0 %vm729_vm0, %v4336_v9 }
  0x7d   : > { %3567 = vmatmul.mubr.msk.f32.gmra.mrb[28].mxu1 %vm729_vm0, %v4329_v8 }
  0x7e   : > { %3569 = vmatprep.mubr.msk.f32.mxu1 %vm729_vm0, %v4336_v9 }
  0x7f   : > { %3518 = vmatmul.mubr.msk.f32.gmra.mrb[30].mxu0 %vm729_vm0, %v4347_v10 }
  0x80   : > { %3576 = vmatprep.mubr.msk.f32.mxu0 %vm729_vm0, %v4039_v0 }
  0x81   : > { %3570 = vmatmul.mubr.msk.f32.gmra.mrb[30].mxu1 %vm729_vm0, %v4347_v10 }
  0x82   : > { %3628 = vmatprep.mubr.msk.f32.mxu1 %vm729_vm0, %v4039_v0  ;;  %v3954_v0 = vmov 0.0  }
  0x83   : > { %3577 = vmatmul.mubr.msk.f32.vlgmr.msra.gmra.mrb[32].mxu0 %vm729_vm0, %v4081_v42  ;;  %574 = vst.msk [vmem:[#allocation2 + $0x8] sm:$0xff] %vm572_vm5, %v3954_v0  ;;  %573 = vst.msk [vmem:[#allocation2] sm:$0xff] %vm572_vm5, %v3954_v0 }
  0x84   : > { %3579 = vmatprep.mubr.msk.f32.mxu0 %vm729_vm0, %v4086_v44  ;;  %3797 = vmatpush3.bf16.msra.mxu0 %v3955_v13 }
  0x85   : > { %3629 = vmatmul.mubr.msk.f32.vlgmr.msra.gmra.mrb[32].mxu1 %vm729_vm0, %v4081_v42 }
  0x86   : > { %3631 = vmatprep.mubr.msk.f32.mxu1 %vm729_vm0, %v4086_v44  ;;  %3799 = vmatpush3.bf16.msra.mxu1 %v3955_v13  ;;  %v648_v44 = vld [vmem:[%s4491_s20 + $0x48] sm:$0xff] }
  0x87   : > { %3580 = vmatmul.mubr.msk.f32.gmra.mrb[34].mxu0 %vm729_vm0, %v4095_v45 }
  0x88   : > { %3582 = vmatprep.mubr.msk.f32.mxu0 %vm729_vm0, %v4102_v46 }
  0x89   : > { %3632 = vmatmul.mubr.msk.f32.gmra.mrb[34].mxu1 %vm729_vm0, %v4095_v45 }
  0x8a   : > { %3634 = vmatprep.mubr.msk.f32.mxu1 %vm729_vm0, %v4102_v46  ;;  %v647_v46 = vld [vmem:[%s4491_s20 + $0x40] sm:$0xff] }
  0x8b   : > { %3583 = vmatmul.mubr.msk.f32.gmra.mrb[36].mxu0 %vm729_vm0, %v4113_v47 }
  0x8c   : > { %3585 = vmatprep.mubr.msk.f32.mxu0 %vm729_vm0, %v4120_v48 }
  0x8d   : > { %3635 = vmatmul.mubr.msk.f32.gmra.mrb[36].mxu1 %vm729_vm0, %v4113_v47 }
  0x8e   : > { %3637 = vmatprep.mubr.msk.f32.mxu1 %vm729_vm0, %v4120_v48 }
  0x8f   : > { %3586 = vmatmul.mubr.msk.f32.gmra.mrb[38].mxu0 %vm729_vm0, %v4131_v49 }
  0x90   : > { %3588 = vmatprep.mubr.msk.f32.mxu0 %vm729_vm0, %v4138_v50 }
  0x91   : > { %3638 = vmatmul.mubr.msk.f32.gmra.mrb[38].mxu1 %vm729_vm0, %v4131_v49 }
  0x92   : > { %3640 = vmatprep.mubr.msk.f32.mxu1 %vm729_vm0, %v4138_v50 }
  0x93   : > { %3589 = vmatmul.mubr.msk.f32.gmra.mrb[40].mxu0 %vm729_vm0, %v4149_v51 }
  0x94   : > { %3591 = vmatprep.mubr.msk.f32.mxu0 %vm729_vm0, %v4156_v52 }
  0x95   : > { %3641 = vmatmul.mubr.msk.f32.gmra.mrb[40].mxu1 %vm729_vm0, %v4149_v51 }
  0x96   : > { %3643 = vmatprep.mubr.msk.f32.mxu1 %vm729_vm0, %v4156_v52  ;;  %v650_v52 = vld [vmem:[%s4491_s20 + $0x58] sm:$0xff] }
  0x97   : > { %3592 = vmatmul.mubr.msk.f32.gmra.mrb[42].mxu0 %vm729_vm0, %v4167_v53 }
  0x98   : > { %3594 = vmatprep.mubr.msk.f32.mxu0 %vm729_vm0, %v4174_v54 }
  0x99   : > { %3644 = vmatmul.mubr.msk.f32.gmra.mrb[42].mxu1 %vm729_vm0, %v4167_v53 }
  0x9a   : > { %3646 = vmatprep.mubr.msk.f32.mxu1 %vm729_vm0, %v4174_v54  ;;  %v649_v54 = vld [vmem:[%s4491_s20 + $0x50] sm:$0xff] }
  0x9b   : > { %3595 = vmatmul.mubr.msk.f32.gmra.mrb[44].mxu0 %vm729_vm0, %v4185_v55 }
  0x9c   : > { %3597 = vmatprep.mubr.msk.f32.mxu0 %vm729_vm0, %v4192_v56 }
  0x9d   : > { %3647 = vmatmul.mubr.msk.f32.gmra.mrb[44].mxu1 %vm729_vm0, %v4185_v55 }
  0x9e   : > { %3649 = vmatprep.mubr.msk.f32.mxu1 %vm729_vm0, %v4192_v56 }
  0x9f   : > { %3598 = vmatmul.mubr.msk.f32.gmra.mrb[46].mxu0 %vm729_vm0, %v4203_v57 }
  0xa0   : > { %3600 = vmatprep.mubr.msk.f32.mxu0 %vm729_vm0, %v4210_v58 }
  0xa1   : > { %3650 = vmatmul.mubr.msk.f32.gmra.mrb[46].mxu1 %vm729_vm0, %v4203_v57 }
  0xa2   : > { %3652 = vmatprep.mubr.msk.f32.mxu1 %vm729_vm0, %v4210_v58 }
  0xa3   : > { %3601 = vmatmul.mubr.msk.f32.gmra.mrb[48].mxu0 %vm729_vm0, %v4221_v59 }
  0xa4   : > { %3603 = vmatprep.mubr.msk.f32.mxu0 %vm729_vm0, %v4228_v60 }
  0xa5   : > { %3653 = vmatmul.mubr.msk.f32.gmra.mrb[48].mxu1 %vm729_vm0, %v4221_v59 }
  0xa6   : > { %3655 = vmatprep.mubr.msk.f32.mxu1 %vm729_vm0, %v4228_v60  ;;  %v652_v60 = vld [vmem:[%s4491_s20 + $0x68] sm:$0xff] }
  0xa7   : > { %3604 = vmatmul.mubr.msk.f32.gmra.mrb[50].mxu0 %vm729_vm0, %v4239_v61 }
  0xa8   : > { %3606 = vmatprep.mubr.msk.f32.mxu0 %vm729_vm0, %v4246_v62 }
  0xa9   : > { %3656 = vmatmul.mubr.msk.f32.gmra.mrb[50].mxu1 %vm729_vm0, %v4239_v61 }
  0xaa   : > { %3658 = vmatprep.mubr.msk.f32.mxu1 %vm729_vm0, %v4246_v62  ;;  %v651_v62 = vld [vmem:[%s4491_s20 + $0x60] sm:$0xff] }
  0xab   : > { %3607 = vmatmul.mubr.msk.f32.gmra.mrb[52].mxu0 %vm729_vm0, %v4257_v63 }
  0xac   : > { %3609 = vmatprep.mubr.msk.f32.mxu0 %vm729_vm0, %v4264_v1 }
  0xad   : > { %3659 = vmatmul.mubr.msk.f32.gmra.mrb[52].mxu1 %vm729_vm0, %v4257_v63 }
  0xae   : > { %3661 = vmatprep.mubr.msk.f32.mxu1 %vm729_vm0, %v4264_v1 }
  0xaf   : > { %3610 = vmatmul.mubr.msk.f32.gmra.mrb[54].mxu0 %vm729_vm0, %v4275_v2 }
  0xb0   : > { %3612 = vmatprep.mubr.msk.f32.mxu0 %vm729_vm0, %v4282_v3 }
  0xb1   : > { %3662 = vmatmul.mubr.msk.f32.gmra.mrb[54].mxu1 %vm729_vm0, %v4275_v2 }
  0xb2   : > { %3664 = vmatprep.mubr.msk.f32.mxu1 %vm729_vm0, %v4282_v3 }
  0xb3   : > { %3613 = vmatmul.mubr.msk.f32.gmra.mrb[56].mxu0 %vm729_vm0, %v4293_v4 }
  0xb4   : > { %3615 = vmatprep.mubr.msk.f32.mxu0 %vm729_vm0, %v4300_v5 }
  0xb5   : > { %3665 = vmatmul.mubr.msk.f32.gmra.mrb[56].mxu1 %vm729_vm0, %v4293_v4 }
  0xb6   : > { %3667 = vmatprep.mubr.msk.f32.mxu1 %vm729_vm0, %v4300_v5  ;;  %v654_v5 = vld [vmem:[%s4491_s20 + $0x78] sm:$0xff] }
  0xb7   : > { %3616 = vmatmul.mubr.msk.f32.gmra.mrb[58].mxu0 %vm729_vm0, %v4311_v6 }
  0xb8   : > { %3618 = vmatprep.mubr.msk.f32.mxu0 %vm729_vm0, %v4318_v7 }
  0xb9   : > { %3668 = vmatmul.mubr.msk.f32.gmra.mrb[58].mxu1 %vm729_vm0, %v4311_v6 }
  0xba   : > { %3670 = vmatprep.mubr.msk.f32.mxu1 %vm729_vm0, %v4318_v7  ;;  %v653_v7 = vld [vmem:[%s4491_s20 + $0x70] sm:$0xff] }
  0xbb   : > { %3619 = vmatmul.mubr.msk.f32.gmra.mrb[60].mxu0 %vm729_vm0, %v4329_v8 }
  0xbc   : > { %3621 = vmatprep.mubr.msk.f32.mxu0 %vm729_vm0, %v4336_v9 }
  0xbd   : > { %3671 = vmatmul.mubr.msk.f32.gmra.mrb[60].mxu1 %vm729_vm0, %v4329_v8 }
  0xbe   : > { %3673 = vmatprep.mubr.msk.f32.mxu1 %vm729_vm0, %v4336_v9 }
  0xbf   : > { %3622 = vmatmul.mubr.msk.f32.gmra.mrb[62].mxu0 %vm729_vm0, %v4347_v10 }
  0xc1   : > { %3674 = vmatmul.mubr.msk.f32.gmra.mrb[62].mxu1 %vm729_vm0, %v4347_v10 }
 0x116   : > { %v3474_v16 = vpop.f32.mrb[0].mxu0 }
 0x117   : > { %v4495_v17 = vmul.f32 %v3474_v16, %v640_v14  ;;  %v892_v18 = vpop.f32.mrb[1].mxu0  ;;  %v656_v14 = vld [vmem:[%s4491_s20 + $0x88] sm:$0xff]  ;;  %v655_v16 = vld [vmem:[%s4491_s20 + $0x80] sm:$0xff] }
 0x118   : > { %v4497_v19 = vmul.f32 %v892_v18, %v639_v15  ;;  %v4500_v21 = vpop.f32.mrb[0].mxu1 }
 0x119   : > { %v4503_v23 = vpop.f32.mrb[1].mxu1 }
 0x11a   : > { %v3477_v24 = vpop.f32.mrb[2].mxu0 }
 0x11b   : > { %v4505_v25 = vmul.f32 %v3477_v24, %v642_v20  ;;  %v902_v26 = vpop.f32.mrb[3].mxu0 }
 0x11c   : > { %v4507_v27 = vmul.f32 %v902_v26, %v641_v22  ;;  %v4510_v29 = vpop.f32.mrb[2].mxu1 }
 0x11d   : > { %v4513_v31 = vpop.f32.mrb[3].mxu1 }
 0x11e   : > { %v3480_v32 = vpop.f32.mrb[4].mxu0 }
 0x11f   : > { %v4515_v33 = vmul.f32 %v3480_v32, %v644_v28  ;;  %v912_v34 = vpop.f32.mrb[5].mxu0  ;;  %v658_v28 = vld [vmem:[%s4491_s20 + $0x98] sm:$0xff]  ;;  %v657_v32 = vld [vmem:[%s4491_s20 + $0x90] sm:$0xff] }
 0x120   : > { %v4517_v35 = vmul.f32 %v912_v34, %v643_v30  ;;  %v4520_v37 = vpop.f32.mrb[4].mxu1 }
 0x121   : > { %v4523_v39 = vpop.f32.mrb[5].mxu1 }
 0x122   : > { %v3483_v40 = vpop.f32.mrb[6].mxu0 }
 0x123   : > { %v4525_v41 = vmul.f32 %v3483_v40, %v646_v36  ;;  %v922_v42 = vpop.f32.mrb[7].mxu0 }
 0x124   : > { %v4527_v43 = vmul.f32 %v922_v42, %v645_v38  ;;  %v4530_v45 = vpop.f32.mrb[6].mxu1 }
 0x125   : > { %v4533_v47 = vpop.f32.mrb[7].mxu1 }
 0x126   : > { %v3486_v48 = vpop.f32.mrb[8].mxu0 }
 0x127   : > { %v4535_v49 = vmul.f32 %v3486_v48, %v648_v44  ;;  %v932_v50 = vpop.f32.mrb[9].mxu0  ;;  %v660_v44 = vld [vmem:[%s4491_s20 + $0xa8] sm:$0xff]  ;;  %v659_v48 = vld [vmem:[%s4491_s20 + $0xa0] sm:$0xff] }
 0x128   : > { %v4537_v51 = vmul.f32 %v932_v50, %v647_v46  ;;  %v4540_v53 = vpop.f32.mrb[8].mxu1 }
 0x129   : > { %v4543_v55 = vpop.f32.mrb[9].mxu1 }
 0x12a   : > { %v3489_v56 = vpop.f32.mrb[10].mxu0 }
 0x12b   : > { %v4545_v57 = vmul.f32 %v3489_v56, %v650_v52  ;;  %v942_v58 = vpop.f32.mrb[11].mxu0 }
 0x12c   : > { %v4547_v59 = vmul.f32 %v942_v58, %v649_v54  ;;  %v4550_v61 = vpop.f32.mrb[10].mxu1 }
 0x12d   : > { %v4553_v63 = vpop.f32.mrb[11].mxu1 }
 0x12e   : > { %v3492_v1 = vpop.f32.mrb[12].mxu0 }
 0x12f   : > { %v4555_v2 = vmul.f32 %v3492_v1, %v652_v60  ;;  %v952_v3 = vpop.f32.mrb[13].mxu0  ;;  %v662_v60 = vld [vmem:[%s4491_s20 + $0xb8] sm:$0xff]  ;;  %v661_v1 = vld [vmem:[%s4491_s20 + $0xb0] sm:$0xff] }
 0x130   : > { %v4557_v4 = vmul.f32 %v952_v3, %v651_v62  ;;  %v4560_v6 = vpop.f32.mrb[12].mxu1 }
 0x131   : > { %v4563_v8 = vpop.f32.mrb[13].mxu1 }
 0x132   : > { %v3495_v9 = vpop.f32.mrb[14].mxu0 }
 0x133   : > { %v4565_v10 = vmul.f32 %v3495_v9, %v654_v5  ;;  %v962_v0 = vpop.f32.mrb[15].mxu0 }
 0x134   : > { %v4567_v13 = vmul.f32 %v962_v0, %v653_v7  ;;  %v4570_v15 = vpop.f32.mrb[14].mxu1 }
 0x135   : > { %v4573_v18 = vpop.f32.mrb[15].mxu1 }
 0x136   : > { %v3498_v20 = vpop.f32.mrb[16].mxu0 }
 0x137   : > { %v4575_v22 = vmul.f32 %v3498_v20, %v656_v14  ;;  %v972_v24 = vpop.f32.mrb[17].mxu0  ;;  %v664_v14 = vld [vmem:[%s4491_s20 + $0xc8] sm:$0xff]  ;;  %v663_v20 = vld [vmem:[%s4491_s20 + $0xc0] sm:$0xff] }
 0x138   : > { %v4577_v26 = vmul.f32 %v972_v24, %v655_v16  ;;  %v4580_v30 = vpop.f32.mrb[16].mxu1 }
 0x139   : > { %5048 = vst [vmem:[#allocation5_spill] sm:$0xff] %v4580_v30  ;;  %v4583_v34 = vpop.f32.mrb[17].mxu1 }
 0x13a   : > { %5049 = vst [vmem:[#allocation6_spill] sm:$0xff] %v4583_v34  ;;  %v3501_v36 = vpop.f32.mrb[18].mxu0 }
 0x13b   : > { %v4585_v38 = vmul.f32 %v3501_v36, %v658_v28  ;;  %v982_v40 = vpop.f32.mrb[19].mxu0 }
 0x13c   : > { %v4587_v42 = vmul.f32 %v982_v40, %v657_v32  ;;  %v4590_v46 = vpop.f32.mrb[18].mxu1 }
 0x13d   : > { %5050 = vst [vmem:[#allocation7_spill] sm:$0xff] %v4590_v46  ;;  %v4593_v50 = vpop.f32.mrb[19].mxu1 }
 0x13e   : > { %5051 = vst [vmem:[#allocation8_spill] sm:$0xff] %v4593_v50  ;;  %v3504_v52 = vpop.f32.mrb[20].mxu0 }
 0x13f   : > { %v4595_v54 = vmul.f32 %v3504_v52, %v660_v44  ;;  %v992_v56 = vpop.f32.mrb[21].mxu0  ;;  %v666_v44 = vld [vmem:[%s4491_s20 + $0xd8] sm:$0xff]  ;;  %v665_v52 = vld [vmem:[%s4491_s20 + $0xd0] sm:$0xff] }
 0x140   : > { %v4597_v58 = vmul.f32 %v992_v56, %v659_v48  ;;  %v4600_v62 = vpop.f32.mrb[20].mxu1 }
 0x141   : > { %5052 = vst [vmem:[#allocation9_spill] sm:$0xff] %v4600_v62  ;;  %v4603_v3 = vpop.f32.mrb[21].mxu1 }
 0x142   : > { %5053 = vst [vmem:[#allocation10_spill] sm:$0xff] %v4603_v3  ;;  %v3507_v5 = vpop.f32.mrb[22].mxu0 }
 0x143   : > { %v4605_v7 = vmul.f32 %v3507_v5, %v662_v60  ;;  %v1002_v9 = vpop.f32.mrb[23].mxu0 }
 0x144   : > { %v4607_v0 = vmul.f32 %v1002_v9, %v661_v1  ;;  %v4610_v16 = vpop.f32.mrb[22].mxu1 }
 0x145   : > { %5054 = vst [vmem:[#allocation11_spill] sm:$0xff] %v4610_v16  ;;  %v4613_v24 = vpop.f32.mrb[23].mxu1  ;;  %v670_v16 = vld [vmem:[%s4491_s20 + $0xf8] sm:$0xff] }
 0x146   : > { %5055 = vst [vmem:[#allocation12_spill] sm:$0xff] %v4613_v24  ;;  %v3510_v28 = vpop.f32.mrb[24].mxu0 }
 0x147   : > { %v4615_v32 = vmul.f32 %v3510_v28, %v664_v14  ;;  %v1012_v36 = vpop.f32.mrb[25].mxu0  ;;  %v667_v28 = vld [vmem:[%s4491_s20 + $0xe0] sm:$0xff] }
 0x148   : > { %v4617_v40 = vmul.f32 %v1012_v36, %v663_v20  ;;  %v4620_v48 = vpop.f32.mrb[24].mxu1 }
 0x149   : > { %5056 = vst [vmem:[#allocation13_spill] sm:$0xff] %v4620_v48  ;;  %v4623_v56 = vpop.f32.mrb[25].mxu1 }
 0x14a   : > { %5057 = vst [vmem:[#allocation14_spill] sm:$0xff] %v4623_v56  ;;  %v3513_v60 = vpop.f32.mrb[26].mxu0 }
 0x14b   : > { %v4625_v1 = vmul.f32 %v3513_v60, %v666_v44  ;;  %v1022_v5 = vpop.f32.mrb[27].mxu0  ;;  %v669_v44 = vld [vmem:[%s4491_s20 + $0xf0] sm:$0xff] }
 0x14c   : > { %v4627_v9 = vmul.f32 %v1022_v5, %v665_v52  ;;  %v4630_v14 = vpop.f32.mrb[26].mxu1 }
 0x14d   : > { %5058 = vst [vmem:[#allocation15_spill] sm:$0xff] %v4630_v14  ;;  %v4633_v20 = vpop.f32.mrb[27].mxu1 }
 0x14e   : > { %5059 = vst [vmem:[#allocation16_spill] sm:$0xff] %v4633_v20  ;;  %v3516_v36 = vpop.f32.mrb[28].mxu0 }
 0x14f   : > { %v4635_v11 = vmul.f32 %v3516_v36, %v668_v12  ;;  %v1032_v48 = vpop.f32.mrb[29].mxu0  ;;  %v607_v12 = vld [vmem:[%s5044_s8] sm:$0xff] }
 0x150   : > { %v4637_v24 = vmul.f32 %v1032_v48, %v667_v28  ;;  %v4640_v56 = vpop.f32.mrb[28].mxu1  ;;  %v608_v48 = vld [vmem:[%s5044_s8 + $0x8] sm:$0xff] }
 0x151   : > { %5060 = vst [vmem:[#allocation17_spill] sm:$0xff] %v4640_v56  ;;  %v4643_v60 = vpop.f32.mrb[29].mxu1 }
 0x152   : > { %5061 = vst [vmem:[#allocation18_spill] sm:$0xff] %v4643_v60  ;;  %v3519_v52 = vpop.f32.mrb[30].mxu0 }
 0x153   : > { %v4645_v5 = vmul.f32 %v3519_v52, %v670_v16  ;;  %v1042_v3 = vpop.f32.mrb[31].mxu0 }
 0x154   : > { %v4647_v14 = vmul.f32 %v1042_v3, %v669_v44  ;;  %v4649_v62 = vpop.f32.mrb[30].mxu1  ;;  %v609_v44 = vld [vmem:[%s5044_s8 + $0x10] sm:$0xff] }
 0x155   : > { %5062 = vst [vmem:[#allocation19_spill] sm:$0xff] %v4649_v62  ;;  %v4651_v20 = vpop.f32.mrb[31].mxu1  ;;  %v610_v62 = vld [vmem:[%s5044_s8 + $0x18] sm:$0xff] }
 0x156   : > { %5063 = vst [vmem:[#allocation20_spill] sm:$0xff] %v4651_v20  ;;  %v3578_v28 = vpop.f32.mrb[32].mxu0 }
 0x157   : > { %v1438_v36 = vpop.f32.mrb[33].mxu0  ;;  %v1598_v52 = vmul.f32 %v3578_v28, %v608_v48 }
 0x158   : > { %v1597_v60 = vmul.f32 %v1438_v36, %v607_v12  ;;  %v3630_v16 = vpop.f32.mrb[32].mxu1 }
 0x159   : > { %v1855_v56 = vmul.f32 %v3630_v16, %v608_v48  ;;  %v1695_v3 = vpop.f32.mrb[33].mxu1 }
 0x15a   : > { %v1854_v20 = vmul.f32 %v1695_v3, %v607_v12  ;;  %v3581_v50 = vpop.f32.mrb[34].mxu0  ;;  %3680 = vmatprep.mubr.msk.f32.mxu0 %vm729_vm0, %v1597_v60  ;;  %v611_v12 = vld [vmem:[%s5044_s8 + $0x20] sm:$0xff]  ;;  %v612_v60 = vld [vmem:[%s5044_s8 + $0x28] sm:$0xff] }
 0x15b   : > { %v1448_v46 = vpop.f32.mrb[35].mxu0  ;;  %3681 = vmatmul.mubr.msk.f32.vlgmr.msra.gmra.mrb[64].mxu0 %vm729_vm0, %v1598_v52  ;;  %v1600_v48 = vmul.f32 %v3581_v50, %v610_v62  ;;  %v613_v52 = vld [vmem:[%s5044_s8 + $0x30] sm:$0xff] }
 0x15c   : > { %v1599_v36 = vmul.f32 %v1448_v46, %v609_v44  ;;  %v3633_v34 = vpop.f32.mrb[34].mxu1  ;;  %3732 = vmatprep.mubr.msk.f32.mxu1 %vm729_vm0, %v1854_v20 }
 0x15d   : > { %v1857_v28 = vmul.f32 %v3633_v34, %v610_v62  ;;  %v1705_v16 = vpop.f32.mrb[35].mxu1  ;;  %3733 = vmatmul.mubr.msk.f32.vlgmr.msra.gmra.mrb[64].mxu1 %vm729_vm0, %v1855_v56 }
 0x15e   : > { %v1856_v3 = vmul.f32 %v1705_v16, %v609_v44  ;;  %v3584_v30 = vpop.f32.mrb[36].mxu0  ;;  %3683 = vmatprep.mubr.msk.f32.mxu0 %vm729_vm0, %v1599_v36  ;;  %v614_v36 = vld [vmem:[%s5044_s8 + $0x38] sm:$0xff] }
 0x15f   : > { %v1458_v46 = vpop.f32.mrb[37].mxu0  ;;  %3684 = vmatmul.mubr.msk.f32.gmra.mrb[66].mxu0 %vm729_vm0, %v1600_v48  ;;  %v1602_v62 = vmul.f32 %v3584_v30, %v612_v60 }
 0x160   : > { %v1601_v50 = vmul.f32 %v1458_v46, %v611_v12  ;;  %v3636_v34 = vpop.f32.mrb[36].mxu1  ;;  %3735 = vmatprep.mubr.msk.f32.mxu1 %vm729_vm0, %v1856_v3 }
 0x161   : > { %v1859_v56 = vmul.f32 %v3636_v34, %v612_v60  ;;  %v1715_v20 = vpop.f32.mrb[37].mxu1  ;;  %3736 = vmatmul.mubr.msk.f32.gmra.mrb[66].mxu1 %vm729_vm0, %v1857_v28 }
 0x162   : > { %v1858_v44 = vmul.f32 %v1715_v20, %v611_v12  ;;  %v3587_v16 = vpop.f32.mrb[38].mxu0  ;;  %3686 = vmatprep.mubr.msk.f32.mxu0 %vm729_vm0, %v1601_v50  ;;  %v615_v12 = vld [vmem:[%s5044_s8 + $0x40] sm:$0xff]  ;;  %v616_v50 = vld [vmem:[%s5044_s8 + $0x48] sm:$0xff] }
 0x163   : > { %v1468_v48 = vpop.f32.mrb[39].mxu0  ;;  %3687 = vmatmul.mubr.msk.f32.gmra.mrb[68].mxu0 %vm729_vm0, %v1602_v62  ;;  %v1604_v28 = vmul.f32 %v3587_v16, %v614_v36 }
 0x164   : > { %v1603_v30 = vmul.f32 %v1468_v48, %v613_v52  ;;  %v3639_v3 = vpop.f32.mrb[38].mxu1  ;;  %3738 = vmatprep.mubr.msk.f32.mxu1 %vm729_vm0, %v1858_v44 }
 0x165   : > { %v1861_v60 = vmul.f32 %v3639_v3, %v614_v36  ;;  %v1725_v46 = vpop.f32.mrb[39].mxu1  ;;  %3739 = vmatmul.mubr.msk.f32.gmra.mrb[68].mxu1 %vm729_vm0, %v1859_v56 }
 0x166   : > { %v1860_v34 = vmul.f32 %v1725_v46, %v613_v52  ;;  %v3590_v20 = vpop.f32.mrb[40].mxu0  ;;  %3689 = vmatprep.mubr.msk.f32.mxu0 %vm729_vm0, %v1603_v30  ;;  %v617_v52 = vld [vmem:[%s5044_s8 + $0x50] sm:$0xff]  ;;  %v618_v30 = vld [vmem:[%s5044_s8 + $0x58] sm:$0xff] }
 0x167   : > { %v1478_v62 = vpop.f32.mrb[41].mxu0  ;;  %3690 = vmatmul.mubr.msk.f32.gmra.mrb[70].mxu0 %vm729_vm0, %v1604_v28  ;;  %v1606_v56 = vmul.f32 %v3590_v20, %v616_v50 }
 0x168   : > { %v1605_v44 = vmul.f32 %v1478_v62, %v615_v12  ;;  %v3642_v36 = vpop.f32.mrb[40].mxu1  ;;  %3741 = vmatprep.mubr.msk.f32.mxu1 %vm729_vm0, %v1860_v34 }
 0x169   : > { %v1863_v16 = vmul.f32 %v3642_v36, %v616_v50  ;;  %v1735_v48 = vpop.f32.mrb[41].mxu1  ;;  %3742 = vmatmul.mubr.msk.f32.gmra.mrb[70].mxu1 %vm729_vm0, %v1861_v60 }
 0x16a   : > { %v1862_v3 = vmul.f32 %v1735_v48, %v615_v12  ;;  %v3593_v46 = vpop.f32.mrb[42].mxu0  ;;  %3692 = vmatprep.mubr.msk.f32.mxu0 %vm729_vm0, %v1605_v44  ;;  %v619_v12 = vld [vmem:[%s5044_s8 + $0x60] sm:$0xff]  ;;  %v620_v44 = vld [vmem:[%s5044_s8 + $0x68] sm:$0xff] }
 0x16b   : > { %v1488_v28 = vpop.f32.mrb[43].mxu0  ;;  %3693 = vmatmul.mubr.msk.f32.gmra.mrb[72].mxu0 %vm729_vm0, %v1606_v56  ;;  %v1608_v60 = vmul.f32 %v3593_v46, %v618_v30 }
 0x16c   : > { %v1607_v34 = vmul.f32 %v1488_v28, %v617_v52  ;;  %v3645_v50 = vpop.f32.mrb[42].mxu1  ;;  %3744 = vmatprep.mubr.msk.f32.mxu1 %vm729_vm0, %v1862_v3 }
 0x16d   : > { %v1865_v20 = vmul.f32 %v3645_v50, %v618_v30  ;;  %v1745_v62 = vpop.f32.mrb[43].mxu1  ;;  %3745 = vmatmul.mubr.msk.f32.gmra.mrb[72].mxu1 %vm729_vm0, %v1863_v16 }
 0x16e   : > { %v1864_v36 = vmul.f32 %v1745_v62, %v617_v52  ;;  %v3596_v48 = vpop.f32.mrb[44].mxu0  ;;  %3695 = vmatprep.mubr.msk.f32.mxu0 %vm729_vm0, %v1607_v34  ;;  %v621_v52 = vld [vmem:[%s5044_s8 + $0x70] sm:$0xff]  ;;  %v622_v34 = vld [vmem:[%s5044_s8 + $0x78] sm:$0xff] }
 0x16f   : > { %v1498_v56 = vpop.f32.mrb[45].mxu0  ;;  %3696 = vmatmul.mubr.msk.f32.gmra.mrb[74].mxu0 %vm729_vm0, %v1608_v60  ;;  %v1610_v16 = vmul.f32 %v3596_v48, %v620_v44 }
 0x170   : > { %v1609_v3 = vmul.f32 %v1498_v56, %v619_v12  ;;  %v3648_v30 = vpop.f32.mrb[44].mxu1  ;;  %3747 = vmatprep.mubr.msk.f32.mxu1 %vm729_vm0, %v1864_v36 }
 0x171   : > { %v1867_v46 = vmul.f32 %v3648_v30, %v620_v44  ;;  %v1755_v28 = vpop.f32.mrb[45].mxu1  ;;  %3748 = vmatmul.mubr.msk.f32.gmra.mrb[74].mxu1 %vm729_vm0, %v1865_v20 }
 0x172   : > { %v1866_v50 = vmul.f32 %v1755_v28, %v619_v12  ;;  %v3599_v62 = vpop.f32.mrb[46].mxu0  ;;  %3698 = vmatprep.mubr.msk.f32.mxu0 %vm729_vm0, %v1609_v3  ;;  %v623_v12 = vld [vmem:[%s5044_s8 + $0x80] sm:$0xff]  ;;  %v624_v3 = vld [vmem:[%s5044_s8 + $0x88] sm:$0xff] }
 0x173   : > { %v1508_v60 = vpop.f32.mrb[47].mxu0  ;;  %3699 = vmatmul.mubr.msk.f32.gmra.mrb[76].mxu0 %vm729_vm0, %v1610_v16  ;;  %v1612_v20 = vmul.f32 %v3599_v62, %v622_v34 }
 0x174   : > { %v1611_v36 = vmul.f32 %v1508_v60, %v621_v52  ;;  %v3651_v44 = vpop.f32.mrb[46].mxu1  ;;  %3750 = vmatprep.mubr.msk.f32.mxu1 %vm729_vm0, %v1866_v50 }
 0x175   : > { %v1869_v48 = vmul.f32 %v3651_v44, %v622_v34  ;;  %v1765_v56 = vpop.f32.mrb[47].mxu1  ;;  %3751 = vmatmul.mubr.msk.f32.gmra.mrb[76].mxu1 %vm729_vm0, %v1867_v46 }
 0x176   : > { %v1868_v30 = vmul.f32 %v1765_v56, %v621_v52  ;;  %v3602_v28 = vpop.f32.mrb[48].mxu0  ;;  %3701 = vmatprep.mubr.msk.f32.mxu0 %vm729_vm0, %v1611_v36  ;;  %v625_v52 = vld [vmem:[%s5044_s8 + $0x90] sm:$0xff]  ;;  %v626_v36 = vld [vmem:[%s5044_s8 + $0x98] sm:$0xff] }
 0x177   : > { %v1518_v16 = vpop.f32.mrb[49].mxu0  ;;  %3702 = vmatmul.mubr.msk.f32.gmra.mrb[78].mxu0 %vm729_vm0, %v1612_v20  ;;  %v1614_v46 = vmul.f32 %v3602_v28, %v624_v3 }
 0x178   : > { %v1613_v50 = vmul.f32 %v1518_v16, %v623_v12  ;;  %v3654_v34 = vpop.f32.mrb[48].mxu1  ;;  %3753 = vmatprep.mubr.msk.f32.mxu1 %vm729_vm0, %v1868_v30 }
 0x179   : > { %v1871_v62 = vmul.f32 %v3654_v34, %v624_v3  ;;  %v1775_v60 = vpop.f32.mrb[49].mxu1  ;;  %3754 = vmatmul.mubr.msk.f32.gmra.mrb[78].mxu1 %vm729_vm0, %v1869_v48 }
 0x17a   : > { %v1870_v44 = vmul.f32 %v1775_v60, %v623_v12  ;;  %v3605_v56 = vpop.f32.mrb[50].mxu0  ;;  %3704 = vmatprep.mubr.msk.f32.mxu0 %vm729_vm0, %v1613_v50  ;;  %v627_v12 = vld [vmem:[%s5044_s8 + $0xa0] sm:$0xff]  ;;  %v628_v50 = vld [vmem:[%s5044_s8 + $0xa8] sm:$0xff] }
 0x17b   : > { %v1528_v20 = vpop.f32.mrb[51].mxu0  ;;  %3705 = vmatmul.mubr.msk.f32.gmra.mrb[80].mxu0 %vm729_vm0, %v1614_v46  ;;  %v1616_v48 = vmul.f32 %v3605_v56, %v626_v36 }
 0x17c   : > { %v1615_v30 = vmul.f32 %v1528_v20, %v625_v52  ;;  %v3657_v3 = vpop.f32.mrb[50].mxu1  ;;  %3756 = vmatprep.mubr.msk.f32.mxu1 %vm729_vm0, %v1870_v44 }
 0x17d   : > { %v1873_v28 = vmul.f32 %v3657_v3, %v626_v36  ;;  %v1785_v16 = vpop.f32.mrb[51].mxu1  ;;  %3757 = vmatmul.mubr.msk.f32.gmra.mrb[80].mxu1 %vm729_vm0, %v1871_v62 }
 0x17e   : > { %v1872_v34 = vmul.f32 %v1785_v16, %v625_v52  ;;  %v3608_v60 = vpop.f32.mrb[52].mxu0  ;;  %3707 = vmatprep.mubr.msk.f32.mxu0 %vm729_vm0, %v1615_v30  ;;  %v629_v52 = vld [vmem:[%s5044_s8 + $0xb0] sm:$0xff]  ;;  %v630_v30 = vld [vmem:[%s5044_s8 + $0xb8] sm:$0xff] }
 0x17f   : > { %v1538_v46 = vpop.f32.mrb[53].mxu0  ;;  %3708 = vmatmul.mubr.msk.f32.gmra.mrb[82].mxu0 %vm729_vm0, %v1616_v48  ;;  %v1618_v62 = vmul.f32 %v3608_v60, %v628_v50 }
 0x180   : > { %v1617_v44 = vmul.f32 %v1538_v46, %v627_v12  ;;  %v3660_v36 = vpop.f32.mrb[52].mxu1  ;;  %3759 = vmatprep.mubr.msk.f32.mxu1 %vm729_vm0, %v1872_v34 }
 0x181   : > { %v1875_v56 = vmul.f32 %v3660_v36, %v628_v50  ;;  %v1795_v20 = vpop.f32.mrb[53].mxu1  ;;  %3760 = vmatmul.mubr.msk.f32.gmra.mrb[82].mxu1 %vm729_vm0, %v1873_v28 }
 0x182   : > { %v1874_v3 = vmul.f32 %v1795_v20, %v627_v12  ;;  %v3611_v16 = vpop.f32.mrb[54].mxu0  ;;  %3710 = vmatprep.mubr.msk.f32.mxu0 %vm729_vm0, %v1617_v44  ;;  %v631_v12 = vld [vmem:[%s5044_s8 + $0xc0] sm:$0xff]  ;;  %v632_v44 = vld [vmem:[%s5044_s8 + $0xc8] sm:$0xff] }
 0x183   : > { %v1548_v48 = vpop.f32.mrb[55].mxu0  ;;  %3711 = vmatmul.mubr.msk.f32.gmra.mrb[84].mxu0 %vm729_vm0, %v1618_v62  ;;  %v1620_v28 = vmul.f32 %v3611_v16, %v630_v30 }
 0x184   : > { %v1619_v34 = vmul.f32 %v1548_v48, %v629_v52  ;;  %v3663_v50 = vpop.f32.mrb[54].mxu1  ;;  %3762 = vmatprep.mubr.msk.f32.mxu1 %vm729_vm0, %v1874_v3 }
 0x185   : > { %v1877_v60 = vmul.f32 %v3663_v50, %v630_v30  ;;  %v1805_v46 = vpop.f32.mrb[55].mxu1  ;;  %3763 = vmatmul.mubr.msk.f32.gmra.mrb[84].mxu1 %vm729_vm0, %v1875_v56 }
 0x186   : > { %v1876_v36 = vmul.f32 %v1805_v46, %v629_v52  ;;  %v3614_v20 = vpop.f32.mrb[56].mxu0  ;;  %3713 = vmatprep.mubr.msk.f32.mxu0 %vm729_vm0, %v1619_v34  ;;  %v633_v52 = vld [vmem:[%s5044_s8 + $0xd0] sm:$0xff]  ;;  %v634_v34 = vld [vmem:[%s5044_s8 + $0xd8] sm:$0xff] }
 0x187   : > { %v1558_v62 = vpop.f32.mrb[57].mxu0  ;;  %3714 = vmatmul.mubr.msk.f32.gmra.mrb[86].mxu0 %vm729_vm0, %v1620_v28  ;;  %v1622_v56 = vmul.f32 %v3614_v20, %v632_v44 }
 0x188   : > { %v1621_v3 = vmul.f32 %v1558_v62, %v631_v12  ;;  %v3666_v30 = vpop.f32.mrb[56].mxu1  ;;  %3765 = vmatprep.mubr.msk.f32.mxu1 %vm729_vm0, %v1876_v36 }
 0x189   : > { %v1879_v16 = vmul.f32 %v3666_v30, %v632_v44  ;;  %v1815_v48 = vpop.f32.mrb[57].mxu1  ;;  %3766 = vmatmul.mubr.msk.f32.gmra.mrb[86].mxu1 %vm729_vm0, %v1877_v60 }
 0x18a   : > { %v1878_v50 = vmul.f32 %v1815_v48, %v631_v12  ;;  %v3617_v46 = vpop.f32.mrb[58].mxu0  ;;  %3716 = vmatprep.mubr.msk.f32.mxu0 %vm729_vm0, %v1621_v3  ;;  %v635_v12 = vld [vmem:[%s5044_s8 + $0xe0] sm:$0xff]  ;;  %v636_v3 = vld [vmem:[%s5044_s8 + $0xe8] sm:$0xff] }
 0x18b   : > { %v1568_v28 = vpop.f32.mrb[59].mxu0  ;;  %3717 = vmatmul.mubr.msk.f32.gmra.mrb[88].mxu0 %vm729_vm0, %v1622_v56  ;;  %v1624_v60 = vmul.f32 %v3617_v46, %v634_v34 }
 0x18c   : > { %v1623_v36 = vmul.f32 %v1568_v28, %v633_v52  ;;  %v3669_v44 = vpop.f32.mrb[58].mxu1  ;;  %3768 = vmatprep.mubr.msk.f32.mxu1 %vm729_vm0, %v1878_v50 }
 0x18d   : > { %v1881_v20 = vmul.f32 %v3669_v44, %v634_v34  ;;  %v1825_v62 = vpop.f32.mrb[59].mxu1  ;;  %3769 = vmatmul.mubr.msk.f32.gmra.mrb[88].mxu1 %vm729_vm0, %v1879_v16 }
 0x18e   : > { %v1880_v30 = vmul.f32 %v1825_v62, %v633_v52  ;;  %v3620_v48 = vpop.f32.mrb[60].mxu0  ;;  %3719 = vmatprep.mubr.msk.f32.mxu0 %vm729_vm0, %v1623_v36  ;;  %v637_v52 = vld [vmem:[%s5044_s8 + $0xf0] sm:$0xff]  ;;  %v638_v36 = vld [vmem:[%s5044_s8 + $0xf8] sm:$0xff] }
 0x18f   : > { %v1578_v56 = vpop.f32.mrb[61].mxu0  ;;  %3720 = vmatmul.mubr.msk.f32.gmra.mrb[90].mxu0 %vm729_vm0, %v1624_v60  ;;  %v1626_v16 = vmul.f32 %v3620_v48, %v636_v3 }
 0x190   : > { %v1625_v50 = vmul.f32 %v1578_v56, %v635_v12  ;;  %v3672_v34 = vpop.f32.mrb[60].mxu1  ;;  %3771 = vmatprep.mubr.msk.f32.mxu1 %vm729_vm0, %v1880_v30 }
 0x191   : > { %v1883_v46 = vmul.f32 %v3672_v34, %v636_v3  ;;  %v1835_v28 = vpop.f32.mrb[61].mxu1  ;;  %3772 = vmatmul.mubr.msk.f32.gmra.mrb[90].mxu1 %vm729_vm0, %v1881_v20  ;;  %v1308_v34 = vmul.f32 1.442695, %v4497_v19  ;;  %v1324_v19 = vmul.f32 1.442695, %v4537_v51 }
 0x192   : > { %v1882_v44 = vmul.f32 %v1835_v28, %v635_v12  ;;  %v3623_v62 = vpop.f32.mrb[62].mxu0  ;;  %3722 = vmatprep.mubr.msk.f32.mxu0 %vm729_vm0, %v1625_v50  ;;  %v1310_v50 = vmul.f32 1.442695, %v4495_v17  ;;  %v1312_v28 = vmul.f32 1.442695, %v4507_v27 }
 0x193   : > { %v1588_v60 = vpop.f32.mrb[63].mxu0  ;;  %3723 = vmatmul.mubr.msk.f32.gmra.mrb[92].mxu0 %vm729_vm0, %v1626_v16  ;;  %v1628_v20 = vmul.f32 %v3623_v62, %v638_v36  ;;  %v1314_v16 = vmul.f32 1.442695, %v4505_v25  ;;  %v1326_v17 = vmul.f32 1.442695, %v4535_v49 }
 0x194   : > { %v1627_v30 = vmul.f32 %v1588_v60, %v637_v52  ;;  %v3675_v3 = vpop.f32.mrb[62].mxu1  ;;  %3774 = vmatprep.mubr.msk.f32.mxu1 %vm729_vm0, %v1882_v44  ;;  %3850 = vpow2.f32 %v1310_v50  ;;  %v1322_v44 = vmul.f32 1.442695, %v4525_v41  ;;  %v1330_v25 = vmul.f32 1.442695, %v4545_v57 }
 0x195   : > { %v1885_v48 = vmul.f32 %v3675_v3, %v638_v36  ;;  %v1845_v56 = vpop.f32.mrb[63].mxu1  ;;  %3775 = vmatmul.mubr.msk.f32.gmra.mrb[92].mxu1 %vm729_vm0, %v1883_v46  ;;  %v1318_v46 = vmul.f32 1.442695, %v4515_v33  ;;  %3852 = vpow2.f32 %v1308_v34  ;;  %v1320_v36 = vmul.f32 1.442695, %v4527_v43 }
 0x196   : > { %v1884_v12 = vmul.f32 %v1845_v56, %v637_v52  ;;  %3725 = vmatprep.mubr.msk.f32.mxu0 %vm729_vm0, %v1627_v30  ;;  %v1316_v52 = vmul.f32 1.442695, %v4517_v35  ;;  %3854 = vpow2.f32 %v1314_v16  ;;  %v1328_v27 = vmul.f32 1.442695, %v4547_v59 }
 0x197   : > { %3726 = vmatmul.mubr.msk.f32.gmra.mrb[94].mxu0 %vm729_vm0, %v1628_v20  ;;  %3856 = vpow2.f32 %v1312_v28  ;;  %v1334_v33 = vmul.f32 1.442695, %v4555_v2  ;;  %v1332_v35 = vmul.f32 1.442695, %v4557_v4  ;;  %v1338_v43 = vmul.f32 1.442695, %v4565_v10 }
 0x198   : > { %3777 = vmatprep.mubr.msk.f32.mxu1 %vm729_vm0, %v1884_v12  ;;  %3858 = vpow2.f32 %v1318_v46  ;;  %v1336_v51 = vmul.f32 1.442695, %v4567_v13  ;;  %v1342_v57 = vmul.f32 1.442695, %v4575_v22  ;;  %v1340_v59 = vmul.f32 1.442695, %v4577_v26 }
 0x199   : > { %3778 = vmatmul.mubr.msk.f32.gmra.mrb[94].mxu1 %vm729_vm0, %v1885_v48  ;;  %3860 = vpow2.f32 %v1316_v52  ;;  %v1346_v4 = vmul.f32 1.442695, %v4585_v38  ;;  %v1344_v10 = vmul.f32 1.442695, %v4587_v42  ;;  %v1350_v13 = vmul.f32 1.442695, %v4595_v54 }
 0x19a   : > { %3862 = vpow2.f32 %v1322_v44  ;;  %v1348_v26 = vmul.f32 1.442695, %v4597_v58  ;;  %v1354_v38 = vmul.f32 1.442695, %v4605_v7  ;;  %v674_v48 = vld [vmem:[#allocation2 + $0x8] sm:$0xff]  ;;  %v673_v12 = vld [vmem:[#allocation2] sm:$0xff] }
 0x19b   : > { %3864 = vpow2.f32 %v1320_v36  ;;  %v1352_v42 = vmul.f32 1.442695, %v4607_v0  ;;  %v1358_v54 = vmul.f32 1.442695, %v4615_v32  ;;  %v1356_v58 = vmul.f32 1.442695, %v4617_v40 }
 0x19c   : > { %3866 = vpow2.f32 %v1326_v17  ;;  %v1362_v32 = vmul.f32 1.442695, %v4625_v1  ;;  %v1366_v1 = vmul.f32 1.442695, %v4635_v11 }
 0x19d   : > { %3868 = vpow2.f32 %v1324_v19 }
 0x19e   : > { %v3851_v41 = vpop.eup %3850  ;;  %3870 = vpow2.f32 %v1330_v25 }
 0x19f   : > { %v3853_v49 = vpop.eup %3852  ;;  %3872 = vpow2.f32 %v1328_v27  ;;  %v2561_v46 = vmul.f32 %v3851_v41, %v674_v48 }
 0x1a0   : > { %v3855_v62 = vpop.eup %3854  ;;  %3874 = vpow2.f32 %v1334_v33  ;;  %v2560_v36 = vmul.f32 %v3853_v49, %v673_v12 }
 0x1a1   : > { %v3857_v60 = vpop.eup %3856  ;;  %3876 = vpow2.f32 %v1332_v35 }
 0x1a2   : > { %v4831_v2 = vpop.eup %3858  ;;  %3878 = vpow2.f32 %v1338_v43 }
 0x1a3   : > { %v4834_v30 = vpop.eup %3860  ;;  %3880 = vpow2.f32 %v1336_v51 }
 0x1a4   : > { %v4837_v3 = vpop.eup %3862  ;;  %3882 = vpow2.f32 %v1342_v57 }
 0x1a5   : > { %v4840_v22 = vpop.eup %3864  ;;  %3884 = vpow2.f32 %v1340_v59 }
 0x1a6   : > { %v4843_v20 = vpop.eup %3866  ;;  %3886 = vpow2.f32 %v1346_v4 }
 0x1a7   : > { %v4846_v56 = vpop.eup %3868  ;;  %3888 = vpow2.f32 %v1344_v10 }
 0x1a8   : > { %v4849_v50 = vpop.eup %3870  ;;  %3890 = vpow2.f32 %v1350_v13 }
 0x1a9   : > { %v4852_v16 = vpop.eup %3872  ;;  %3892 = vpow2.f32 %v1348_v26 }
 0x1aa   : > { %v4856_v52 = vpop.eup %3874  ;;  %3894 = vpow2.f32 %v1354_v38 }
 0x1ab   : > { %v4859_v17 = vpop.eup %3876  ;;  %3896 = vpow2.f32 %v1352_v42 }
 0x1ac   : > { %v4862_v27 = vpop.eup %3878  ;;  %3898 = vpow2.f32 %v1358_v54 }
 0x1ad   : > { %v4865_v35 = vpop.eup %3880  ;;  %3900 = vpow2.f32 %v1356_v58 }
 0x1ae   : > { %v4868_v51 = vpop.eup %3882  ;;  %3902 = vpow2.f32 %v1362_v32 }
 0x22e   : > { %v3682_v34 = vpop.f32.mrb[64].mxu0 }
 0x22f   : > { %v2208_v7 = vmul.f32 %v3682_v34, %v4500_v21  ;;  %v2048_v28 = vpop.f32.mrb[65].mxu0  ;;  %v1360_v21 = vmul.f32 1.442695, %v4627_v9  ;;  %v4872_v9 = vpop.eup %3884 }
 0x230   : > { %v2207_v0 = vmul.f32 %v2048_v28, %v4503_v23  ;;  %v3734_v44 = vpop.f32.mrb[64].mxu1  ;;  %v4875_v48 = vpop.eup %3886 }
 0x231   : > { %v2563_v19 = vadd.f32 %v2561_v46, %v2208_v7  ;;  %v2401_v25 = vpop.f32.mrb[65].mxu1  ;;  %3904 = vpow2.f32 %v1360_v21  ;;  %v4879_v12 = vpop.eup %3888 }
 0x232   : > { %v2562_v40 = vadd.f32 %v2560_v36, %v2207_v0  ;;  %v3685_v33 = vpop.f32.mrb[66].mxu0  ;;  %v4883_v7 = vpop.eup %3890  ;;  %3906 = vpow2.f32 %v1366_v1  ;;  %v1370_v36 = vmul.f32 1.442695, %v4645_v5 }
 0x233   : > { %v2565_v23 = vmul.f32 %v3734_v44, %v2563_v19  ;;  %v2210_v41 = vmul.f32 %v3685_v33, %v4510_v29  ;;  %v2058_v43 = vpop.f32.mrb[67].mxu0  ;;  %v2577_v49 = vmul.f32 %v3855_v62, %v2563_v19  ;;  %v1364_v29 = vmul.f32 1.442695, %v4637_v24  ;;  %v4887_v44 = vpop.eup %3892 }
 0x234   : > { %v2564_v57 = vmul.f32 %v2562_v40, %v2401_v25  ;;  %v2209_v59 = vmul.f32 %v2058_v43, %v4513_v31  ;;  %v3737_v4 = vpop.f32.mrb[66].mxu1  ;;  %v2576_v10 = vmul.f32 %v3857_v60, %v2562_v40  ;;  %v4891_v21 = vpop.eup %3894 }
 0x235   : > { %v2568_v13 = vsel %vm572_vm5, %v2565_v23, 0.0  ;;  %v2579_v26 = vadd.f32 %v2577_v49, %v2210_v41  ;;  %v2411_v38 = vpop.f32.mrb[67].mxu1  ;;  %3908 = vpow2.f32 %v1364_v29  ;;  %v4895_v23 = vpop.eup %3896 }
 0x236   : > { %v2567_v62 = vsel %vm572_vm5, %v2564_v57, 0.0  ;;  %v2578_v11 = vadd.f32 %v2576_v10, %v2209_v59  ;;  %v3688_v42 = vpop.f32.mrb[68].mxu0  ;;  %v4898_v1 = vpop.eup %3898  ;;  %3910 = vpow2.f32 %v1370_v36 }
 0x237   : > { %v2569_v31 = vadd.f32 %v2568_v13, %v2567_v62  ;;  %v2581_v60 = vmul.f32 %v3737_v4, %v2579_v26  ;;  %v2212_v54 = vmul.f32 %v3688_v42, %v4520_v37  ;;  %v2068_v34 = vpop.f32.mrb[69].mxu0  ;;  %v2592_v58 = vmul.f32 %v4831_v2, %v2579_v26  ;;  %v4903_v13 = vpop.eup %3900 }
 0x238   : > { %v2580_v28 = vmul.f32 %v2578_v11, %v2411_v38  ;;  %v2211_v46 = vmul.f32 %v2068_v34, %v4523_v39  ;;  %v3740_v24 = vpop.f32.mrb[68].mxu1  ;;  %v2591_v0 = vmul.f32 %v4834_v30, %v2578_v11  ;;  %v1368_v2 = vmul.f32 1.442695, %v4647_v14 }
 0x239   : > { %v2570_v32 = vrot.slane %v2569_v31, 4  ;;  %v2583_v19 = vsel %vm572_vm5, %v2581_v60, 0.0  ;;  %v2594_v37 = vadd.f32 %v2592_v58, %v2212_v54  ;;  %v2421_v25 = vpop.f32.mrb[69].mxu1 }
 0x23a   : > { %v2582_v40 = vsel %vm572_vm5, %v2580_v28, 0.0  ;;  %v2593_v39 = vadd.f32 %v2591_v0, %v2211_v46  ;;  %v3691_v33 = vpop.f32.mrb[70].mxu0  ;;  %3912 = vpow2.f32 %v1368_v2 }
 0x23b   : > { %v2571_v30 = vadd.f32 %v2570_v32, %v2569_v31  ;;  %v2584_v41 = vadd.f32 %v2583_v19, %v2582_v40  ;;  %v2596_v43 = vmul.f32 %v3740_v24, %v2594_v37  ;;  %v2214_v5 = vmul.f32 %v3691_v33, %v4530_v45  ;;  %v2078_v49 = vpop.f32.mrb[71].mxu0 }
 0x23c   : > { %v2595_v57 = vmul.f32 %v2593_v39, %v2421_v25  ;;  %v2213_v59 = vmul.f32 %v2078_v49, %v4533_v47  ;;  %v3743_v4 = vpop.f32.mrb[70].mxu1  ;;  %v2607_v14 = vmul.f32 %v4837_v3, %v2594_v37  ;;  %v2606_v10 = vmul.f32 %v4840_v22, %v2593_v39  ;;  %v4907_v47 = vpop.eup %3902 }
 0x23d   : > { %v2572_v26 = vrot.slane %v2571_v30, 2  ;;  %v2585_v38 = vrot.slane %v2584_v41, 4  ;;  %v2598_v29 = vsel %vm572_vm5, %v2596_v43, 0.0  ;;  %v2431_v62 = vpop.f32.mrb[71].mxu1  ;;  %v4910_v58 = vpop.eup %3904 }
 0x23e   : > { %v2597_v45 = vsel %vm572_vm5, %v2595_v57, 0.0  ;;  %v2609_v11 = vadd.f32 %v2607_v14, %v2214_v5  ;;  %v2608_v42 = vadd.f32 %v2606_v10, %v2213_v59  ;;  %v3694_v31 = vpop.f32.mrb[72].mxu0  ;;  %v4915_v2 = vpop.eup %3906 }
 0x23f   : > { %v2573_v60 = vadd.f32 %v2572_v26, %v2571_v30  ;;  %v2586_v3 = vadd.f32 %v2585_v38, %v2584_v41  ;;  %v2599_v54 = vadd.f32 %v2598_v29, %v2597_v45  ;;  %v2216_v22 = vmul.f32 %v3694_v31, %v4540_v53  ;;  %v2088_v34 = vpop.f32.mrb[73].mxu0  ;;  %v4919_v5 = vpop.eup %3908 }
 0x240   : > { %v2611_v28 = vmul.f32 %v3743_v4, %v2609_v11  ;;  %v2610_v46 = vmul.f32 %v2608_v42, %v2431_v62  ;;  %v2215_v24 = vmul.f32 %v2088_v34, %v4543_v55  ;;  %v3746_v0 = vpop.f32.mrb[72].mxu1  ;;  %v2622_v36 = vmul.f32 %v4843_v20, %v2609_v11 }
 0x241   : > { %v2587_v32 = vrot.slane %v2586_v3, 2  ;;  %v2600_v19 = vrot.slane %v2599_v54, 4  ;;  %v2441_v37 = vpop.f32.mrb[73].mxu1  ;;  %v2621_v25 = vmul.f32 %v4846_v56, %v2608_v42  ;;  %v2574_v40 = vrot.slane %v2573_v60, 1 }
 0x242   : > { %v2613_v53 = vsel %vm572_vm5, %v2611_v28, 0.0  ;;  %v2612_v39 = vsel %vm572_vm5, %v2610_v46, 0.0  ;;  %v2624_v33 = vadd.f32 %v2622_v36, %v2216_v22  ;;  %v3697_v30 = vpop.f32.mrb[74].mxu0 }
 0x243   : > { %v2588_v41 = vadd.f32 %v2587_v32, %v2586_v3  ;;  %v2601_v55 = vadd.f32 %v2600_v19, %v2599_v54  ;;  %v2614_v43 = vadd.f32 %v2613_v53, %v2612_v39  ;;  %v2098_v20 = vpop.f32.mrb[75].mxu0  ;;  %v2623_v57 = vadd.f32 %v2621_v25, %v2215_v24  ;;  %v4926_v3 = vpop.eup %3910 }
 0x244   : > { %v2626_v49 = vmul.f32 %v3746_v0, %v2624_v33  ;;  %v2218_v56 = vmul.f32 %v3697_v30, %v4550_v61  ;;  %v2217_v59 = vmul.f32 %v2098_v20, %v4553_v63  ;;  %v3749_v4 = vpop.f32.mrb[74].mxu1  ;;  %v2637_v38 = vmul.f32 %v4849_v50, %v2624_v33  ;;  %v4928_v28 = vpop.eup %3912 }
 0x245   : > { %v2589_v14 = vrot.slane %v2588_v41, 1  ;;  %v2602_v10 = vrot.slane %v2601_v55, 2  ;;  %v2615_v26 = vrot.slane %v2614_v43, 4  ;;  %v2451_v29 = vpop.f32.mrb[75].mxu1  ;;  %v2575_v62 = vadd.f32 %v2574_v40, %v2573_v60 }
 0x246   : > { %v2628_v45 = vsel %vm572_vm5, %v2626_v49, 0.0  ;;  %v2625_v11 = vmul.f32 %v2623_v57, %v2441_v37  ;;  %v2636_v42 = vmul.f32 %v4852_v16, %v2623_v57  ;;  %v3700_v31 = vpop.f32.mrb[76].mxu0  ;;  %v2639_v22 = vadd.f32 %v2637_v38, %v2218_v56 }
 0x247   : > { %v2590_v61 = vadd.f32 %v2589_v14, %v2588_v41  ;;  %v2603_v54 = vadd.f32 %v2602_v10, %v2601_v55  ;;  %v2616_v63 = vadd.f32 %v2615_v26, %v2614_v43  ;;  %v2108_v34 = vpop.f32.mrb[77].mxu0  ;;  %v2220_v60 = vmul.f32 %v3700_v31, %v4560_v6 }
 0x248   : > { %v2627_v50 = vsel %vm572_vm5, %v2625_v11, 0.0  ;;  %v2638_v46 = vadd.f32 %v2636_v42, %v2217_v59  ;;  %v2219_v24 = vmul.f32 %v2108_v34, %v4563_v8  ;;  %v3752_v0 = vpop.f32.mrb[76].mxu1  ;;  %v2641_v25 = vmul.f32 %v3749_v4, %v2639_v22 }
 0x249   : > { %v2802_v16 = vsel %vm2801_vm6, %v2575_v62, %v2590_v61  ;;  %v2604_v36 = vrot.slane %v2603_v54, 1  ;;  %v2617_v32 = vrot.slane %v2616_v63, 2  ;;  %v2629_v19 = vadd.f32 %v2628_v45, %v2627_v50  ;;  %v2461_v37 = vpop.f32.mrb[77].mxu1 }
 0x24a   : > { %v2640_v40 = vmul.f32 %v2638_v46, %v2451_v29  ;;  %v2652_v53 = vmul.f32 %v4856_v52, %v2639_v22  ;;  %v2651_v39 = vmul.f32 %v4859_v17, %v2638_v46  ;;  %v3703_v33 = vpop.f32.mrb[78].mxu0  ;;  %v2643_v43 = vsel %vm572_vm5, %v2641_v25, 0.0  ;;  %v5064_v22 = vld [vmem:[#allocation5_spill] sm:$0xff] }
 0x24b   : > { %v2605_v30 = vadd.f32 %v2604_v36, %v2603_v54  ;;  %v2618_v41 = vadd.f32 %v2617_v32, %v2616_v63  ;;  %v2630_v55 = vrot.slane %v2629_v19, 4  ;;  %v2222_v6 = vmul.f32 %v3703_v33, %v4570_v15  ;;  %v2118_v8 = vpop.f32.mrb[79].mxu0  ;;  %v5065_v36 = vld [vmem:[#allocation6_spill] sm:$0xff] }
 0x24c   : > { %v2642_v20 = vsel %vm572_vm5, %v2640_v40, 0.0  ;;  %v2654_v49 = vadd.f32 %v2652_v53, %v2220_v60  ;;  %v2653_v57 = vadd.f32 %v2651_v39, %v2219_v24  ;;  %v3755_v56 = vpop.f32.mrb[78].mxu1  ;;  %v2221_v38 = vmul.f32 %v2118_v8, %v4573_v18  ;;  %v5066_v53 = vld [vmem:[#allocation7_spill] sm:$0xff] }
 0x24d   : > { %v2804_v59 = vsel %vm2803_vm7, %v2802_v16, %v2605_v30  ;;  %v2619_v52 = vrot.slane %v2618_v41, 1  ;;  %v2631_v4 = vadd.f32 %v2630_v55, %v2629_v19  ;;  %v2644_v17 = vadd.f32 %v2643_v43, %v2642_v20  ;;  %v2471_v14 = vpop.f32.mrb[79].mxu1 }
 0x24e   : > { %v2656_v10 = vmul.f32 %v3752_v0, %v2654_v49  ;;  %v2655_v26 = vmul.f32 %v2653_v57, %v2461_v37  ;;  %v2667_v15 = vmul.f32 %v4862_v27, %v2654_v49  ;;  %v3706_v29 = vpop.f32.mrb[80].mxu0  ;;  %v2666_v42 = vmul.f32 %v4865_v35, %v2653_v57  ;;  %v5067_v57 = vld [vmem:[#allocation8_spill] sm:$0xff] }
 0x24f   : > { %v2620_v62 = vadd.f32 %v2619_v52, %v2618_v41  ;;  %v2632_v45 = vrot.slane %v2631_v4, 2  ;;  %v2645_v11 = vrot.slane %v2644_v17, 4  ;;  %v2128_v31 = vpop.f32.mrb[81].mxu0  ;;  %v2224_v34 = vmul.f32 %v3706_v29, %v5064_v22 }
 0x250   : > { %v2658_v61 = vsel %vm572_vm5, %v2656_v10, 0.0  ;;  %v2657_v54 = vsel %vm572_vm5, %v2655_v26, 0.0  ;;  %v2669_v63 = vadd.f32 %v2667_v15, %v2222_v6  ;;  %v3758_v50 = vpop.f32.mrb[80].mxu1  ;;  %v2668_v16 = vadd.f32 %v2666_v42, %v2221_v38 }
 0x251   : > { %v2806_v18 = vsel %vm2805_vm8, %v2804_v59, %v2620_v62  ;;  %v2633_v46 = vadd.f32 %v2632_v45, %v2631_v4  ;;  %v2646_v27 = vadd.f32 %v2645_v11, %v2644_v17  ;;  %v2659_v60 = vadd.f32 %v2658_v61, %v2657_v54  ;;  %v2481_v24 = vpop.f32.mrb[81].mxu1 }
 0x252   : > { %v2671_v0 = vmul.f32 %v3755_v56, %v2669_v63  ;;  %v2223_v35 = vmul.f32 %v2128_v31, %v5065_v36  ;;  %v2682_v32 = vmul.f32 %v4868_v51, %v2669_v63  ;;  %v3709_v19 = vpop.f32.mrb[82].mxu0  ;;  %v2670_v41 = vmul.f32 %v2668_v16, %v2471_v14  ;;  %v5068_v63 = vld [vmem:[#allocation9_spill] sm:$0xff] }
 0x253   : > { %v2634_v37 = vrot.slane %v2633_v46, 1  ;;  %v2647_v25 = vrot.slane %v2646_v27, 2  ;;  %v2660_v40 = vrot.slane %v2659_v60, 4  ;;  %v2226_v39 = vmul.f32 %v3709_v19, %v5066_v53  ;;  %v2138_v33 = vpop.f32.mrb[83].mxu0 }
 0x254   : > { %v2673_v30 = vsel %vm572_vm5, %v2671_v0, 0.0  ;;  %v2684_v55 = vadd.f32 %v2682_v32, %v2224_v34  ;;  %v2681_v6 = vmul.f32 %v4872_v9, %v2668_v16  ;;  %v3761_v8 = vpop.f32.mrb[82].mxu1  ;;  %v2225_v51 = vmul.f32 %v2138_v33, %v5067_v57  ;;  %v5070_v33 = vld [vmem:[#allocation11_spill] sm:$0xff] }
 0x255   : > { %v2635_v43 = vadd.f32 %v2634_v37, %v2633_v46  ;;  %v2648_v20 = vadd.f32 %v2647_v25, %v2646_v27  ;;  %v2661_v49 = vadd.f32 %v2660_v40, %v2659_v60  ;;  %v2491_v56 = vpop.f32.mrb[83].mxu1  ;;  %v2672_v59 = vsel %vm572_vm5, %v2670_v41, 0.0  ;;  %v5069_v46 = vld [vmem:[#allocation10_spill] sm:$0xff] }
 0x256   : > { %v2686_v52 = vmul.f32 %v3758_v50, %v2684_v55  ;;  %v2683_v4 = vadd.f32 %v2681_v6, %v2223_v35  ;;  %v2697_v17 = vmul.f32 %v4875_v48, %v2684_v55  ;;  %v3712_v10 = vpop.f32.mrb[84].mxu0  ;;  %v2674_v15 = vadd.f32 %v2673_v30, %v2672_v59 }
 0x257   : > { %v2808_v26 = vsel %vm2807_vm9, %v2806_v18, %v2635_v43  ;;  %v2649_v14 = vrot.slane %v2648_v20, 1  ;;  %v2662_v38 = vrot.slane %v2661_v49, 2  ;;  %v2148_v9 = vpop.f32.mrb[85].mxu0  ;;  %v2228_v22 = vmul.f32 %v3712_v10, %v5068_v63  ;;  %v5071_v43 = vld [vmem:[#allocation12_spill] sm:$0xff] }
 0x258   : > { %v2688_v29 = vsel %vm572_vm5, %v2686_v52, 0.0  ;;  %v2685_v62 = vmul.f32 %v2683_v4, %v2481_v24  ;;  %v2699_v45 = vadd.f32 %v2697_v17, %v2226_v39  ;;  %v2696_v11 = vmul.f32 %v4879_v12, %v2683_v4  ;;  %v3764_v42 = vpop.f32.mrb[84].mxu1 }
 0x259   : > { %v2650_v31 = vadd.f32 %v2649_v14, %v2648_v20  ;;  %v2663_v61 = vadd.f32 %v2662_v38, %v2661_v49  ;;  %v2675_v54 = vrot.slane %v2674_v15, 4  ;;  %v2501_v48 = vpop.f32.mrb[85].mxu1  ;;  %v2227_v27 = vmul.f32 %v2148_v9, %v5069_v46 }
 0x25a   : > { %v2687_v34 = vsel %vm572_vm5, %v2685_v62, 0.0  ;;  %v2701_v50 = vmul.f32 %v3761_v8, %v2699_v45  ;;  %v2698_v18 = vadd.f32 %v2696_v11, %v2225_v51  ;;  %v3715_v60 = vpop.f32.mrb[86].mxu0  ;;  %v2712_v19 = vmul.f32 %v4883_v7, %v2699_v45 }
 0x25b   : > { %v2810_v24 = vsel %vm2809_vm10, %v2808_v26, %v2650_v31  ;;  %v2664_v0 = vrot.slane %v2663_v61, 1  ;;  %v2676_v16 = vadd.f32 %v2675_v54, %v2674_v15  ;;  %v2689_v12 = vadd.f32 %v2688_v29, %v2687_v34  ;;  %v2158_v36 = vpop.f32.mrb[87].mxu0  ;;  %v5072_v15 = vld [vmem:[#allocation13_spill] sm:$0xff]  ;;  %v5073_v34 = vld [vmem:[#allocation14_spill] sm:$0xff] }
 0x25c   : > { %v2703_v35 = vsel %vm572_vm5, %v2701_v50, 0.0  ;;  %v2700_v32 = vmul.f32 %v2698_v18, %v2491_v56  ;;  %v2711_v37 = vmul.f32 %v4887_v44, %v2698_v18  ;;  %v3767_v25 = vpop.f32.mrb[86].mxu1  ;;  %v2230_v30 = vmul.f32 %v3715_v60, %v5070_v33 }
 0x25d   : > { %v2665_v40 = vadd.f32 %v2664_v0, %v2663_v61  ;;  %v2677_v53 = vrot.slane %v2676_v16, 2  ;;  %v2690_v39 = vrot.slane %v2689_v12, 4  ;;  %v2511_v41 = vpop.f32.mrb[87].mxu1  ;;  %v2714_v6 = vadd.f32 %v2712_v19, %v2228_v22 }
 0x25e   : > { %v2702_v55 = vsel %vm572_vm5, %v2700_v32, 0.0  ;;  %v2713_v8 = vadd.f32 %v2711_v37, %v2227_v27  ;;  %v2229_v20 = vmul.f32 %v2158_v36, %v5071_v43  ;;  %v3718_v49 = vpop.f32.mrb[88].mxu0 }
 0x25f   : > { %v2812_v57 = vsel %vm2811_vm11, %v2810_v24, %v2665_v40  ;;  %v2678_v51 = vadd.f32 %v2677_v53, %v2676_v16  ;;  %v2691_v7 = vadd.f32 %v2690_v39, %v2689_v12  ;;  %v2704_v44 = vadd.f32 %v2703_v35, %v2702_v55  ;;  %v2168_v56 = vpop.f32.mrb[89].mxu0  ;;  %v5074_v12 = vld [vmem:[#allocation3_spill] sm:$0xff] }
 0x260   : > { %v2716_v59 = vmul.f32 %v3764_v42, %v2714_v6  ;;  %v2715_v52 = vmul.f32 %v2713_v8, %v2501_v48  ;;  %v2727_v4 = vmul.f32 %v4891_v21, %v2714_v6  ;;  %v2726_v17 = vmul.f32 %v4895_v23, %v2713_v8  ;;  %v3770_v10 = vpop.f32.mrb[88].mxu1  ;;  %v5075_v55 = vld [vmem:[#allocation15_spill] sm:$0xff] }
 0x261   : > { %v2679_v26 = vrot.slane %v2678_v51, 1  ;;  %v2692_v14 = vrot.slane %v2691_v7, 2  ;;  %v2705_v38 = vrot.slane %v2704_v44, 4  ;;  %v2232_v9 = vmul.f32 %v3718_v49, %v5072_v15  ;;  %v2521_v29 = vpop.f32.mrb[89].mxu1 }
 0x262   : > { %v2718_v62 = vsel %vm572_vm5, %v2716_v59, 0.0  ;;  %v2717_v45 = vsel %vm572_vm5, %v2715_v52, 0.0  ;;  %v2729_v11 = vadd.f32 %v2727_v4, %v2230_v30  ;;  %v2728_v31 = vadd.f32 %v2726_v17, %v2229_v20  ;;  %v3721_v61 = vpop.f32.mrb[90].mxu0  ;;  %v5077_v52 = vld [vmem:[#allocation17_spill] sm:$0xff] }
 0x263   : > { %v2680_v42 = vadd.f32 %v2679_v26, %v2678_v51  ;;  %v2693_v54 = vadd.f32 %v2692_v14, %v2691_v7  ;;  %v2706_v63 = vadd.f32 %v2705_v38, %v2704_v44  ;;  %v2719_v21 = vadd.f32 %v2718_v62, %v2717_v45  ;;  %v2178_v22 = vpop.f32.mrb[91].mxu0  ;;  %v5078_v14 = vld [vmem:[#allocation18_spill] sm:$0xff] }
 0x264   : > { %v2731_v23 = vmul.f32 %v3767_v25, %v2729_v11  ;;  %v2730_v48 = vmul.f32 %v2728_v31, %v2511_v41  ;;  %v2231_v50 = vmul.f32 %v2168_v56, %v5073_v34  ;;  %v2742_v18 = vmul.f32 %v4898_v1, %v2729_v11  ;;  %v3773_v46 = vpop.f32.mrb[90].mxu1  ;;  %v5079_v11 = vld [vmem:[#allocation19_spill] sm:$0xff] }
 0x265   : > { %v2814_v27 = vsel %vm2813_vm12, %v2812_v57, %v2680_v42  ;;  %v2694_v60 = vrot.slane %v2693_v54, 1  ;;  %v2707_v24 = vrot.slane %v2706_v63, 2  ;;  %v2720_v0 = vrot.slane %v2719_v21, 4  ;;  %v2531_v16 = vpop.f32.mrb[91].mxu1  ;;  %v5076_v57 = vld [vmem:[#allocation16_spill] sm:$0xff] }
 0x266   : > { %v2830_v36 = vadd.f32 %v5074_v12, %v2814_v27  ;;  %v2733_v35 = vsel %vm572_vm5, %v2731_v23, 0.0  ;;  %v2732_v32 = vsel %vm572_vm5, %v2730_v48, 0.0  ;;  %v2744_v19 = vadd.f32 %v2742_v18, %v2232_v9  ;;  %v3724_v37 = vpop.f32.mrb[92].mxu0 }
 0x267   : > { %v2695_v1 = vadd.f32 %v2694_v60, %v2693_v54  ;;  %v2708_v25 = vadd.f32 %v2707_v24, %v2706_v63  ;;  %v2721_v40 = vadd.f32 %v2720_v0, %v2719_v21  ;;  %v2734_v53 = vadd.f32 %v2733_v35, %v2732_v32  ;;  %v2188_v39 = vpop.f32.mrb[93].mxu0  ;;  %v5080_v63 = vld [vmem:[#allocation20_spill] sm:$0xff] }
 0x268   : > { %v3246_v33 = vpack.c.bf16 %v2830_v36, %v2830_v36  ;;  %v2746_v30 = vmul.f32 %v3770_v10, %v2744_v19  ;;  %v2741_v41 = vmul.f32 %v4903_v13, %v2728_v31  ;;  %v2234_v6 = vmul.f32 %v3721_v61, %v5075_v55  ;;  %v3776_v8 = vpop.f32.mrb[92].mxu1 }
 0x269   : > { %v2709_v43 = vrot.slane %v2708_v25, 1  ;;  %v2722_v20 = vrot.slane %v2721_v40, 2  ;;  %v2735_v49 = vrot.slane %v2734_v53, 4  ;;  %v2233_v51 = vmul.f32 %v2178_v22, %v5076_v57  ;;  %v2541_v7 = vpop.f32.mrb[93].mxu1 }
 0x26a   : > { %2841 = vst.msk [vmem:[%s4984_s27] sm:$0xf] %vm2840_vm13, %v3246_v33  ;;  %v2748_v44 = vsel %vm572_vm5, %v2746_v30, 0.0  ;;  %v2743_v56 = vadd.f32 %v2741_v41, %v2231_v50  ;;  %v2757_v59 = vmul.f32 %v4907_v47, %v2744_v19  ;;  %v2236_v4 = vmul.f32 %v3724_v37, %v5077_v52  ;;  %v3727_v17 = vpop.f32.mrb[94].mxu0 }
 0x26b   : > { %v2710_v13 = vadd.f32 %v2709_v43, %v2708_v25  ;;  %v2723_v10 = vadd.f32 %v2722_v20, %v2721_v40  ;;  %v2736_v26 = vadd.f32 %v2735_v49, %v2734_v53  ;;  %v2235_v38 = vmul.f32 %v2188_v39, %v5078_v14  ;;  %v2198_v15 = vpop.f32.mrb[95].mxu0 }
 0x26c   : > { %v2745_v9 = vmul.f32 %v2743_v56, %v2521_v29  ;;  %v2759_v62 = vadd.f32 %v2757_v59, %v2234_v6  ;;  %v2756_v45 = vmul.f32 %v4910_v58, %v2743_v56  ;;  %v2238_v31 = vmul.f32 %v3727_v17, %v5079_v11  ;;  %v3779_v61 = vpop.f32.mrb[94].mxu1 }
 0x26d   : > { %v2815_v42 = vsel %vm2801_vm6, %v2695_v1, %v2710_v13  ;;  %v2724_v54 = vrot.slane %v2723_v10, 1  ;;  %v2737_v47 = vrot.slane %v2736_v26, 2  ;;  %v2237_v21 = vmul.f32 %v2198_v15, %v5080_v63  ;;  %v2551_v22 = vpop.f32.mrb[95].mxu1 }
 0x26e   : > { %v2747_v23 = vsel %vm572_vm5, %v2745_v9, 0.0  ;;  %v2761_v48 = vmul.f32 %v3773_v46, %v2759_v62  ;;  %v2758_v34 = vadd.f32 %v2756_v45, %v2233_v51  ;;  %v2772_v50 = vmul.f32 %v4915_v2, %v2759_v62 }
 0x26f   : > { %v2725_v29 = vadd.f32 %v2724_v54, %v2723_v10  ;;  %v2738_v18 = vadd.f32 %v2737_v47, %v2736_v26  ;;  %v2749_v27 = vadd.f32 %v2748_v44, %v2747_v23  ;;  %v5081_v47 = vld [vmem:[#allocation4_spill] sm:$0xff] }
 0x270   : > { %v2763_v58 = vsel %vm572_vm5, %v2761_v48, 0.0  ;;  %v2760_v60 = vmul.f32 %v2758_v34, %v2531_v16  ;;  %v2774_v24 = vadd.f32 %v2772_v50, %v2236_v4  ;;  %v2771_v0 = vmul.f32 %v4919_v5, %v2758_v34 }
 0x271   : > { %v2816_v12 = vsel %vm2803_vm7, %v2815_v42, %v2725_v29  ;;  %v2739_v36 = vrot.slane %v2738_v18, 1  ;;  %v2750_v35 = vrot.slane %v2749_v27, 4 }
 0x272   : > { %v2762_v32 = vsel %vm572_vm5, %v2760_v60, 0.0  ;;  %v2776_v19 = vmul.f32 %v3776_v8, %v2774_v24  ;;  %v2773_v46 = vadd.f32 %v2771_v0, %v2235_v38  ;;  %v2787_v37 = vmul.f32 %v4926_v3, %v2774_v24 }
 0x273   : > { %v2740_v2 = vadd.f32 %v2739_v36, %v2738_v18  ;;  %v2751_v1 = vadd.f32 %v2750_v35, %v2749_v27  ;;  %v2764_v25 = vadd.f32 %v2763_v58, %v2762_v32 }
 0x274   : > { %v2778_v40 = vsel %vm572_vm5, %v2776_v19, 0.0  ;;  %v2775_v53 = vmul.f32 %v2773_v46, %v2541_v7  ;;  %v2789_v16 = vadd.f32 %v2787_v37, %v2238_v31  ;;  %v2786_v39 = vmul.f32 %v4928_v28, %v2773_v46 }
 0x275   : > { %v2817_v5 = vsel %vm2805_vm8, %v2816_v12, %v2740_v2  ;;  %v2752_v33 = vrot.slane %v2751_v1, 2  ;;  %v2765_v30 = vrot.slane %v2764_v25, 4 }
 0x276   : > { %v2777_v41 = vsel %vm572_vm5, %v2775_v53, 0.0  ;;  %v2791_v55 = vmul.f32 %v3779_v61, %v2789_v16  ;;  %2844 = vst.msk [vmem:[#allocation2 + $0x8] sm:$0xff] %vm572_vm5, %v2789_v16  ;;  %v2788_v6 = vadd.f32 %v2786_v39, %v2237_v21 }
 0x277   : > { %v2753_v3 = vadd.f32 %v2752_v33, %v2751_v1  ;;  %v2766_v8 = vadd.f32 %v2765_v30, %v2764_v25  ;;  %v2779_v43 = vadd.f32 %v2778_v40, %v2777_v41 }
 0x278   : > { %v2793_v20 = vsel %vm572_vm5, %v2791_v55, 0.0  ;;  %v2790_v49 = vmul.f32 %v2788_v6, %v2551_v22  ;;  %2843 = vst.msk [vmem:[#allocation2] sm:$0xff] %vm572_vm5, %v2788_v6 }
 0x279   : > { %v2754_v57 = vrot.slane %v2753_v3, 1  ;;  %v2767_v28 = vrot.slane %v2766_v8, 2  ;;  %v2780_v51 = vrot.slane %v2779_v43, 4 }
 0x27a   : > { %v2792_v7 = vsel %vm572_vm5, %v2790_v49, 0.0 }
 0x27b   : > { %v2755_v44 = vadd.f32 %v2754_v57, %v2753_v3  ;;  %v2768_v56 = vadd.f32 %v2767_v28, %v2766_v8  ;;  %v2781_v59 = vadd.f32 %v2780_v51, %v2779_v43  ;;  %v2794_v52 = vadd.f32 %v2793_v20, %v2792_v7 }
 0x27d   : > { %v2818_v4 = vsel %vm2807_vm9, %v2817_v5, %v2755_v44  ;;  %v2769_v17 = vrot.slane %v2768_v56, 1  ;;  %v2782_v13 = vrot.slane %v2781_v59, 2  ;;  %v2795_v10 = vrot.slane %v2794_v52, 4 }
 0x27f   : > { %v2770_v26 = vadd.f32 %v2769_v17, %v2768_v56  ;;  %v2783_v14 = vadd.f32 %v2782_v13, %v2781_v59  ;;  %v2796_v38 = vadd.f32 %v2795_v10, %v2794_v52 }
 0x281   : > { %v2819_v15 = vsel %vm2809_vm10, %v2818_v4, %v2770_v26  ;;  %v2784_v9 = vrot.slane %v2783_v14, 1  ;;  %v2797_v62 = vrot.slane %v2796_v38, 2 }
 0x283   : > { %v2785_v45 = vadd.f32 %v2784_v9, %v2783_v14  ;;  %v2798_v11 = vadd.f32 %v2797_v62, %v2796_v38 }
 0x285   : > { %v2820_v31 = vsel %vm2811_vm11, %v2819_v15, %v2785_v45  ;;  %v2799_v61 = vrot.slane %v2798_v11, 1 }
 0x287   : > { %v2800_v42 = vadd.f32 %v2799_v61, %v2798_v11 }
 0x289   : > { %v2821_v54 = vsel %vm2813_vm12, %v2820_v31, %v2800_v42 }
 0x28a   : > { %v2831_v63 = vadd.f32 %v5081_v47, %v2821_v54 }
 0x28c   : > { %v3247_v21 = vpack.c.bf16 %v2831_v63, %v2831_v63 }
 0x28e   : > { %2842 = vst.msk [vmem:[%s4984_s27 + $0x4] sm:$0xf] %vm2840_vm13, %v3247_v21 }
 0x28f PF: > { %s19_s13 = sadd.s32 1, %s3952_s13   ;;  %s5082_s30 = smov %s3944_s11 }
 0x290   : > { %p16_p7 = scmp.ge.s32.totalorder %s19_s13, 10   ;;  %s5083_s10 = smov %s3948_s12 }
 0x291   : > { %s5084_s11 = smov %s5087_s14  ;;  %s5085_s12 = smov %s5091_s15 }
 0x292   :  { %18 = sbr.rel (!%p16_p7) target bundleno = 3 (0x3), region = 108 }

</bundles_post_ra>
